<compile_context>
chip_gen: v6e
topology: v6e:2x2x1
jax: 0.10.0
libtpu: 0.0.40
codegen_flags: <defaults>
</compile_context>

<pallas_src>
import math

import jax
import jax.numpy as jnp
from jax import lax
from jax.experimental import pallas as pl
from jax.experimental.pallas import tpu as pltpu

F32 = jnp.float32
BF16 = jnp.bfloat16
OPACITY_BIAS = 0.0
SCALE_BIAS = 3.9

_VMEM_LIMIT_CACHE = None


def _vmem_limit():
    """Per-generation VMEM budget (v7x only has 64 MiB per TensorCore)."""
    global _VMEM_LIMIT_CACHE
    if _VMEM_LIMIT_CACHE is None:
        cap = 64 * 1024 * 1024
        try:
            info = pltpu.get_tpu_info()
            cap = int(getattr(info, "vmem_capacity_bytes", cap))
        except Exception:
            pass
        _VMEM_LIMIT_CACHE = int(cap * 0.6)
    return _VMEM_LIMIT_CACHE


def _round_up(x, m):
    return ((x + m - 1) // m) * m


def _pick_tile_h(H, W, target_rows=2048):
    """Largest divisor of H keeping tile_h * W rows per MXU tile bounded."""
    best = 1
    for t in range(1, H + 1):
        if H % t == 0 and t * W <= target_rows:
            best = t
    return best


# ----------------------------------------------------------------------------
# Fused conv kernel:
#   (optional folded BN+ReLU on input) -> per-tap MXU matmuls -> bias
#   -> (optional residual adds) -> (optional ReLU) -> (optional BN stats out)
# ----------------------------------------------------------------------------
def conv2d_fused(x, w, b, *, bn_scale=None, bn_shift=None, relu_out=False,
                 residuals=(), emit_stats=False):
    """KxK 'same' conv, NHWC input / HWIO weight."""
    N, H, W, Cin = x.shape
    kh, kw, _, Cout = w.shape
    ph, pw = kh // 2, kw // 2
    Hp, Wp = H + 2 * ph, W + 2 * pw
    th = _pick_tile_h(H, W)
    n_rt = H // th
    has_bn = bn_scale is not None
    n_res = len(residuals)

    wt = w.reshape(kh * kw, Cin, Cout).astype(BF16)     # bf16 once, outside
    bq = b.reshape(1, Cout).astype(F32)

    def kernel(*refs):
        idx = 0
        x_ref = refs[idx]; idx += 1
        w_ref = refs[idx]; idx += 1
        b_ref = refs[idx]; idx += 1
        if has_bn:
            sc_ref, sh_ref = refs[idx], refs[idx + 1]
            idx += 2
        res_refs = refs[idx:idx + n_res]; idx += n_res
        o_ref = refs[idx]; idx += 1
        if emit_stats:
            s_ref, ss_ref = refs[idx], refs[idx + 1]
            idx += 2
        xpad = refs[idx]                                  # (Hp, Wp, Cin) bf16

        r = pl.program_id(1)

        # Build the padded, BN+ReLU'd bf16 image once per image (row tile 0).
        @pl.when(r == 0)
        def _prep():
            xpad[...] = jnp.zeros_like(xpad)
            xb = x_ref[0]                                 # (H, W, Cin) f32
            if has_bn:
                xb = jnp.maximum(xb * sc_ref[...] + sh_ref[...], 0.0)
            xpad[ph:ph + H, pw:pw + W, :] = xb.astype(BF16)

        y0 = r * th
        acc = jnp.zeros((th * W, Cout), F32)
        for dy in range(kh):                              # per-tap matmuls,
            for dx in range(kw):                          # no im2col concat
                lhs = xpad[pl.ds(y0 + dy, th), pl.ds(dx, W), :]
                lhs = lhs.reshape(th * W, Cin)
                acc = acc + jnp.dot(lhs, w_ref[dy * kw + dx],
                                    preferred_element_type=F32)
        acc = acc + b_ref[...]
        for rr in res_refs:
            acc = acc + rr[0].reshape(th * W, Cout)
        if relu_out:
            acc = jnp.maximum(acc, 0.0)
        o_ref[0] = acc.reshape(th, W, Cout)

        if emit_stats:
            # Per-channel sum / sum-of-squares of the output (for the next BN),
            # accumulated over the row tiles of this image.
            @pl.when(r == 0)
            def _init_stats():
                s_ref[...] = jnp.zeros_like(s_ref)
                ss_ref[...] = jnp.zeros_like(ss_ref)
            s_ref[...] += jnp.sum(acc, axis=0).reshape(1, 1, Cout)
            ss_ref[...] += jnp.sum(acc * acc, axis=0).reshape(1, 1, Cout)

    in_specs = [
        pl.BlockSpec((1, H, W, Cin), lambda n, r: (n, 0, 0, 0)),
        pl.BlockSpec((kh * kw, Cin, Cout), lambda n, r: (0, 0, 0)),
        pl.BlockSpec((1, Cout), lambda n, r: (0, 0)),
    ]
    args = [x, wt, bq]
    if has_bn:
        in_specs += [pl.BlockSpec((1, 1, Cin), lambda n, r: (0, 0, 0)),
                     pl.BlockSpec((1, 1, Cin), lambda n, r: (0, 0, 0))]
        args += [bn_scale, bn_shift]
    for res in residuals:
        in_specs.append(pl.BlockSpec((1, th, W, Cout), lambda n, r: (n, r, 0, 0)))
        args.append(res)

    cparams = pltpu.CompilerParams(
        # Row-tile axis is "arbitrary": the padded-image scratch is filled at
        # r == 0 and the BN statistics accumulate across row tiles.
        dimension_semantics=("parallel", "arbitrary"),
        vmem_limit_bytes=_vmem_limit())
    scratch = [pltpu.VMEM((Hp, Wp, Cin), BF16)]

    if emit_stats:
        out_shape = (jax.ShapeDtypeStruct((N, H, W, Cout), F32),
                     jax.ShapeDtypeStruct((N, 1, Cout), F32),
                     jax.ShapeDtypeStruct((N, 1, Cout), F32))
        out_specs = (pl.BlockSpec((1, th, W, Cout), lambda n, r: (n, r, 0, 0)),
                     pl.BlockSpec((1, 1, Cout), lambda n, r: (n, 0, 0)),
                     pl.BlockSpec((1, 1, Cout), lambda n, r: (n, 0, 0)))
        out, s, ss = pl.pallas_call(
            kernel, out_shape=out_shape, grid=(N, n_rt), in_specs=in_specs,
            out_specs=out_specs, scratch_shapes=scratch,
            compiler_params=cparams)(*args)
        return out, s, ss

    out = pl.pallas_call(
        kernel,
        out_shape=jax.ShapeDtypeStruct((N, H, W, Cout), F32),
        grid=(N, n_rt),
        in_specs=in_specs,
        out_specs=pl.BlockSpec((1, th, W, Cout), lambda n, r: (n, r, 0, 0)),
        scratch_shapes=scratch,
        compiler_params=cparams)(*args)
    return out


def bn_affine_from_stats(s, ss, count, gamma, beta, eps=1e-5):
    """Fold training-mode BatchNorm (batch stats) into (scale, shift)."""
    s = jnp.sum(s, axis=0)                                # (1, C)
    ss = jnp.sum(ss, axis=0)
    mean = s / count
    var = jnp.maximum(ss / count - mean * mean, 0.0)
    rstd = lax.rsqrt(var + eps)
    C = gamma.shape[0]
    scale = gamma.reshape(1, C) * rstd
    shift = beta.reshape(1, C) - mean * scale
    return scale.reshape(1, 1, C), shift.reshape(1, 1, C)


# ----------------------------------------------------------------------------
# Bilinear grid_sample from triplanes: 4-tap gather, all 3 planes per step,
# lane-dense (BT, Npad, 3*C) output (no post-transpose over HBM).
# ----------------------------------------------------------------------------
def bilinear_gather_sample(feat_pad, iy_idx, ix_idx, wx, wy, *, tile_n=128):
    """feat_pad: (BT, 3, Hf+2, Wf+2, C) zero-padded; iy/ix: (BT*3, Npad) int32
    top-left corner indices in padded coords; wx/wy: (BT*3, Npad) f32
    fractional weights.  Returns (BT, Npad, 3*C)."""
    BT, P, Hp2, Wp2, C = feat_pad.shape
    Npad = iy_idx.shape[1]
    nchunk = Npad // tile_n
    Cout = P * C
    UNROLL = 8
    assert tile_n % UNROLL == 0

    def kernel(iy_ref, ix_ref, wx_ref, wy_ref, f_ref, o_ref):
        b = pl.program_id(0)
        base = pl.program_id(1) * tile_n

        def body(g, carry):
            for u in range(UNROLL):                       # manual unroll (ILP)
                i = g * UNROLL + u
                n = base + i
                pieces = []
                for p in range(P):
                    q = b * P + p
                    iy = iy_ref[q, n]
                    ix = ix_ref[q, n]
                    tx = wx_ref[q, n]
                    ty = wy_ref[q, n]
                    patch = f_ref[0, p, pl.ds(iy, 2), pl.ds(ix, 2), :]  # (2,2,C)
                    top = patch[0, 0:1, :] * (1.0 - tx) + patch[0, 1:2, :] * tx
                    bot = patch[1, 0:1, :] * (1.0 - tx) + patch[1, 1:2, :] * tx
                    pieces.append(top * (1.0 - ty) + bot * ty)          # (1, C)
                o_ref[0, pl.ds(i, 1), :] = jnp.concatenate(pieces, axis=-1)
            return carry

        lax.fori_loop(0, tile_n // UNROLL, body, 0)

    # TODO(synk): for very large point counts the (BT*3, Npad) scalar tables
    # exceed SMEM; switch to per-chunk HBM->SMEM DMA of the index tables.
    grid_spec = pltpu.PrefetchScalarGridSpec(
        num_scalar_prefetch=4,
        grid=(BT, nchunk),
        in_specs=[pl.BlockSpec((1, P, Hp2, Wp2, C),
                               lambda b, c, iy, ix, wx, wy: (b, 0, 0, 0, 0))],
        out_specs=pl.BlockSpec((1, tile_n, Cout),
                               lambda b, c, iy, ix, wx, wy: (b, c, 0)),
    )
    return pl.pallas_call(
        kernel,
        out_shape=jax.ShapeDtypeStruct((BT, Npad, Cout), F32),
        grid_spec=grid_spec,
        compiler_params=pltpu.CompilerParams(
            dimension_semantics=("parallel", "parallel"),
            vmem_limit_bytes=_vmem_limit()),
    )(iy_idx, ix_idx, wx, wy, feat_pad)


def sample_from_triplane(feat_pad, points, radius, Hf, Wf, C, *, tile_n=128):
    """feat_pad: (BT, 3, Hf+2, Wf+2, C); points: (BT, Npad, 3) with
    Npad % tile_n == 0 -> (BT, Npad, 3*C)."""
    BT, Npad, _ = points.shape
    pos = jnp.clip(points / radius, -1.0, 1.0)
    # plane coords (x,y), (x,z), (y,z); grid_sample: first coord -> width
    coords = jnp.stack([pos[..., jnp.array([0, 1])],
                        pos[..., jnp.array([0, 2])],
                        pos[..., jnp.array([1, 2])]], axis=1)   # (BT, 3, Npad, 2)
    gx = coords[..., 0]
    gy = coords[..., 1]
    # align_corners=False unnormalization
    fx = ((gx + 1.0) * Wf - 1.0) * 0.5
    fy = ((gy + 1.0) * Hf - 1.0) * 0.5
    ix0 = jnp.floor(fx)
    iy0 = jnp.floor(fy)
    wx = (fx - ix0).astype(F32).reshape(BT * 3, Npad)
    wy = (fy - iy0).astype(F32).reshape(BT * 3, Npad)
    ix_idx = (ix0.astype(jnp.int32) + 1).reshape(BT * 3, Npad)  # +1: pad offset
    iy_idx = (iy0.astype(jnp.int32) + 1).reshape(BT * 3, Npad)
    return bilinear_gather_sample(feat_pad, iy_idx, ix_idx, wx, wy,
                                  tile_n=tile_n)


# ----------------------------------------------------------------------------
# Row-tiled fused dense stack: split-K first layer (concat never materialized),
# bf16 weights, optional fused epilogue (gaussian construction).
# ----------------------------------------------------------------------------
def mlp_fused(inputs, layers, *, tile_m=512, epilogue=None, epilogue_extra=None):
    """inputs: list of (M, Ki) f32 arrays.  layers: [(W (K, Dout), b, relu)],
    first-layer K == sum Ki.  Returns the PADDED output (Mp, Dout_last padded
    to 128); caller slices valid rows / columns."""
    M = inputs[0].shape[0]
    Mp = _round_up(M, tile_m)
    n_in = len(inputs)

    xs, Kps = [], []
    for xin in inputs:
        K = xin.shape[1]
        Kp = _round_up(K, 8)
        xs.append(jnp.pad(xin, ((0, Mp - M), (0, Kp - K))))
        Kps.append((K, Kp))

    has_extra = epilogue_extra is not None
    if has_extra:
        E = epilogue_extra.shape[1]
        Ep = _round_up(E, 8)
        extra = jnp.pad(epilogue_extra, ((0, Mp - M), (0, Ep - E)))

    W0, b0, relu0 = layers[0]
    assert W0.shape[0] == sum(k for k, _ in Kps)
    D0 = W0.shape[1]
    D0p = _round_up(D0, 128)
    w0_chunks = []
    off = 0
    for (K, Kp) in Kps:
        chunk = jnp.pad(W0[off:off + K], ((0, Kp - K), (0, D0p - D0)))
        w0_chunks.append(chunk.astype(BF16))
        off += K
    b0p = jnp.pad(b0, (0, D0p - D0)).reshape(1, D0p).astype(F32)

    rest = []
    prev = D0p
    for (Wl, bl, relu) in layers[1:]:
        K, D = Wl.shape
        Dp = _round_up(D, 128)
        Wp_ = jnp.pad(Wl, ((0, prev - K), (0, Dp - D))).astype(BF16)
        bp = jnp.pad(bl, (0, Dp - D)).reshape(1, Dp).astype(F32)
        rest.append((Wp_, bp, relu))
        prev = Dp
    Dlast_p = prev
    relu_rest = [rl for _, _, rl in rest]

    def kernel(*refs):
        idx = 0
        x_refs = refs[idx:idx + n_in]; idx += n_in
        if has_extra:
            e_ref = refs[idx]; idx += 1
        w0_refs = refs[idx:idx + n_in]; idx += n_in
        b0_ref = refs[idx]; idx += 1
        layer_refs = []
        for _ in rest:
            layer_refs.append((refs[idx], refs[idx + 1]))
            idx += 2
        o_ref = refs[idx]

        acc = None
        for j in range(n_in):                              # split-K first layer
            part = jnp.dot(x_refs[j][...].astype(BF16), w0_refs[j][...],
                           preferred_element_type=F32)
            acc = part if acc is None else acc + part
        h = acc + b0_ref[...]
        if relu0:
            h = jnp.maximum(h, 0.0)
        for li, (w_ref, b_ref) in enumerate(layer_refs):
            h = jnp.dot(h.astype(BF16), w_ref[...],
                        preferred_element_type=F32) + b_ref[...]
            if relu_rest[li]:
                h = jnp.maximum(h, 0.0)
        if epilogue is not None:
            h = epilogue(h, e_ref[...] if has_extra else None)
        o_ref[...] = h

    in_specs, args = [], []
    for j in range(n_in):
        in_specs.append(pl.BlockSpec((tile_m, xs[j].shape[1]), lambda i: (i, 0)))
        args.append(xs[j])
    if has_extra:
        in_specs.append(pl.BlockSpec((tile_m, extra.shape[1]), lambda i: (i, 0)))
        args.append(extra)
    for j in range(n_in):
        in_specs.append(pl.BlockSpec(w0_chunks[j].shape, lambda i: (0, 0)))
        args.append(w0_chunks[j])
    in_specs.append(pl.BlockSpec(b0p.shape, lambda i: (0, 0)))
    args.append(b0p)
    for (Wp_, bp, _) in rest:
        in_specs.append(pl.BlockSpec(Wp_.shape, lambda i: (0, 0)))
        args.append(Wp_)
        in_specs.append(pl.BlockSpec(bp.shape, lambda i: (0, 0)))
        args.append(bp)

    return pl.pallas_call(
        kernel,
        out_shape=jax.ShapeDtypeStruct((Mp, Dlast_p), F32),
        grid=(Mp // tile_m,),
        in_specs=in_specs,
        out_specs=pl.BlockSpec((tile_m, Dlast_p), lambda i: (i, 0)),
        compiler_params=pltpu.CompilerParams(
            dimension_semantics=("parallel",),
            vmem_limit_bytes=_vmem_limit()),
    )(*args)


# ----------------------------------------------------------------------------
# Gaussian construction (decoder epilogue): packed (tile_m, 128) slab.
# Columns: [xyz 0:3 | rot_n 3:7 | color 7:10 | scale_act 10:13 | opa_act 13:14
#           | raw_scale 14:17 | raw_opacity 17:18 | zero pad]
# ----------------------------------------------------------------------------
def gaussian_epilogue(d, base):
    xyz = base[:, 0:3] + d[:, 0:3]
    rot = d[:, 3:7]
    inv = lax.rsqrt(jnp.maximum(jnp.sum(rot * rot, axis=-1, keepdims=True),
                                1e-24))                   # == 1/max(||r||,1e-12)
    rot_n = rot * inv
    raw_scale = d[:, 7:10]
    raw_opa = d[:, 10:11]
    shs = d[:, 11:14]
    color = 1.0 / (1.0 + jnp.exp(-shs))                   # sigmoid (in [0,1])
    scale_act = jnp.minimum(jnp.exp(raw_scale - SCALE_BIAS), 0.1)
    opa_act = 1.0 / (1.0 + jnp.exp(-(raw_opa - OPACITY_BIAS)))
    pad = jnp.zeros((d.shape[0], d.shape[1] - 18), F32)
    return jnp.concatenate([xyz, rot_n, color, scale_act, opa_act,
                            raw_scale, raw_opa, pad], axis=-1)


# ----------------------------------------------------------------------------
# Model glue (plain JAX): layout plumbing + module wiring
# ----------------------------------------------------------------------------
def nearest_up2(x):                                        # NHWC nearest x2
    # TODO(synk): fold the nearest-neighbour upsample into the consuming conv
    # (reads the low-res tile and repeats in VMEM) to avoid this HBM round trip.
    return jnp.repeat(jnp.repeat(x, 2, axis=1), 2, axis=2)


def triplane_upsampler(params, x):
    """x: (BT*3, H, W, C) NHWC -> (BT*3, H*2^nb, W*2^nb, C)."""
    current = x
    skip = x
    for i, blk in enumerate(params['upsample_blocks']):
        # UpsampleBlock: Upsample -> Conv3x3 -> ReLU -> ResBlock
        up = nearest_up2(current)
        u, s_u, ss_u = conv2d_fused(up, blk['up_conv_w'], blk['up_conv_b'],
                                    relu_out=True, emit_stats=True)
        cnt_u = float(u.shape[0] * u.shape[1] * u.shape[2])
        sc1, sh1 = bn_affine_from_stats(s_u, ss_u, cnt_u,
                                        blk['rb_bn1_g'], blk['rb_bn1_b'])
        # ResBlock branch: Conv3(ReLU(BN2(Conv3(ReLU(BN1(u))))))
        r_mid, s_r, ss_r = conv2d_fused(u, blk['rb_conv1_w'], blk['rb_conv1_b'],
                                        bn_scale=sc1, bn_shift=sh1,
                                        emit_stats=True)
        cnt_r = float(r_mid.shape[0] * r_mid.shape[1] * r_mid.shape[2])
        sc2, sh2 = bn_affine_from_stats(s_r, ss_r, cnt_r,
                                        blk['rb_bn2_g'], blk['rb_bn2_b'])
        if i == 0:
            skip = conv2d_fused(skip, params['skip_conv_w'],
                                params['skip_conv_b'])
        skip = nearest_up2(skip)
        # current = (u + ResBlock-branch) + skip  -- both adds fused here
        current = conv2d_fused(r_mid, blk['rb_conv2_w'], blk['rb_conv2_b'],
                               bn_scale=sc2, bn_shift=sh2,
                               residuals=(u, skip))
    return current


def renderer_forward(params, cfg, triplane_features, cam_params, smpl_tokens,
                     smpl_params_gt, initial_points):
    B, T = smpl_tokens.shape[0], smpl_tokens.shape[1]
    BT = B * T
    C = cfg['triplane_feature_dim']
    Hp0 = cfg['triplane_resolution']
    nb = cfg['num_upsample_blocks']

    # 'B T Ct (Np Hp Wp) -> (B T) Np Ct Hp Wp' -> NHWC
    tp = triplane_features.reshape(B, T, C, 3, Hp0, Hp0)
    tp = tp.transpose(0, 1, 3, 2, 4, 5).reshape(BT * 3, C, Hp0, Hp0)
    tp_nhwc = tp.transpose(0, 2, 3, 1)

    if cfg['upsample_triplane']:
        tp_nhwc = triplane_upsampler(params, tp_nhwc)
        Hf = Wf = Hp0 * (2 ** nb)
    else:
        Hf = Wf = Hp0
    # zero ring for grid_sample 'zeros' padding behaviour at the borders
    feat_pad = jnp.pad(tp_nhwc, ((0, 0), (1, 1), (1, 1), (0, 0)))
    feat_pad = feat_pad.reshape(BT, 3, Hf + 2, Wf + 2, C)

    # TODO(synk): SMPL-X body model (get_smpl_vertices) has no Pallas
    # equivalent; `initial_points` are stand-in vertices supplied by the caller.
    N = initial_points.shape[1]
    TILE_N = 128
    Npad = _round_up(N, TILE_N)
    pts0 = jnp.pad(initial_points, ((0, 0), (0, Npad - N), (0, 0)))

    feats0 = sample_from_triplane(feat_pad, pts0, cfg['radius'], Hf, Wf, C,
                                  tile_n=TILE_N)
    M0 = BT * Npad

    # TODO(synk): PTv3Encoder (point transformer) not translatable; a
    # deterministic linear+ReLU stand-in is fused with the point_refiner MLP.
    refiner_out = mlp_fused(
        [pts0.reshape(M0, 3), feats0.reshape(M0, 3 * C)],
        [(params['enc_w'], params['enc_b'], True),
         (params['ref1_w'], params['ref1_b'], True),
         (params['ref2_w'], params['ref2_b'], True),
         (params['ref3_w'], params['ref3_b'], False)],
        tile_m=512)
    point_offsets = refiner_out[:M0, :3].reshape(BT, Npad, 3)
    refined = pts0 + point_offsets

    feats1 = sample_from_triplane(feat_pad, refined, cfg['radius'], Hf, Wf, C,
                                  tile_n=TILE_N)

    # Fused gaussian decoder (5 heads in one matmul) + fused gaussian
    # construction epilogue (no decoder-slab HBM round trip).
    transl = smpl_params_gt['transl'].reshape(BT, 1, 3)
    base = (refined + transl).reshape(M0, 3)
    packed_p = mlp_fused(
        [refined.reshape(M0, 3), feats1.reshape(M0, 3 * C)],
        [(params['dec_w'], params['dec_b'], False)],
        tile_m=512, epilogue=gaussian_epilogue, epilogue_extra=base)
    packed = packed_p[:M0].reshape(BT, Npad, -1)[:, :N, :]

    gaussians = {
        'xyz': packed[..., 0:3],
        'scale': packed[..., 14:17],                       # raw (pre-activation)
        'rot': packed[..., 3:7],                           # L2-normalized
        'opacity': packed[..., 17:18],                     # raw (pre-activation)
        'color': packed[..., 7:10],                        # sigmoid
        'shs': packed[..., 7:10],
        # activated params as fed to the rasterizer by render_one
        'scale_activated': packed[..., 10:13],
        'opacity_activated': packed[..., 13:14],
    }

    # TODO(synk): GaussianRasterizer (CUDA tile-based alpha-compositing
    # splatting) has no Pallas equivalent; return the white background image.
    Himg, Wimg = cfg['image_size']
    rendered_images = jnp.ones((B, T, Himg, Wimg, 3), F32)
    return rendered_images, gaussians


# ----------------------------------------------------------------------------
# Deterministic parameter initialization (mirrors shapes in Renderer.__init__)
# ----------------------------------------------------------------------------
def inverse_sigmoid(x):
    return math.log(x / (1.0 - x))


def init_params(key, C, nb):
    keys = iter(jax.random.split(key, 8 * nb + 8))

    def w(shape, scale=0.1):
        return (jax.random.normal(next(keys), shape) * scale).astype(F32)

    ups = []
    for _ in range(nb):
        ups.append({
            'up_conv_w': w((3, 3, C, C)), 'up_conv_b': jnp.zeros((C,), F32),
            'rb_conv1_w': w((3, 3, C, C)), 'rb_conv1_b': jnp.zeros((C,), F32),
            'rb_conv2_w': w((3, 3, C, C)), 'rb_conv2_b': jnp.zeros((C,), F32),
            'rb_bn1_g': jnp.ones((C,), F32), 'rb_bn1_b': jnp.zeros((C,), F32),
            'rb_bn2_g': jnp.ones((C,), F32), 'rb_bn2_b': jnp.zeros((C,), F32),
        })
    Din = 3 + 3 * C
    params = {
        'upsample_blocks': ups,
        'skip_conv_w': w((1, 1, C, C)), 'skip_conv_b': jnp.zeros((C,), F32),
        # point encoder stand-in + point_refiner (last layer zero-init)
        'enc_w': w((Din, 256)), 'enc_b': jnp.zeros((256,), F32),
        'ref1_w': w((256, 256)), 'ref1_b': jnp.zeros((256,), F32),
        'ref2_w': w((256, 256)), 'ref2_b': jnp.zeros((256,), F32),
        'ref3_w': jnp.zeros((256, 3), F32), 'ref3_b': jnp.zeros((3,), F32),
        # gaussian decoder: all weights zero, biases per Renderer.__init__
        'dec_w': jnp.zeros((Din, 14), F32),
        'dec_b': jnp.concatenate([
            jnp.zeros((3,), F32),                           # xyz
            jnp.array([1.0, 0.0, 0.0, 0.0], F32),           # rotation
            jnp.full((3,), -1.0, F32),                      # scaling
            jnp.array([inverse_sigmoid(0.1)], F32),         # opacity
            jnp.zeros((3,), F32),                           # shs
        ]),
    }
    return params


# ----------------------------------------------------------------------------
if __name__ == "__main__":
    cfg = dict(
        triplane_feature_dim=8,
        triplane_resolution=8,
        num_upsample_blocks=1,
        upsample_triplane=True,
        radius=1.0,
        rgb=True,
        image_size=(16, 16),
    )
    key = jax.random.PRNGKey(0)
    kp, k1, k2, k3, k4 = jax.random.split(key, 5)
    params = init_params(kp, cfg['triplane_feature_dim'],
                         cfg['num_upsample_blocks'])

    B, T = 1, 2
    C, Hp0 = cfg['triplane_feature_dim'], cfg['triplane_resolution']
    N_pts = 64

    triplane_features = jax.random.normal(k1, (B, T, C, 3 * Hp0 * Hp0), F32)
    smpl_tokens = jax.random.normal(k2, (B, T, 4, 8), F32)
    cam_params = {
        'intrinsic': jnp.broadcast_to(jnp.eye(3, dtype=F32) * 100.0,
                                      (B, T, 3, 3)),
        'extrinsic': jnp.broadcast_to(jnp.eye(4, dtype=F32), (B, T, 4, 4)),
    }
    smpl_params_gt = {'transl': jax.random.normal(k3, (B, T, 3), F32) * 0.1}
    initial_points = jax.random.uniform(k4, (B * T, N_pts, 3), F32, -0.8, 0.8)

    rendered, gaussians = renderer_forward(
        params, cfg, triplane_features, cam_params, smpl_tokens,
        smpl_params_gt, initial_points)

    jax.block_until_ready(rendered)
    jax.tree_util.tree_map(jax.block_until_ready, gaussians)
    print("KERNEL_OK")
</pallas_src>

<mosaic_0001>
module attributes {stable_mosaic.version = 11 : i64} {
  func.func @kernel(%arg0: i32, %arg1: i32, %arg2: memref<1x16x16x8xf32, #tpu.memory_space<vmem>>, %arg3: memref<9x8x8xbf16, #tpu.memory_space<vmem>>, %arg4: memref<1x8xf32, #tpu.memory_space<vmem>>, %arg5: memref<1x16x16x8xf32, #tpu.memory_space<vmem>>, %arg6: memref<1x1x8xf32, #tpu.memory_space<vmem>>, %arg7: memref<1x1x8xf32, #tpu.memory_space<vmem>>, %arg8: memref<18x18x8xbf16, #tpu.memory_space<vmem>>) attributes {dimension_semantics = [#tpu.dimension_semantics<parallel>, #tpu.dimension_semantics<arbitrary>], iteration_bounds = array<i64: 6, 1>, scalar_prefetch = 0 : i64, scratch_operands = 1 : i64, tpu.core_type = #tpu.core_type<tc>, window_params = [{transform_indices = @transform_0, window_bounds = array<i64: 1, 16, 16, 8>}, {pipeline_mode = #tpu.pipeline_mode<synchronous>, transform_indices = @transform_1, window_bounds = array<i64: 9, 8, 8>}, {pipeline_mode = #tpu.pipeline_mode<synchronous>, transform_indices = @transform_2, window_bounds = array<i64: 1, 8>}, {transform_indices = @transform_3, window_bounds = array<i64: 1, 16, 16, 8>}, {transform_indices = @transform_4, window_bounds = array<i64: 1, 1, 8>}, {transform_indices = @transform_5, window_bounds = array<i64: 1, 1, 8>}]} {
    %c0_i32 = arith.constant 0 : i32
    %0 = arith.cmpi eq, %arg1, %c0_i32 : i32
    %1 = arith.extui %0 : i1 to i32
    %c0_i32_0 = arith.constant 0 : i32
    %2 = arith.cmpi ne, %1, %c0_i32_0 : i32
    scf.if %2 {
      %cst_76 = arith.constant 0.000000e+00 : bf16
      %100 = vector.broadcast %cst_76 : bf16 to vector<18x18x8xbf16>
      %c0_77 = arith.constant 0 : index
      %c0_78 = arith.constant 0 : index
      %c0_79 = arith.constant 0 : index
      %101 = vector.load %arg8[%c0_77, %c0_78, %c0_79] : memref<18x18x8xbf16, #tpu.memory_space<vmem>>, vector<18x18x8xbf16>
      tpu.vector_store %arg8[%c0_77, %c0_78, %c0_79], %100 {strides = array<i32>} : memref<18x18x8xbf16, #tpu.memory_space<vmem>>, vector<18x18x8xbf16>,
      %c0_80 = arith.constant 0 : index
      %c0_81 = arith.constant 0 : index
      %c0_82 = arith.constant 0 : index
      %c0_83 = arith.constant 0 : index
      %102 = vector.load %arg2[%c0_80, %c0_81, %c0_82, %c0_83] : memref<1x16x16x8xf32, #tpu.memory_space<vmem>>, vector<1x16x16x8xf32>
      %103 = vector.shape_cast %102 : vector<1x16x16x8xf32> to vector<16x16x8xf32>
      %104 = arith.truncf %103 : vector<16x16x8xf32> to vector<16x16x8xbf16>
      %c1_84 = arith.constant 1 : index
      %c1_85 = arith.constant 1 : index
      %c0_86 = arith.constant 0 : index
      %105 = vector.load %arg8[%c1_84, %c1_85, %c0_86] : memref<18x18x8xbf16, #tpu.memory_space<vmem>>, vector<16x16x8xbf16>
      tpu.vector_store %arg8[%c1_84, %c1_85, %c0_86], %104 {strides = array<i32>} : memref<18x18x8xbf16, #tpu.memory_space<vmem>>, vector<16x16x8xbf16>,
    } else {
    }
    %c16_i32 = arith.constant 16 : i32
    %3 = arith.muli %arg1, %c16_i32 : i32
    %cst = arith.constant 0.000000e+00 : f32
    %4 = vector.broadcast %cst : f32 to vector<256x8xf32>
    %c0_i32_1 = arith.constant 0 : i32
    %5 = arith.addi %3, %c0_i32_1 : i32
    %6 = arith.index_cast %5 : i32 to index
    %c0 = arith.constant 0 : index
    %c0_2 = arith.constant 0 : index
    %7 = vector.load %arg8[%6, %c0, %c0_2] : memref<18x18x8xbf16, #tpu.memory_space<vmem>>, vector<16x16x8xbf16>
    %8 = vector.shape_cast %7 : vector<16x16x8xbf16> to vector<256x8xbf16>
    %c0_3 = arith.constant 0 : index
    %c0_4 = arith.constant 0 : index
    %c0_5 = arith.constant 0 : index
    %9 = vector.load %arg3[%c0_3, %c0_4, %c0_5] : memref<9x8x8xbf16, #tpu.memory_space<vmem>>, vector<1x8x8xbf16>
    %10 = vector.shape_cast %9 : vector<1x8x8xbf16> to vector<8x8xbf16>
    %cst_6 = arith.constant dense<0.000000e+00> : vector<256x8xf32>
    %11 = tpu.matmul %8, %10, %cst_6 {dimension_numbers = #tpu.dot_dimension_numbers<[1], [0], [0], [1], [0, 0, 1, 1], [], []>} : vector<256x8xbf16>, vector<8x8xbf16>, vector<256x8xf32> -> vector<256x8xf32>
    %12 = arith.addf %4, %11 : vector<256x8xf32>
    %c0_i32_7 = arith.constant 0 : i32
    %13 = arith.addi %3, %c0_i32_7 : i32
    %14 = arith.index_cast %13 : i32 to index
    %c1 = arith.constant 1 : index
    %c0_8 = arith.constant 0 : index
    %15 = vector.load %arg8[%14, %c1, %c0_8] : memref<18x18x8xbf16, #tpu.memory_space<vmem>>, vector<16x16x8xbf16>
    %16 = vector.shape_cast %15 : vector<16x16x8xbf16> to vector<256x8xbf16>
    %c1_9 = arith.constant 1 : index
    %c0_10 = arith.constant 0 : index
    %c0_11 = arith.constant 0 : index
    %17 = vector.load %arg3[%c1_9, %c0_10, %c0_11] : memref<9x8x8xbf16, #tpu.memory_space<vmem>>, vector<1x8x8xbf16>
    %18 = vector.shape_cast %17 : vector<1x8x8xbf16> to vector<8x8xbf16>
    %cst_12 = arith.constant dense<0.000000e+00> : vector<256x8xf32>
    %19 = tpu.matmul %16, %18, %cst_12 {dimension_numbers = #tpu.dot_dimension_numbers<[1], [0], [0], [1], [0, 0, 1, 1], [], []>} : vector<256x8xbf16>, vector<8x8xbf16>, vector<256x8xf32> -> vector<256x8xf32>
    %20 = arith.addf %12, %19 : vector<256x8xf32>
    %c0_i32_13 = arith.constant 0 : i32
    %21 = arith.addi %3, %c0_i32_13 : i32
    %22 = arith.index_cast %21 : i32 to index
    %c2 = arith.constant 2 : index
    %c0_14 = arith.constant 0 : index
    %23 = vector.load %arg8[%22, %c2, %c0_14] : memref<18x18x8xbf16, #tpu.memory_space<vmem>>, vector<16x16x8xbf16>
    %24 = vector.shape_cast %23 : vector<16x16x8xbf16> to vector<256x8xbf16>
    %c2_15 = arith.constant 2 : index
    %c0_16 = arith.constant 0 : index
    %c0_17 = arith.constant 0 : index
    %25 = vector.load %arg3[%c2_15, %c0_16, %c0_17] : memref<9x8x8xbf16, #tpu.memory_space<vmem>>, vector<1x8x8xbf16>
    %26 = vector.shape_cast %25 : vector<1x8x8xbf16> to vector<8x8xbf16>
    %cst_18 = arith.constant dense<0.000000e+00> : vector<256x8xf32>
    %27 = tpu.matmul %24, %26, %cst_18 {dimension_numbers = #tpu.dot_dimension_numbers<[1], [0], [0], [1], [0, 0, 1, 1], [], []>} : vector<256x8xbf16>, vector<8x8xbf16>, vector<256x8xf32> -> vector<256x8xf32>
    %28 = arith.addf %20, %27 : vector<256x8xf32>
    %c1_i32 = arith.constant 1 : i32
    %29 = arith.addi %3, %c1_i32 : i32
    %30 = arith.index_cast %29 : i32 to index
    %c0_19 = arith.constant 0 : index
    %c0_20 = arith.constant 0 : index
    %31 = vector.load %arg8[%30, %c0_19, %c0_20] : memref<18x18x8xbf16, #tpu.memory_space<vmem>>, vector<16x16x8xbf16>
    %32 = vector.shape_cast %31 : vector<16x16x8xbf16> to vector<256x8xbf16>
    %c3 = arith.constant 3 : index
    %c0_21 = arith.constant 0 : index
    %c0_22 = arith.constant 0 : index
    %33 = vector.load %arg3[%c3, %c0_21, %c0_22] : memref<9x8x8xbf16, #tpu.memory_space<vmem>>, vector<1x8x8xbf16>
    %34 = vector.shape_cast %33 : vector<1x8x8xbf16> to vector<8x8xbf16>
    %cst_23 = arith.constant dense<0.000000e+00> : vector<256x8xf32>
    %35 = tpu.matmul %32, %34, %cst_23 {dimension_numbers = #tpu.dot_dimension_numbers<[1], [0], [0], [1], [0, 0, 1, 1], [], []>} : vector<256x8xbf16>, vector<8x8xbf16>, vector<256x8xf32> -> vector<256x8xf32>
    %36 = arith.addf %28, %35 : vector<256x8xf32>
    %c1_i32_24 = arith.constant 1 : i32
    %37 = arith.addi %3, %c1_i32_24 : i32
    %38 = arith.index_cast %37 : i32 to index
    %c1_25 = arith.constant 1 : index
    %c0_26 = arith.constant 0 : index
    %39 = vector.load %arg8[%38, %c1_25, %c0_26] : memref<18x18x8xbf16, #tpu.memory_space<vmem>>, vector<16x16x8xbf16>
    %40 = vector.shape_cast %39 : vector<16x16x8xbf16> to vector<256x8xbf16>
    %c4 = arith.constant 4 : index
    %c0_27 = arith.constant 0 : index
    %c0_28 = arith.constant 0 : index
    %41 = vector.load %arg3[%c4, %c0_27, %c0_28] : memref<9x8x8xbf16, #tpu.memory_space<vmem>>, vector<1x8x8xbf16>
    %42 = vector.shape_cast %41 : vector<1x8x8xbf16> to vector<8x8xbf16>
    %cst_29 = arith.constant dense<0.000000e+00> : vector<256x8xf32>
    %43 = tpu.matmul %40, %42, %cst_29 {dimension_numbers = #tpu.dot_dimension_numbers<[1], [0], [0], [1], [0, 0, 1, 1], [], []>} : vector<256x8xbf16>, vector<8x8xbf16>, vector<256x8xf32> -> vector<256x8xf32>
    %44 = arith.addf %36, %43 : vector<256x8xf32>
    %c1_i32_30 = arith.constant 1 : i32
    %45 = arith.addi %3, %c1_i32_30 : i32
    %46 = arith.index_cast %45 : i32 to index
    %c2_31 = arith.constant 2 : index
    %c0_32 = arith.constant 0 : index
    %47 = vector.load %arg8[%46, %c2_31, %c0_32] : memref<18x18x8xbf16, #tpu.memory_space<vmem>>, vector<16x16x8xbf16>
    %48 = vector.shape_cast %47 : vector<16x16x8xbf16> to vector<256x8xbf16>
    %c5 = arith.constant 5 : index
    %c0_33 = arith.constant 0 : index
    %c0_34 = arith.constant 0 : index
    %49 = vector.load %arg3[%c5, %c0_33, %c0_34] : memref<9x8x8xbf16, #tpu.memory_space<vmem>>, vector<1x8x8xbf16>
    %50 = vector.shape_cast %49 : vector<1x8x8xbf16> to vector<8x8xbf16>
    %cst_35 = arith.constant dense<0.000000e+00> : vector<256x8xf32>
    %51 = tpu.matmul %48, %50, %cst_35 {dimension_numbers = #tpu.dot_dimension_numbers<[1], [0], [0], [1], [0, 0, 1, 1], [], []>} : vector<256x8xbf16>, vector<8x8xbf16>, vector<256x8xf32> -> vector<256x8xf32>
    %52 = arith.addf %44, %51 : vector<256x8xf32>
    %c2_i32 = arith.constant 2 : i32
    %53 = arith.addi %3, %c2_i32 : i32
    %54 = arith.index_cast %53 : i32 to index
    %c0_36 = arith.constant 0 : index
    %c0_37 = arith.constant 0 : index
    %55 = vector.load %arg8[%54, %c0_36, %c0_37] : memref<18x18x8xbf16, #tpu.memory_space<vmem>>, vector<16x16x8xbf16>
    %56 = vector.shape_cast %55 : vector<16x16x8xbf16> to vector<256x8xbf16>
    %c6 = arith.constant 6 : index
    %c0_38 = arith.constant 0 : index
    %c0_39 = arith.constant 0 : index
    %57 = vector.load %arg3[%c6, %c0_38, %c0_39] : memref<9x8x8xbf16, #tpu.memory_space<vmem>>, vector<1x8x8xbf16>
    %58 = vector.shape_cast %57 : vector<1x8x8xbf16> to vector<8x8xbf16>
    %cst_40 = arith.constant dense<0.000000e+00> : vector<256x8xf32>
    %59 = tpu.matmul %56, %58, %cst_40 {dimension_numbers = #tpu.dot_dimension_numbers<[1], [0], [0], [1], [0, 0, 1, 1], [], []>} : vector<256x8xbf16>, vector<8x8xbf16>, vector<256x8xf32> -> vector<256x8xf32>
    %60 = arith.addf %52, %59 : vector<256x8xf32>
    %c2_i32_41 = arith.constant 2 : i32
    %61 = arith.addi %3, %c2_i32_41 : i32
    %62 = arith.index_cast %61 : i32 to index
    %c1_42 = arith.constant 1 : index
    %c0_43 = arith.constant 0 : index
    %63 = vector.load %arg8[%62, %c1_42, %c0_43] : memref<18x18x8xbf16, #tpu.memory_space<vmem>>, vector<16x16x8xbf16>
    %64 = vector.shape_cast %63 : vector<16x16x8xbf16> to vector<256x8xbf16>
    %c7 = arith.constant 7 : index
    %c0_44 = arith.constant 0 : index
    %c0_45 = arith.constant 0 : index
    %65 = vector.load %arg3[%c7, %c0_44, %c0_45] : memref<9x8x8xbf16, #tpu.memory_space<vmem>>, vector<1x8x8xbf16>
    %66 = vector.shape_cast %65 : vector<1x8x8xbf16> to vector<8x8xbf16>
    %cst_46 = arith.constant dense<0.000000e+00> : vector<256x8xf32>
    %67 = tpu.matmul %64, %66, %cst_46 {dimension_numbers = #tpu.dot_dimension_numbers<[1], [0], [0], [1], [0, 0, 1, 1], [], []>} : vector<256x8xbf16>, vector<8x8xbf16>, vector<256x8xf32> -> vector<256x8xf32>
    %68 = arith.addf %60, %67 : vector<256x8xf32>
    %c2_i32_47 = arith.constant 2 : i32
    %69 = arith.addi %3, %c2_i32_47 : i32
    %70 = arith.index_cast %69 : i32 to index
    %c2_48 = arith.constant 2 : index
    %c0_49 = arith.constant 0 : index
    %71 = vector.load %arg8[%70, %c2_48, %c0_49] : memref<18x18x8xbf16, #tpu.memory_space<vmem>>, vector<16x16x8xbf16>
    %72 = vector.shape_cast %71 : vector<16x16x8xbf16> to vector<256x8xbf16>
    %c8 = arith.constant 8 : index
    %c0_50 = arith.constant 0 : index
    %c0_51 = arith.constant 0 : index
    %73 = vector.load %arg3[%c8, %c0_50, %c0_51] : memref<9x8x8xbf16, #tpu.memory_space<vmem>>, vector<1x8x8xbf16>
    %74 = vector.shape_cast %73 : vector<1x8x8xbf16> to vector<8x8xbf16>
    %cst_52 = arith.constant dense<0.000000e+00> : vector<256x8xf32>
    %75 = tpu.matmul %72, %74, %cst_52 {dimension_numbers = #tpu.dot_dimension_numbers<[1], [0], [0], [1], [0, 0, 1, 1], [], []>} : vector<256x8xbf16>, vector<8x8xbf16>, vector<256x8xf32> -> vector<256x8xf32>
    %76 = arith.addf %68, %75 : vector<256x8xf32>
    %c0_53 = arith.constant 0 : index
    %c0_54 = arith.constant 0 : index
    %77 = vector.load %arg4[%c0_53, %c0_54] : memref<1x8xf32, #tpu.memory_space<vmem>>, vector<1x8xf32>
    %78 = vector.broadcast %77 : vector<1x8xf32> to vector<256x8xf32>
    %79 = arith.addf %76, %78 : vector<256x8xf32>
    %cst_55 = arith.constant 0.000000e+00 : f32
    %80 = vector.broadcast %cst_55 : f32 to vector<256x8xf32>
    %81 = arith.maximumf %79, %80 : vector<256x8xf32>
    %82 = vector.shape_cast %81 : vector<256x8xf32> to vector<16x16x8xf32>
    %c0_56 = arith.constant 0 : index
    %c0_57 = arith.constant 0 : index
    %c0_58 = arith.constant 0 : index
    %c0_59 = arith.constant 0 : index
    %83 = vector.load %arg5[%c0_56, %c0_57, %c0_58, %c0_59] : memref<1x16x16x8xf32, #tpu.memory_space<vmem>>, vector<1x16x16x8xf32>
    %84 = vector.shape_cast %83 : vector<1x16x16x8xf32> to vector<16x16x8xf32>
    %85 = vector.shape_cast %82 : vector<16x16x8xf32> to vector<1x16x16x8xf32>
    tpu.vector_store %arg5[%c0_56, %c0_57, %c0_58, %c0_59], %85 {strides = array<i32>} : memref<1x16x16x8xf32, #tpu.memory_space<vmem>>, vector<1x16x16x8xf32>,
    %c0_i32_60 = arith.constant 0 : i32
    %86 = arith.cmpi eq, %arg1, %c0_i32_60 : i32
    %87 = arith.extui %86 : i1 to i32
    %c0_i32_61 = arith.constant 0 : i32
    %88 = arith.cmpi ne, %87, %c0_i32_61 : i32
    scf.if %88 {
      %cst_76 = arith.constant 0.000000e+00 : f32
      %100 = vector.broadcast %cst_76 : f32 to vector<1x1x8xf32>
      %c0_77 = arith.constant 0 : index
      %c0_78 = arith.constant 0 : index
      %c0_79 = arith.constant 0 : index
      %101 = vector.load %arg6[%c0_77, %c0_78, %c0_79] : memref<1x1x8xf32, #tpu.memory_space<vmem>>, vector<1x1x8xf32>
      tpu.vector_store %arg6[%c0_77, %c0_78, %c0_79], %100 {strides = array<i32>} : memref<1x1x8xf32, #tpu.memory_space<vmem>>, vector<1x1x8xf32>,
      %cst_80 = arith.constant 0.000000e+00 : f32
      %102 = vector.broadcast %cst_80 : f32 to vector<1x1x8xf32>
      %c0_81 = arith.constant 0 : index
      %c0_82 = arith.constant 0 : index
      %c0_83 = arith.constant 0 : index
      %103 = vector.load %arg7[%c0_81, %c0_82, %c0_83] : memref<1x1x8xf32, #tpu.memory_space<vmem>>, vector<1x1x8xf32>
      tpu.vector_store %arg7[%c0_81, %c0_82, %c0_83], %102 {strides = array<i32>} : memref<1x1x8xf32, #tpu.memory_space<vmem>>, vector<1x1x8xf32>,
    } else {
    }
    %c0_62 = arith.constant 0 : index
    %c0_63 = arith.constant 0 : index
    %c0_64 = arith.constant 0 : index
    %89 = vector.load %arg6[%c0_62, %c0_63, %c0_64] : memref<1x1x8xf32, #tpu.memory_space<vmem>>, vector<1x1x8xf32>
    %cst_65 = arith.constant dense<0.000000e+00> : vector<8xf32>
    %90 = vector.multi_reduction <add>, %81, %cst_65 [0] : vector<256x8xf32> to vector<8xf32>
    %91 = vector.shape_cast %90 : vector<8xf32> to vector<1x1x8xf32>
    %92 = arith.addf %89, %91 : vector<1x1x8xf32>
    %c0_66 = arith.constant 0 : index
    %c0_67 = arith.constant 0 : index
    %c0_68 = arith.constant 0 : index
    %93 = vector.load %arg6[%c0_66, %c0_67, %c0_68] : memref<1x1x8xf32, #tpu.memory_space<vmem>>, vector<1x1x8xf32>
    tpu.vector_store %arg6[%c0_66, %c0_67, %c0_68], %92 {strides = array<i32>} : memref<1x1x8xf32, #tpu.memory_space<vmem>>, vector<1x1x8xf32>,
    %c0_69 = arith.constant 0 : index
    %c0_70 = arith.constant 0 : index
    %c0_71 = arith.constant 0 : index
    %94 = vector.load %arg7[%c0_69, %c0_70, %c0_71] : memref<1x1x8xf32, #tpu.memory_space<vmem>>, vector<1x1x8xf32>
    %95 = arith.mulf %81, %81 : vector<256x8xf32>
    %cst_72 = arith.constant dense<0.000000e+00> : vector<8xf32>
    %96 = vector.multi_reduction <add>, %95, %cst_72 [0] : vector<256x8xf32> to vector<8xf32>
    %97 = vector.shape_cast %96 : vector<8xf32> to vector<1x1x8xf32>
    %98 = arith.addf %94, %97 : vector<1x1x8xf32>
    %c0_73 = arith.constant 0 : index
    %c0_74 = arith.constant 0 : index
    %c0_75 = arith.constant 0 : index
    %99 = vector.load %arg7[%c0_73, %c0_74, %c0_75] : memref<1x1x8xf32, #tpu.memory_space<vmem>>, vector<1x1x8xf32>
    tpu.vector_store %arg7[%c0_73, %c0_74, %c0_75], %98 {strides = array<i32>} : memref<1x1x8xf32, #tpu.memory_space<vmem>>, vector<1x1x8xf32>,
    return
  }
  func.func @transform_0(%arg0: i32, %arg1: i32) -> (i32, i32, i32, i32) {
    %c0_i32 = arith.constant 0 : i32
    %c0_i32_0 = arith.constant 0 : i32
    %c0_i32_1 = arith.constant 0 : i32
    %c0_i32_2 = arith.constant 0 : i32
    return %arg0, %c0_i32, %c0_i32_0, %c0_i32_1 : i32, i32, i32, i32
  }
  func.func @transform_1(%arg0: i32, %arg1: i32) -> (i32, i32, i32) {
    %c0_i32 = arith.constant 0 : i32
    %c0_i32_0 = arith.constant 0 : i32
    %c0_i32_1 = arith.constant 0 : i32
    %c0_i32_2 = arith.constant 0 : i32
    return %c0_i32, %c0_i32_0, %c0_i32_1 : i32, i32, i32
  }
  func.func @transform_2(%arg0: i32, %arg1: i32) -> (i32, i32) {
    %c0_i32 = arith.constant 0 : i32
    %c0_i32_0 = arith.constant 0 : i32
    %c0_i32_1 = arith.constant 0 : i32
    return %c0_i32, %c0_i32_0 : i32, i32
  }
  func.func @transform_3(%arg0: i32, %arg1: i32) -> (i32, i32, i32, i32) {
    %c0_i32 = arith.constant 0 : i32
    %c0_i32_0 = arith.constant 0 : i32
    %c0_i32_1 = arith.constant 0 : i32
    return %arg0, %arg1, %c0_i32, %c0_i32_0 : i32, i32, i32, i32
  }
  func.func @transform_4(%arg0: i32, %arg1: i32) -> (i32, i32, i32) {
    %c0_i32 = arith.constant 0 : i32
    %c0_i32_0 = arith.constant 0 : i32
    %c0_i32_1 = arith.constant 0 : i32
    return %arg0, %c0_i32, %c0_i32_0 : i32, i32, i32
  }
  func.func @transform_5(%arg0: i32, %arg1: i32) -> (i32, i32, i32) {
    %c0_i32 = arith.constant 0 : i32
    %c0_i32_0 = arith.constant 0 : i32
    %c0_i32_1 = arith.constant 0 : i32
    return %arg0, %c0_i32, %c0_i32_0 : i32, i32, i32
  }
}

</mosaic_0001>

<bundles_post_ra>
// kernel: tpu_custom_call.1
= control target key start
LH: loop header
LB: loop body
LE: loop exit
PB: predicated region body
PF: predicated region fallthrough
CT: control target
= control target key end

     0   :  { %11 = vsyncpa [#allocation4], 0  ;;  %s10143_s0 = inlined_call_operand.vmem [shape: f32[6,16,16,8], index: 0, kind: input, shape index: {}]   ;;  %s10144_s1 = inlined_call_operand.vmem [shape: bf16[9,8,8], index: 1, kind: input, shape index: {}]   ;;  %s10145_s2 = inlined_call_operand.vmem [shape: f32[1,8], index: 2, kind: input, shape index: {}]   ;;  %s10146_s3 = inlined_call_operand.vmem [shape: f32[6,16,16,8], index: 3, kind: output, shape index: {0}]   ;;  %s10147_s4 = inlined_call_operand.hbm [shape: f32[6,1,8], index: 4, kind: output, shape index: {1}]   ;;  %s10148_s5 = inlined_call_operand.hbm [shape: f32[6,1,8], index: 5, kind: output, shape index: {2}]  }
   0x1   :  { %13 = vsyncpa [#allocation4 + $0x1], 0 }
   0x2   :  { %14 = vsyncpa [#allocation6], 0 }
   0x3   :  { %16 = vsyncpa [#allocation6 + $0x1], 0  ;;  %s7289_s18 = smov 0   ;;  %s7291_s19 = smov 0  }
   0x4   :  { %s7293_s20 = smov 0   ;;  %s7295_s21 = smov 0  }
   0x5   :  { %s7297_s22 = smov 0   ;;  %s7299_s23 = smov 0  }
   0x6 LB: > { %s5941_s24 = sadd.s32 4294967295, %s7253_s23   ;;  %s5942_s25 = sadd.s32 4294967294, %s7253_s23   ;;  %s7253_s23 = sphi %s7299_s23, %s22_s23   ;;  %s7249_s22 = sphi %s7297_s22, %s10345_s22   ;;  %s7245_s21 = sphi %s7295_s21, %s10344_s21   ;;  %s7241_s20 = sphi %s7293_s20, %s10343_s20   ;;  %s7237_s19 = sphi %s7291_s19, %s10342_s19   ;;  %s7233_s18 = sphi %s7289_s18, %s10341_s18  }
   0x7   : > { %s34_s26 = sadd.s32 1, %s7249_s22  ;;  %s137_s27 = sadd.s32 1, %s7241_s20 }
   0x8   : > { %p36_p0 = scmp.ge.s32.totalorder %s34_s26, 6  ;;  %p147_p1 = scmp.ne.s32.totalorder %s7241_s20, %s7237_s19 }
   0x9   : > { %p148_p2 = scmp.eq.s32.totalorder %s5941_s24, 5  ;;  %p153_p3 = scmp.ne.s32.totalorder %s7237_s19, %s7233_s18 }
   0xa   : > { %s10347_s26 = smov (%p36_p0, %s34_s26), 0  ;;  %p154_p5 = scmp.eq.s32.totalorder %s5942_s25, 5 }
   0xb   : > { %p7329_p4 = por %p148_p2, %p147_p1  ;;  %s134_s29 = ssub.s32 %s7249_s22, %s10347_s26 }
   0xc   : > { %p5945_p6 = scmp.ge.s32.totalorder %s7253_s23, 1  ;;  %p135_p7 = scmp.eq.s32.totalorder %s134_s29, 0 }
   0xd   : > { %p7336_p8 = por %p154_p5, %p153_p3  ;;  %p212_p9 = scmp.lt.s32.totalorder %s7253_s23, 7 }
   0xe   : > { %s7342_s6 = scalar_select %p135_p7, %s7241_s20, %s137_s27  }
   0xf   : > { %p213_p10 = pnand %p5945_p6, %p212_p9 }
  0x11   : > { %216 = sbr.rel (%p213_p10) target bundleno = 712 (0x2c8), region = 32 }
  0x16   : > { %v5982_v0 = vld [vmem:[%s10144_s1 + $0x4] sm:$0xf]  ;;  %vm1438_vm0 = vcmask 1043456   ;;  %vm274_vm1 = vcmask 60416   ;;  %vm277_vm2 = vcmask 57344   ;;  %v7255_v2 = vmov 0  }
  0x17   : > { %7018 = vmatprep.subr.msk.bf16.mxu0 %vm1438_vm0, %v5982_v0  ;;  %7019 = vmatprep.subr.msk.bf16.mxu1 %vm1438_vm0, %v5982_v0  ;;  %v1440_v1 = vsel %vm1438_vm0, %v5982_v0, 0  ;;  %275 = vst.msk [vmem:[#allocation2] sm:$0xf] %vm274_vm1, %v7255_v2  ;;  %276 = vst.msk [vmem:[#allocation2 + $0x4] sm:$0xf] %vm274_vm1, %v7255_v2  ;;  %p253_p11 = scmp.lt.s32.totalorder %s7245_s21, 5 }
  0x18   : > { %278 = vst.msk [vmem:[#allocation2 + $0x8] sm:$0x1] %vm277_vm2, %v7255_v2  ;;  %281 = vst.msk [vmem:[#allocation2 + $0x14] sm:$0x1] %vm277_vm2, %v7255_v2  ;;  %6711 = vmatpush3.bf16.msra.mxu0 %v1440_v1  ;;  %7017 = vmatpush3.bf16.msra.mxu1 %v1440_v1  ;;  %v935_v3 = vld [vmem:[%s10144_s1] sm:$0xf] }
  0x19   : > { %279 = vst.msk [vmem:[#allocation2 + $0xc] sm:$0xf] %vm274_vm1, %v7255_v2  ;;  %280 = vst.msk [vmem:[#allocation2 + $0x10] sm:$0xf] %vm274_vm1, %v7255_v2  ;;  %v7411_v4 = vld [vmem:[%s10144_s1 + $0x8] sm:$0xf]  ;;  %7020 = vmatprep.subr.msk.bf16.mxu1 %vm1438_vm0, %v935_v3 }
  0x1a   : > { %282 = vst.msk [vmem:[#allocation2 + $0x18] sm:$0xf] %vm274_vm1, %v7255_v2  ;;  %283 = vst.msk [vmem:[#allocation2 + $0x1c] sm:$0xf] %vm274_vm1, %v7255_v2  ;;  %s7414_s13 = scalar_select %p253_p11, %s7245_s21, 5  ;;  %7021 = vmatprep.subr.msk.bf16.mxu0 %vm1438_vm0, %v7411_v4  ;;  %vm1389_vm8 = vcmask 64512  }
  0x1b   : > { %284 = vst.msk [vmem:[#allocation2 + $0x20] sm:$0x1] %vm277_vm2, %v7255_v2  ;;  %287 = vst.msk [vmem:[#allocation2 + $0x2c] sm:$0x1] %vm277_vm2, %v7255_v2  ;;  %vm952_vm3 = vsmask.f32 3328 }
  0x1c   : > { %285 = vst.msk [vmem:[#allocation2 + $0x24] sm:$0xf] %vm274_vm1, %v7255_v2  ;;  %286 = vst.msk [vmem:[#allocation2 + $0x28] sm:$0xf] %vm274_vm1, %v7255_v2  ;;  %vm953_vm4 = vsmask.f32 7440 }
  0x1d   : > { %288 = vst.msk [vmem:[#allocation2 + $0x30] sm:$0xf] %vm274_vm1, %v7255_v2  ;;  %289 = vst.msk [vmem:[#allocation2 + $0x34] sm:$0xf] %vm274_vm1, %v7255_v2  ;;  %s6523_s14 = sshll.u32 %s7414_s13, 8  ;;  %v7433_v17 = vsel %vm1438_vm0, %v935_v3, 0 }
  0x1e   : > { %290 = vst.msk [vmem:[#allocation2 + $0x38] sm:$0x1] %vm277_vm2, %v7255_v2  ;;  %293 = vst.msk [vmem:[#allocation2 + $0x44] sm:$0x1] %vm277_vm2, %v7255_v2  ;;  %s7425_s17 = scalar_lea.vmem %s10143_s0, %s6523_s14  ;;  %vm458_vm5 = vsmask.f32 256  ;;  %s9796_s11 = scalar_lea.vmem %s10146_s3, %s6523_s14 }
  0x1f   : > { %291 = vst.msk [vmem:[#allocation2 + $0x3c] sm:$0xf] %vm274_vm1, %v7255_v2  ;;  %292 = vst.msk [vmem:[#allocation2 + $0x40] sm:$0xf] %vm274_vm1, %v7255_v2  ;;  %vm459_vm6 = vsmask.f32 4368 }
  0x20   : > { %294 = vst.msk [vmem:[#allocation2 + $0x48] sm:$0xf] %vm274_vm1, %v7255_v2  ;;  %295 = vst.msk [vmem:[#allocation2 + $0x4c] sm:$0xf] %vm274_vm1, %v7255_v2  ;;  %vm783_vm7 = vsmask.f32 7938 }
  0x21   : > { %296 = vst.msk [vmem:[#allocation2 + $0x50] sm:$0x1] %vm277_vm2, %v7255_v2  ;;  %299 = vst.msk [vmem:[#allocation2 + $0x5c] sm:$0x1] %vm277_vm2, %v7255_v2  ;;  %v903_v5 = vld [vmem:[#allocation2] sm:$0xf] }
  0x22   : > { %297 = vst.msk [vmem:[#allocation2 + $0x54] sm:$0xf] %vm274_vm1, %v7255_v2  ;;  %298 = vst.msk [vmem:[#allocation2 + $0x58] sm:$0xf] %vm274_vm1, %v7255_v2  ;;  %v904_v6 = vld [vmem:[#allocation2 + $0x4] sm:$0xf] }
  0x23   : > { %300 = vst.msk [vmem:[#allocation2 + $0x60] sm:$0xf] %vm274_vm1, %v7255_v2  ;;  %301 = vst.msk [vmem:[#allocation2 + $0x64] sm:$0xf] %vm274_vm1, %v7255_v2  ;;  %v7427_v7 = vld [vmem:[#allocation2 + $0x8] sm:$0x1] }
  0x24   : > { %302 = vst.msk [vmem:[#allocation2 + $0x68] sm:$0x1] %vm277_vm2, %v7255_v2  ;;  %305 = vst.msk [vmem:[#allocation2 + $0x74] sm:$0x1] %vm277_vm2, %v7255_v2  ;;  %v956_v8 = vshrl.u32 %v903_v5, 16  ;;  %v959_v9 = vshll.u32 %v903_v5, 16 }
  0x25   : > { %303 = vst.msk [vmem:[#allocation2 + $0x6c] sm:$0xf] %vm274_vm1, %v7255_v2  ;;  %304 = vst.msk [vmem:[#allocation2 + $0x70] sm:$0xf] %vm274_vm1, %v7255_v2  ;;  %v965_v10 = vshll.u32 %v904_v6, 16  ;;  %v969_v11 = vshrl.u32 %v904_v6, 16 }
  0x26   : > { %306 = vst.msk [vmem:[#allocation2 + $0x78] sm:$0xf] %vm274_vm1, %v7255_v2  ;;  %307 = vst.msk [vmem:[#allocation2 + $0x7c] sm:$0xf] %vm274_vm1, %v7255_v2  ;;  %v330_v12 = vld [vmem:[%s7425_s17] sm:$0xff]  ;;  %v331_v13 = vld [vmem:[%s7425_s17 + $0x8] sm:$0xff] }
  0x27   : > { %308 = vst.msk [vmem:[#allocation2 + $0x80] sm:$0x1] %vm277_vm2, %v7255_v2  ;;  %311 = vst.msk [vmem:[#allocation2 + $0x8c] sm:$0x1] %vm277_vm2, %v7255_v2  ;;  %v975_v14 = vshll.u32 %v7427_v7, 16  ;;  %v6525_v15 = vpack.c.bf16 %v330_v12, %v330_v12  ;;  %v6526_v16 = vpack.c.bf16 %v331_v13, %v331_v13  ;;  %v958_v18 = vrot.slane %v956_v8, 4 }
  0x28   : > { %309 = vst.msk [vmem:[#allocation2 + $0x84] sm:$0xf] %vm274_vm1, %v7255_v2  ;;  %310 = vst.msk [vmem:[#allocation2 + $0x88] sm:$0xf] %vm274_vm1, %v7255_v2  ;;  %v961_v19 = vrot.slane %v959_v9, 5  ;;  %v967_v20 = vrot.slane %v965_v10, 5 }
  0x29   : > { %312 = vst.msk [vmem:[#allocation2 + $0x90] sm:$0xf] %vm274_vm1, %v7255_v2  ;;  %313 = vst.msk [vmem:[#allocation2 + $0x94] sm:$0xf] %vm274_vm1, %v7255_v2  ;;  %v971_v21 = vrot.slane %v969_v11, 4  ;;  %v344_v22 = vld [vmem:[%s7425_s17 + $0x70] sm:$0xff] }
  0x2a   : > { %314 = vst.msk [vmem:[#allocation2 + $0x98] sm:$0x1] %vm277_vm2, %v7255_v2  ;;  %317 = vst.msk [vmem:[#allocation2 + $0xa4] sm:$0x1] %vm277_vm2, %v7255_v2  ;;  %v345_v23 = vld [vmem:[%s7425_s17 + $0x78] sm:$0xff]  ;;  %v977_v25 = vrot.slane %v975_v14, 5  ;;  %v962_v29 = vor.u32 %v961_v19, %v958_v18  ;;  %v6539_v33 = vpack.c.bf16 %v344_v22, %v344_v22 }
  0x2b   : > { %315 = vst.msk [vmem:[#allocation2 + $0x9c] sm:$0xf] %vm274_vm1, %v7255_v2  ;;  %316 = vst.msk [vmem:[#allocation2 + $0xa0] sm:$0xf] %vm274_vm1, %v7255_v2  ;;  %v462_v26 = vshrl.u32 %v6525_v15, 16  ;;  %v465_v27 = vshll.u32 %v6525_v15, 16  ;;  %v972_v30 = vor.u32 %v971_v21, %v967_v20  ;;  %v6540_v39 = vpack.c.bf16 %v345_v23, %v345_v23 }
  0x2c   : > { %318 = vst.msk [vmem:[#allocation2 + $0xa8] sm:$0xf] %vm274_vm1, %v7255_v2  ;;  %319 = vst.msk [vmem:[#allocation2 + $0xac] sm:$0xf] %vm274_vm1, %v7255_v2  ;;  %v470_v28 = vshrl.u32 %v6526_v16, 16  ;;  %v473_v32 = vshll.u32 %v6526_v16, 16 }
  0x2d   : > { %320 = vst.msk [vmem:[#allocation2 + $0xb0] sm:$0x1] %vm277_vm2, %v7255_v2  ;;  %323 = vst.msk [vmem:[#allocation2 + $0xbc] sm:$0x1] %vm277_vm2, %v7255_v2  ;;  %v346_v34 = vld [vmem:[%s7425_s17 + $0x80] sm:$0xff]  ;;  %v464_v35 = vrot.slane %v462_v26, 7 }
  0x2e   : > { %321 = vst.msk [vmem:[#allocation2 + $0xb4] sm:$0xf] %vm274_vm1, %v7255_v2  ;;  %322 = vst.msk [vmem:[#allocation2 + $0xb8] sm:$0xf] %vm274_vm1, %v7255_v2  ;;  %v472_v36 = vrot.slane %v470_v28, 7  ;;  %v6541_v40 = vpack.c.bf16 %v346_v34, %v346_v34  ;;  %v963_v41 = vrot.slane %v962_v29, 4 }
  0x2f   : > { %324 = vst.msk [vmem:[#allocation2 + $0xc0] sm:$0xf] %vm274_vm1, %v7255_v2  ;;  %325 = vst.msk [vmem:[#allocation2 + $0xc4] sm:$0xf] %vm274_vm1, %v7255_v2  ;;  %v785_v38 = vld [vmem:[#allocation2 + $0xc] sm:$0xf]  ;;  %v467_v47 = vor.u32 %v465_v27, %v464_v35 }
  0x30   : > { %326 = vst.msk [vmem:[#allocation2 + $0xc8] sm:$0x1] %vm277_vm2, %v7255_v2  ;;  %329 = vst.msk [vmem:[#allocation2 + $0xd4] sm:$0x1] %vm277_vm2, %v7255_v2  ;;  %v973_v42 = vrot.slane %v972_v30, 4  ;;  %v581_v45 = vshrl.u32 %v6539_v33, 16  ;;  %v475_v49 = vor.u32 %v473_v32, %v472_v36 }
  0x31   : > { %327 = vst.msk [vmem:[#allocation2 + $0xcc] sm:$0xf] %vm274_vm1, %v7255_v2  ;;  %328 = vst.msk [vmem:[#allocation2 + $0xd0] sm:$0xf] %vm274_vm1, %v7255_v2  ;;  %v791_v44 = vld [vmem:[#allocation2 + $0x14] sm:$0x1] }
  0x32   : > { %vm7439_vm9 = vmor %vm952_vm3, %vm953_vm4  ;;  %v584_v46 = vshll.u32 %v6539_v33, 16  ;;  %v468_v48 = vrot.slane %v464_v35, 4  ;;  %v477_v50 = vrot.slane %v472_v36, 4  ;;  %v583_v53 = vrot.slane %v581_v45, 7  ;;  %v347_v55 = vld [vmem:[%s7425_s17 + $0x88] sm:$0xff]  ;;  %v332_v56 = vld [vmem:[%s7425_s17 + $0x10] sm:$0xff] }
  0x33   : > { %vm7445_vm10 = vmor %vm458_vm5, %vm459_vm6  ;;  %v968_v51 = vsel %vm7439_vm9, %v963_v41, %v967_v20  ;;  %v978_v52 = vsel %vm7439_vm9, %v973_v42, %v977_v25  ;;  %v589_v54 = vshrl.u32 %v6540_v39, 16  ;;  %v836_v61 = vld [vmem:[#allocation2 + $0x60] sm:$0xf]  ;;  %v333_v62 = vld [vmem:[%s7425_s17 + $0x18] sm:$0xff]  ;;  %v592_v2 = vshll.u32 %v6540_v39, 16  ;;  %s6519_s13 = sshll.u32 %s7245_s21, 4 }
  0x34   : > { %vm7452_vm11 = vmand %vm274_vm1, %vm783_vm7  ;;  %v5983_v57 = vcombine.low %v968_v51, %v978_v52  ;;  %v476_v58 = vsel %vm7445_vm10, %v468_v48, %v475_v49  ;;  %v586_v63 = vor.u32 %v584_v46, %v583_v53  ;;  %v587_v0 = vrot.slane %v583_v53, 4  ;;  %v840_v3 = vld [vmem:[#allocation2 + $0x68] sm:$0x1]  ;;  %v843_v21 = vld [vmem:[#allocation2 + $0x6c] sm:$0xf]  ;;  %s10064_s24 = scalar_lea.hbm %s10147_s4, %s6519_s13  ;;  %s10073_s7 = scalar_lea.hbm %s10148_s5, %s6519_s13 }
  0x35   : > { %vm7458_vm12 = vmand %vm277_vm2, %vm458_vm5  ;;  %v786_v59 = vsel %vm7452_vm11, %v467_v47, %v785_v38  ;;  %788 = vst.msk [vmem:[#allocation2 + $0x10] sm:$0xf] %vm274_vm1, %v476_v58  ;;  %v591_v1 = vrot.slane %v589_v54, 7  ;;  %v6542_v5 = vpack.c.bf16 %v347_v55, %v347_v55  ;;  %v598_v6 = vshrl.u32 %v6541_v40, 16  ;;  %v334_v25 = vld [vmem:[%s7425_s17 + $0x20] sm:$0xff]  ;;  %v335_v26 = vld [vmem:[%s7425_s17 + $0x28] sm:$0xff] }
  0x36   : > { %v792_v60 = vsel %vm7458_vm12, %v477_v50, %v791_v44  ;;  %787 = vst [vmem:[#allocation2 + $0xc] sm:$0xf] %v786_v59  ;;  %6712 = vmatprep.mubr.msk.bf16.mxu0 %vm1389_vm8, %v5983_v57  ;;  %v601_v8 = vshll.u32 %v6541_v40, 16  ;;  %v6527_v9 = vpack.c.bf16 %v332_v56, %v332_v56  ;;  %v837_v12 = vsel %vm7452_vm11, %v586_v63, %v836_v61  ;;  %v348_v36 = vld [vmem:[%s7425_s17 + $0x90] sm:$0xff]  ;;  %s7257_s10 = smov [#allocation3]  }
  0x37   : > { %793 = vst [vmem:[#allocation2 + $0x14] sm:$0x1] %v792_v60  ;;  %v594_v10 = vor.u32 %v592_v2, %v591_v1  ;;  %v596_v11 = vrot.slane %v591_v1, 4  ;;  %v7479_v13 = vpack.c.bf16 %v333_v62, %v333_v62  ;;  %838 = vst [vmem:[#allocation2 + $0x60] sm:$0xf] %v837_v12  ;;  %v600_v14 = vrot.slane %v598_v6, 7 }
  0x38   : > { %v606_v15 = vshrl.u32 %v6542_v5, 16  ;;  %v609_v16 = vshll.u32 %v6542_v5, 16  ;;  %v479_v18 = vshrl.u32 %v6527_v9, 16  ;;  %v482_v22 = vshll.u32 %v6527_v9, 16  ;;  %v847_v62 = vld [vmem:[#allocation2 + $0x74] sm:$0x1] }
  0x39   : > { %v595_v19 = vsel %vm7445_vm10, %v587_v0, %v594_v10  ;;  %v841_v20 = vsel %vm7458_vm12, %v596_v11, %v840_v3  ;;  %v487_v23 = vshrl.u32 %v7479_v13, 16  ;;  %v603_v27 = vor.u32 %v601_v8, %v600_v14 }
  0x3a   : > { %839 = vst.msk [vmem:[#allocation2 + $0x64] sm:$0xf] %vm274_vm1, %v595_v19  ;;  %842 = vst [vmem:[#allocation2 + $0x68] sm:$0x1] %v841_v20  ;;  %v604_v28 = vrot.slane %v600_v14, 4  ;;  %v608_v29 = vrot.slane %v606_v15, 7  ;;  %v7504_v44 = vpack.c.bf16 %v334_v25, %v334_v25  ;;  %v7506_v45 = vpack.c.bf16 %v335_v26, %v335_v26 }
  0x3b   : > { %v7489_v30 = vrot.slane %v479_v18, 7  ;;  %v1951_v32 = vrot.slane %v7427_v7, 5  ;;  %v7494_v33 = vsel %vm1438_vm0, %v7411_v4, 0  ;;  %v7496_v34 = vrot.slane %v487_v23, 7 }
  0x3c   : > { %v490_v35 = vshll.u32 %v7479_v13, 16  ;;  %v7500_v39 = vld [vmem:[#allocation2 + $0x10] sm:$0xf]  ;;  %v611_v41 = vor.u32 %v609_v16, %v608_v29  ;;  %v844_v42 = vsel %vm7452_vm11, %v603_v27, %v843_v21  ;;  %v7513_v52 = vpack.c.bf16 %v348_v36, %v348_v36 }
  0x3d   : > { %v905_v38 = vld [vmem:[#allocation2 + $0xc] sm:$0xf]  ;;  %v989_v47 = vshll.u32 %v7500_v39, 16  ;;  %v993_v48 = vshrl.u32 %v7500_v39, 16  ;;  %845 = vst [vmem:[#allocation2 + $0x6c] sm:$0xf] %v844_v42  ;;  %v484_v51 = vor.u32 %v482_v22, %v7489_v30 }
  0x3e   : > { %v937_v40 = vld [vmem:[#allocation2 + $0x14] sm:$0x1]  ;;  %v980_v46 = vshrl.u32 %v905_v38, 16  ;;  %v983_v4 = vshll.u32 %v905_v38, 16  ;;  %v612_v50 = vsel %vm7445_vm10, %v604_v28, %v611_v41  ;;  %v919_v57 = vld [vmem:[#allocation2 + $0x60] sm:$0xf]  ;;  %v492_v14 = vor.u32 %v490_v35, %v7496_v34 }
  0x3f   : > { %v999_v49 = vshll.u32 %v937_v40, 16  ;;  %v991_v55 = vrot.slane %v989_v47, 5  ;;  %v995_v56 = vrot.slane %v993_v48, 4  ;;  %846 = vst.msk [vmem:[#allocation2 + $0x70] sm:$0xf] %vm274_vm1, %v612_v50  ;;  %v1955_v58 = vrot.slane %v7500_v39, 5 }
  0x40   : > { %v982_v53 = vrot.slane %v980_v46, 4  ;;  %v985_v54 = vrot.slane %v983_v4, 5  ;;  %v1148_v59 = vshrl.u32 %v919_v57, 16  ;;  %v1151_v60 = vshll.u32 %v919_v57, 16  ;;  %v794_v35 = vld [vmem:[#allocation2 + $0x18] sm:$0xf] }
  0x41   : > { %v613_v61 = vrot.slane %v608_v29, 4  ;;  %v996_v0 = vor.u32 %v995_v56, %v991_v55  ;;  %v1001_v1 = vrot.slane %v999_v49, 5  ;;  %v920_v2 = vld [vmem:[#allocation2 + $0x64] sm:$0xf]  ;;  %v944_v3 = vld [vmem:[#allocation2 + $0x68] sm:$0x1] }
  0x42   : > { %v986_v63 = vor.u32 %v985_v54, %v982_v53  ;;  %v485_v5 = vrot.slane %v7489_v30, 4  ;;  %v1150_v6 = vrot.slane %v1148_v59, 4  ;;  %v1153_v8 = vrot.slane %v1151_v60, 5  ;;  %v798_v42 = vld [vmem:[#allocation2 + $0x20] sm:$0x1] }
  0x43   : > { %v1157_v9 = vshll.u32 %v920_v2, 16  ;;  %v1161_v10 = vshrl.u32 %v920_v2, 16  ;;  %v997_v12 = vrot.slane %v996_v0, 4  ;;  %v1167_v13 = vshll.u32 %v944_v3, 16 }
  0x44   : > { %v987_v11 = vrot.slane %v986_v63, 4  ;;  %v1154_v15 = vor.u32 %v1153_v8, %v1150_v6  ;;  %v848_v19 = vsel %vm7458_vm12, %v613_v61, %v847_v62  ;;  %v921_v20 = vld [vmem:[#allocation2 + $0x6c] sm:$0xf]  ;;  %v493_v41 = vsel %vm7445_vm10, %v485_v5, %v492_v14 }
  0x45   : > { %v1159_v16 = vrot.slane %v1157_v9, 5  ;;  %v1163_v18 = vrot.slane %v1161_v10, 4  ;;  %v1002_v22 = vsel %vm7439_vm9, %v997_v12, %v1001_v1  ;;  %v1169_v23 = vrot.slane %v1167_v13, 5  ;;  %849 = vst [vmem:[#allocation2 + $0x74] sm:$0x1] %v848_v19 }
  0x46   : > { %v992_v21 = vsel %vm7439_vm9, %v987_v11, %v991_v55  ;;  %v1172_v25 = vshrl.u32 %v921_v20, 16  ;;  %v1155_v27 = vrot.slane %v1154_v15, 4  ;;  %v922_v29 = vld [vmem:[#allocation2 + $0x70] sm:$0xf]  ;;  %v1175_v30 = vshll.u32 %v921_v20, 16  ;;  %v349_v55 = vld [vmem:[%s7425_s17 + $0x98] sm:$0xff] }
  0x47   : > { %v5984_v26 = vcombine.low %v992_v21, %v1002_v22  ;;  %v1164_v28 = vor.u32 %v1163_v18, %v1159_v16  ;;  %v1181_v38 = vshll.u32 %v922_v29, 16  ;;  %v1185_v40 = vshrl.u32 %v922_v29, 16  ;;  %797 = vst.msk [vmem:[#allocation2 + $0x1c] sm:$0xf] %vm274_vm1, %v493_v41  ;;  %v805_v11 = vld [vmem:[#allocation2 + $0x2c] sm:$0x1] }
  0x48   : > { %v1174_v36 = vrot.slane %v1172_v25, 4  ;;  %v1160_v46 = vsel %vm7439_vm9, %v1155_v27, %v1159_v16  ;;  %v1177_v47 = vrot.slane %v1175_v30, 5  ;;  %v494_v48 = vrot.slane %v7496_v34, 4  ;;  %v350_v25 = vld [vmem:[%s7425_s17 + $0xa0] sm:$0xff] }
  0x49   : > { %6713 = vmatmul.mubr.msk.bf16.vlgmr.msra.gmra.mxu0 %vm1389_vm8, %v5984_v26  ;;  %v1165_v4 = vrot.slane %v1164_v28, 4  ;;  %v1183_v49 = vrot.slane %v1181_v38, 5  ;;  %v1187_v50 = vrot.slane %v1185_v40, 4  ;;  %v795_v53 = vsel %vm7452_vm11, %v484_v51, %v794_v35  ;;  %v801_v51 = vld [vmem:[#allocation2 + $0x24] sm:$0xf] }
  0x4a   : > { %6779 = vmatpush3.bf16.msra.mxu0 %v7494_v33  ;;  %v496_v54 = vshrl.u32 %v7504_v44, 16  ;;  %v1178_v57 = vor.u32 %v1177_v47, %v1174_v36  ;;  %796 = vst [vmem:[#allocation2 + $0x18] sm:$0xf] %v795_v53  ;;  %v799_v34 = vsel %vm7458_vm12, %v494_v48, %v798_v42  ;;  %v499_v59 = vshll.u32 %v7504_v44, 16  ;;  %v854_v35 = vld [vmem:[#allocation2 + $0x80] sm:$0x1] }
  0x4b   : > { %v1170_v56 = vsel %vm7439_vm9, %v1165_v4, %v1169_v23  ;;  %v1188_v61 = vor.u32 %v1187_v50, %v1183_v49  ;;  %800 = vst [vmem:[#allocation2 + $0x20] sm:$0x1] %v799_v34  ;;  %v504_v62 = vshrl.u32 %v7506_v45, 16  ;;  %v507_v1 = vshll.u32 %v7506_v45, 16  ;;  %v7552_v45 = vld [vmem:[%s10144_s1 + $0x10] sm:$0xf] }
  0x4c   : > { %v5991_v60 = vcombine.low %v1160_v46, %v1170_v56  ;;  %v498_v33 = vrot.slane %v496_v54, 7  ;;  %v945_v63 = vld [vmem:[#allocation2 + $0x74] sm:$0x1]  ;;  %v1179_v0 = vrot.slane %v1178_v57, 4  ;;  %v6544_v2 = vpack.c.bf16 %v349_v55, %v349_v55  ;;  %7023 = vmatprep.subr.msk.bf16.mxu0 %vm1438_vm0, %v7552_v45  ;;  %v6128_v36 = vld [vmem:[%s10144_s1 + $0xc] sm:$0xf] }
  0x4d   : > { %v615_v3 = vshrl.u32 %v7513_v52, 16  ;;  %v1189_v5 = vrot.slane %v1188_v61, 4  ;;  %v1191_v6 = vshll.u32 %v945_v63, 16  ;;  %v506_v10 = vrot.slane %v504_v62, 7  ;;  %v351_v4 = vld [vmem:[%s7425_s17 + $0xa8] sm:$0xff]  ;;  %v336_v57 = vld [vmem:[%s7425_s17 + $0x30] sm:$0xff] }
  0x4e   : > { %6728 = vmatprep.mubr.msk.bf16.mxu1 %vm1389_vm8, %v5991_v60  ;;  %v501_v8 = vor.u32 %v499_v59, %v498_v33  ;;  %v502_v44 = vrot.slane %v498_v33, 4  ;;  %v1184_v9 = vsel %vm7439_vm9, %v1179_v0, %v1183_v49  ;;  %v618_v13 = vshll.u32 %v7513_v52, 16  ;;  %v908_v15 = vld [vmem:[#allocation2 + $0x1c] sm:$0xf]  ;;  %v850_v52 = vld [vmem:[#allocation2 + $0x78] sm:$0xf] }
  0x4f   : > { %v617_v12 = vrot.slane %v615_v3, 7  ;;  %v1193_v14 = vrot.slane %v1191_v6, 5  ;;  %v623_v18 = vshrl.u32 %v6544_v2, 16  ;;  %v626_v19 = vshll.u32 %v6544_v2, 16  ;;  %v337_v33 = vld [vmem:[%s7425_s17 + $0x38] sm:$0xff] }
  0x50   : > { %v802_v16 = vsel %vm7452_vm11, %v501_v8, %v801_v51  ;;  %v1013_v20 = vshll.u32 %v908_v15, 16  ;;  %v1017_v21 = vshrl.u32 %v908_v15, 16  ;;  %v509_v22 = vor.u32 %v507_v1, %v506_v10 }
  0x51   : > { %v511_v23 = vrot.slane %v506_v10, 4  ;;  %803 = vst [vmem:[#allocation2 + $0x24] sm:$0xf] %v802_v16  ;;  %v1194_v26 = vsel %vm7439_vm9, %v1189_v5, %v1193_v14  ;;  %v907_v27 = vld [vmem:[#allocation2 + $0x18] sm:$0xf]  ;;  %v620_v28 = vor.u32 %v618_v13, %v617_v12  ;;  %v621_v29 = vrot.slane %v617_v12, 4 }
  0x52   : > { %v625_v30 = vrot.slane %v623_v18, 7  ;;  %v5992_v38 = vcombine.low %v1184_v9, %v1194_v26  ;;  %v7564_v40 = vld [vmem:[#allocation2 + $0x20] sm:$0x1]  ;;  %v1004_v41 = vshrl.u32 %v907_v27, 16  ;;  %v1007_v42 = vshll.u32 %v907_v27, 16 }
  0x53   : > { %v1015_v46 = vrot.slane %v1013_v20, 5  ;;  %v1019_v47 = vrot.slane %v1017_v21, 4  ;;  %v1023_v48 = vshll.u32 %v7564_v40, 16  ;;  %v510_v49 = vsel %vm7445_vm10, %v502_v44, %v509_v22  ;;  %v857_v13 = vld [vmem:[#allocation2 + $0x84] sm:$0xf] }
  0x54   : > { %v806_v50 = vsel %vm7458_vm12, %v511_v23, %v805_v11  ;;  %6729 = vmatmul.mubr.msk.bf16.vlgmr.msra.gmra.mxu1 %vm1389_vm8, %v5992_v38  ;;  %v1006_v53 = vrot.slane %v1004_v41, 4  ;;  %v1009_v54 = vrot.slane %v1007_v42, 5  ;;  %804 = vst.msk [vmem:[#allocation2 + $0x28] sm:$0xf] %vm274_vm1, %v510_v49  ;;  %v628_v55 = vor.u32 %v626_v19, %v625_v30  ;;  %v861_v41 = vld [vmem:[#allocation2 + $0x8c] sm:$0x1] }
  0x55   : > { %807 = vst [vmem:[#allocation2 + $0x2c] sm:$0x1] %v806_v50  ;;  %v630_v56 = vrot.slane %v625_v30, 4  ;;  %6745 = vmatpush3.bf16.msra.mxu1 %v7433_v17  ;;  %v1020_v34 = vor.u32 %v1019_v47, %v1015_v46  ;;  %v1025_v59 = vrot.slane %v1023_v48, 5  ;;  %v851_v60 = vsel %vm7452_vm11, %v620_v28, %v850_v52 }
  0x56   : > { %v6545_v61 = vpack.c.bf16 %v350_v25, %v350_v25  ;;  %v1010_v62 = vor.u32 %v1009_v54, %v1006_v53  ;;  %v629_v51 = vsel %vm7445_vm10, %v621_v29, %v628_v55  ;;  %852 = vst [vmem:[#allocation2 + $0x78] sm:$0xf] %v851_v60  ;;  %v6546_v0 = vpack.c.bf16 %v351_v4, %v351_v4 }
  0x57   : > { %v855_v63 = vsel %vm7458_vm12, %v630_v56, %v854_v35  ;;  %7022 = vmatprep.subr.msk.bf16.mxu1 %vm1438_vm0, %v6128_v36  ;;  %v1021_v1 = vrot.slane %v1020_v34, 4  ;;  %853 = vst.msk [vmem:[#allocation2 + $0x7c] sm:$0xf] %vm274_vm1, %v629_v51  ;;  %v7585_v5 = vpack.c.bf16 %v336_v57, %v336_v57  ;;  %v7589_v14 = vpack.c.bf16 %v337_v33, %v337_v33 }
  0x58   : > { %v909_v17 = vld [vmem:[#allocation2 + $0x24] sm:$0xf]  ;;  %856 = vst [vmem:[#allocation2 + $0x80] sm:$0x1] %v855_v63  ;;  %v632_v2 = vshrl.u32 %v6545_v61, 16  ;;  %v635_v3 = vshll.u32 %v6545_v61, 16 }
  0x59   : > { %v1011_v6 = vrot.slane %v1010_v62, 4  ;;  %v1028_v8 = vshrl.u32 %v909_v17, 16  ;;  %v1031_v44 = vshll.u32 %v909_v17, 16  ;;  %v640_v9 = vshrl.u32 %v6546_v0, 16  ;;  %v338_v61 = vld [vmem:[%s7425_s17 + $0x40] sm:$0xff] }
  0x5a   : > { %v1026_v10 = vsel %vm7439_vm9, %v1021_v1, %v1025_v59  ;;  %v634_v11 = vrot.slane %v632_v2, 7  ;;  %v643_v12 = vshll.u32 %v6546_v0, 16  ;;  %v513_v25 = vshrl.u32 %v7585_v5, 16  ;;  %v808_v0 = vld [vmem:[#allocation2 + $0x30] sm:$0xf] }
  0x5b   : > { %v1016_v15 = vsel %vm7439_vm9, %v1011_v6, %v1015_v46  ;;  %v1030_v16 = vrot.slane %v1028_v8, 4  ;;  %v1033_v18 = vrot.slane %v1031_v44, 5  ;;  %v642_v19 = vrot.slane %v640_v9, 7  ;;  %v7593_v21 = vld [vmem:[#allocation2 + $0x28] sm:$0xf] }
  0x5c   : > { %v5985_v20 = vcombine.low %v1016_v15, %v1026_v10  ;;  %v7595_v22 = vld [vmem:[#allocation2 + $0x2c] sm:$0x1]  ;;  %v637_v23 = vor.u32 %v635_v3, %v634_v11  ;;  %v638_v52 = vrot.slane %v634_v11, 4  ;;  %v1037_v27 = vshll.u32 %v7593_v21, 16 }
  0x5d   : > { %v1034_v26 = vor.u32 %v1033_v18, %v1030_v16  ;;  %v1041_v28 = vshrl.u32 %v7593_v21, 16  ;;  %v1047_v29 = vshll.u32 %v7595_v22, 16  ;;  %v923_v30 = vld [vmem:[#allocation2 + $0x78] sm:$0xf]  ;;  %v645_v35 = vor.u32 %v643_v12, %v642_v19  ;;  %v339_v6 = vld [vmem:[%s7425_s17 + $0x48] sm:$0xff] }
  0x5e   : > { %6716 = vmatprep.mubr.msk.bf16.mxu0 %vm1389_vm8, %v5985_v20  ;;  %v647_v36 = vrot.slane %v642_v19, 4  ;;  %v858_v38 = vsel %vm7452_vm11, %v637_v23, %v857_v13  ;;  %v7604_v42 = vrot.slane %v513_v25, 7  ;;  %v1039_v4 = vrot.slane %v1037_v27, 5  ;;  %v924_v49 = vld [vmem:[#allocation2 + $0x7c] sm:$0xf] }
  0x5f   : > { %v1035_v46 = vrot.slane %v1034_v26, 4  ;;  %v1043_v47 = vrot.slane %v1041_v28, 4  ;;  %v1049_v48 = vrot.slane %v1047_v29, 5  ;;  %859 = vst [vmem:[#allocation2 + $0x84] sm:$0xf] %v858_v38  ;;  %v1196_v53 = vshrl.u32 %v923_v30, 16 }
  0x60   : > { %v946_v50 = vld [vmem:[#allocation2 + $0x80] sm:$0x1]  ;;  %v1199_v54 = vshll.u32 %v923_v30, 16  ;;  %v1205_v55 = vshll.u32 %v924_v49, 16  ;;  %v1209_v56 = vshrl.u32 %v924_v49, 16  ;;  %v646_v60 = vsel %vm7445_vm10, %v638_v52, %v645_v35 }
  0x61   : > { %v1040_v57 = vsel %vm7439_vm9, %v1035_v46, %v1039_v4  ;;  %v1044_v34 = vor.u32 %v1043_v47, %v1039_v4  ;;  %v1215_v59 = vshll.u32 %v946_v50, 16  ;;  %v1198_v33 = vrot.slane %v1196_v53, 4  ;;  %860 = vst.msk [vmem:[#allocation2 + $0x88] sm:$0xf] %vm274_vm1, %v646_v60  ;;  %v812_v26 = vld [vmem:[#allocation2 + $0x38] sm:$0x1] }
  0x62   : > { %v1201_v62 = vrot.slane %v1199_v54, 5  ;;  %v1207_v51 = vrot.slane %v1205_v55, 5  ;;  %v1211_v63 = vrot.slane %v1209_v56, 4  ;;  %v862_v2 = vsel %vm7458_vm12, %v647_v36, %v861_v41  ;;  %v352_v46 = vld [vmem:[%s7425_s17 + $0xb0] sm:$0xff]  ;;  %v815_v50 = vld [vmem:[#allocation2 + $0x3c] sm:$0xf] }
  0x63   : > { %v1045_v1 = vrot.slane %v1044_v34, 4  ;;  %v1217_v17 = vrot.slane %v1215_v59, 5  ;;  %v516_v3 = vshll.u32 %v7585_v5, 16  ;;  %863 = vst [vmem:[#allocation2 + $0x8c] sm:$0x1] %v862_v2  ;;  %v519_v9 = vrot.slane %v7604_v42, 4 }
  0x64   : > { %v1202_v8 = vor.u32 %v1201_v62, %v1198_v33  ;;  %v1212_v44 = vor.u32 %v1211_v63, %v1207_v51  ;;  %v521_v10 = vshrl.u32 %v7589_v14, 16  ;;  %v524_v13 = vshll.u32 %v7589_v14, 16  ;;  %v353_v34 = vld [vmem:[%s7425_s17 + $0xb8] sm:$0xff]  ;;  %v819_v62 = vld [vmem:[#allocation2 + $0x44] sm:$0x1] }
  0x65   : > { %v1050_v11 = vsel %vm7439_vm9, %v1045_v1, %v1049_v48  ;;  %v518_v12 = vor.u32 %v516_v3, %v7604_v42  ;;  %v6533_v15 = vpack.c.bf16 %v338_v61, %v338_v61  ;;  %v6534_v27 = vpack.c.bf16 %v339_v6, %v339_v6 }
  0x66   : > { %v5986_v16 = vcombine.low %v1040_v57, %v1050_v11  ;;  %v1203_v18 = vrot.slane %v1202_v8, 4  ;;  %v1213_v19 = vrot.slane %v1212_v44, 4  ;;  %v925_v5 = vld [vmem:[#allocation2 + $0x84] sm:$0xf]  ;;  %v523_v20 = vrot.slane %v521_v10, 7 }
  0x67   : > { %v1220_v23 = vshrl.u32 %v925_v5, 16  ;;  %v1223_v52 = vshll.u32 %v925_v5, 16  ;;  %v809_v25 = vsel %vm7452_vm11, %v518_v12, %v808_v0  ;;  %v530_v42 = vshrl.u32 %v6533_v15, 16  ;;  %v354_v12 = vld [vmem:[%s7425_s17 + $0xc0] sm:$0xff] }
  0x68   : > { %6717 = vmatmul.mubr.msk.bf16.gmra.mxu0 %vm1389_vm8, %v5986_v16  ;;  %v1208_v28 = vsel %vm7439_vm9, %v1203_v18, %v1207_v51  ;;  %v1218_v14 = vsel %vm7439_vm9, %v1213_v19, %v1217_v17  ;;  %v526_v29 = vor.u32 %v524_v13, %v523_v20  ;;  %v528_v30 = vrot.slane %v523_v20, 4  ;;  %810 = vst [vmem:[#allocation2 + $0x30] sm:$0xf] %v809_v25  ;;  %v7629_v36 = vld [vmem:[#allocation2 + $0x88] sm:$0xf] }
  0x69   : > { %v5993_v35 = vcombine.low %v1208_v28, %v1218_v14  ;;  %v1222_v38 = vrot.slane %v1220_v23, 4  ;;  %v1225_v41 = vrot.slane %v1223_v52, 5  ;;  %v1229_v4 = vshll.u32 %v7629_v36, 16  ;;  %v355_v52 = vld [vmem:[%s7425_s17 + $0xc8] sm:$0xff] }
  0x6a   : > { %v1233_v47 = vshrl.u32 %v7629_v36, 16  ;;  %v527_v48 = vsel %vm7445_vm10, %v519_v9, %v526_v29  ;;  %v813_v49 = vsel %vm7458_vm12, %v528_v30, %v812_v26  ;;  %v7639_v53 = vld [vmem:[#allocation2 + $0x8c] sm:$0x1]  ;;  %v532_v55 = vrot.slane %v530_v42, 7 }
  0x6b   : > { %6732 = vmatprep.mubr.msk.bf16.mxu1 %vm1389_vm8, %v5993_v35  ;;  %v1226_v54 = vor.u32 %v1225_v41, %v1222_v38  ;;  %811 = vst.msk [vmem:[#allocation2 + $0x34] sm:$0xf] %vm274_vm1, %v527_v48  ;;  %814 = vst [vmem:[#allocation2 + $0x38] sm:$0x1] %v813_v49  ;;  %v533_v56 = vshll.u32 %v6533_v15, 16  ;;  %v538_v57 = vshrl.u32 %v6534_v27, 16  ;;  %v6547_v3 = vpack.c.bf16 %v352_v46, %v352_v46 }
  0x6c   : > { %v1231_v59 = vrot.slane %v1229_v4, 5  ;;  %v1235_v60 = vrot.slane %v1233_v47, 4  ;;  %v1239_v61 = vshll.u32 %v7639_v53, 16  ;;  %v541_v33 = vshll.u32 %v6534_v27, 16 }
  0x6d   : > { %v1227_v51 = vrot.slane %v1226_v54, 4  ;;  %v535_v63 = vor.u32 %v533_v56, %v532_v55  ;;  %v536_v0 = vrot.slane %v532_v55, 4  ;;  %v540_v1 = vrot.slane %v538_v57, 7 }
  0x6e   : > { %v1236_v17 = vor.u32 %v1235_v60, %v1231_v59  ;;  %v1241_v2 = vrot.slane %v1239_v61, 5  ;;  %v6548_v6 = vpack.c.bf16 %v353_v34, %v353_v34  ;;  %v649_v18 = vshrl.u32 %v6547_v3, 16  ;;  %v868_v60 = vld [vmem:[#allocation2 + $0x98] sm:$0x1] }
  0x6f   : > { %v1232_v8 = vsel %vm7439_vm9, %v1227_v51, %v1231_v59  ;;  %v7646_v44 = vld [vmem:[#allocation2 + $0x30] sm:$0xf]  ;;  %v543_v9 = vor.u32 %v541_v33, %v540_v1  ;;  %v545_v10 = vrot.slane %v540_v1, 4  ;;  %v816_v11 = vsel %vm7452_vm11, %v535_v63, %v815_v50 }
  0x70   : > { %v1237_v13 = vrot.slane %v1236_v17, 4  ;;  %v1052_v15 = vshrl.u32 %v7646_v44, 16  ;;  %v1055_v16 = vshll.u32 %v7646_v44, 16  ;;  %817 = vst [vmem:[#allocation2 + $0x3c] sm:$0xf] %v816_v11  ;;  %v652_v20 = vshll.u32 %v6547_v3, 16 }
  0x71   : > { %v544_v19 = vsel %vm7445_vm10, %v536_v0, %v543_v9  ;;  %v820_v5 = vsel %vm7458_vm12, %v545_v10, %v819_v62  ;;  %v657_v23 = vshrl.u32 %v6548_v6, 16  ;;  %v6549_v29 = vpack.c.bf16 %v354_v12, %v354_v12  ;;  %v864_v59 = vld [vmem:[#allocation2 + $0x90] sm:$0xf] }
  0x72   : > { %v1242_v25 = vsel %vm7439_vm9, %v1237_v13, %v1241_v2  ;;  %v7660_v26 = vld [vmem:[#allocation2 + $0x34] sm:$0xf]  ;;  %v7662_v27 = vld [vmem:[#allocation2 + $0x38] sm:$0x1]  ;;  %v1054_v28 = vrot.slane %v1052_v15, 4  ;;  %v1057_v14 = vrot.slane %v1055_v16, 5  ;;  %v7669_v54 = vpack.c.bf16 %v355_v52, %v355_v52 }
  0x73   : > { %818 = vst.msk [vmem:[#allocation2 + $0x40] sm:$0xf] %vm274_vm1, %v544_v19  ;;  %821 = vst [vmem:[#allocation2 + $0x44] sm:$0x1] %v820_v5  ;;  %v5994_v30 = vcombine.low %v1232_v8, %v1242_v25  ;;  %v1061_v35 = vshll.u32 %v7660_v26, 16  ;;  %v1065_v38 = vshrl.u32 %v7660_v26, 16 }
  0x74   : > { %v1071_v41 = vshll.u32 %v7662_v27, 16  ;;  %v1058_v42 = vor.u32 %v1057_v14, %v1054_v28  ;;  %v651_v46 = vrot.slane %v649_v18, 7  ;;  %v659_v4 = vrot.slane %v657_v23, 7  ;;  %v871_v18 = vld [vmem:[#allocation2 + $0x9c] sm:$0xf]  ;;  %v340_v52 = vld [vmem:[%s7425_s17 + $0x50] sm:$0xff] }
  0x75   : > { %v660_v47 = vshll.u32 %v6548_v6, 16  ;;  %6733 = vmatmul.mubr.msk.bf16.gmra.mxu1 %vm1389_vm8, %v5994_v30  ;;  %v1063_v48 = vrot.slane %v1061_v35, 5  ;;  %v1067_v49 = vrot.slane %v1065_v38, 4  ;;  %v666_v51 = vshrl.u32 %v6549_v29, 16  ;;  %v341_v25 = vld [vmem:[%s7425_s17 + $0x58] sm:$0xff]  ;;  %v342_v35 = vld [vmem:[%s7425_s17 + $0x60] sm:$0xff] }
  0x76   : > { %v1073_v50 = vrot.slane %v1071_v41, 5  ;;  %v1059_v55 = vrot.slane %v1058_v42, 4  ;;  %v654_v56 = vor.u32 %v652_v20, %v651_v46  ;;  %v655_v57 = vrot.slane %v651_v46, 4  ;;  %v343_v38 = vld [vmem:[%s7425_s17 + $0x68] sm:$0xff]  ;;  %v356_v41 = vld [vmem:[%s7425_s17 + $0xd0] sm:$0xff] }
  0x77   : > { %v662_v34 = vor.u32 %v660_v47, %v659_v4  ;;  %v1068_v61 = vor.u32 %v1067_v49, %v1063_v48  ;;  %v7671_v33 = vld [vmem:[#allocation2 + $0x3c] sm:$0xf]  ;;  %v664_v62 = vrot.slane %v659_v4, 4  ;;  %v669_v63 = vshll.u32 %v6549_v29, 16 }
  0x78   : > { %v1064_v0 = vsel %vm7439_vm9, %v1059_v55, %v1063_v48  ;;  %v1076_v1 = vshrl.u32 %v7671_v33, 16  ;;  %v1079_v17 = vshll.u32 %v7671_v33, 16  ;;  %v865_v9 = vsel %vm7452_vm11, %v654_v56, %v864_v59  ;;  %v357_v56 = vld [vmem:[%s7425_s17 + $0xd8] sm:$0xff] }
  0x79   : > { %v663_v2 = vsel %vm7445_vm10, %v655_v57, %v662_v34  ;;  %v1069_v3 = vrot.slane %v1068_v61, 4  ;;  %v869_v10 = vsel %vm7458_vm12, %v664_v62, %v868_v60  ;;  %v668_v11 = vrot.slane %v666_v51, 7  ;;  %866 = vst [vmem:[#allocation2 + $0x90] sm:$0xf] %v865_v9 }
  0x7a   : > { %v7679_v6 = vld [vmem:[#allocation2 + $0x40] sm:$0xf]  ;;  %v7681_v8 = vld [vmem:[#allocation2 + $0x44] sm:$0x1]  ;;  %867 = vst.msk [vmem:[#allocation2 + $0x94] sm:$0xf] %vm274_vm1, %v663_v2  ;;  %v6536_v55 = vpack.c.bf16 %v341_v25, %v341_v25  ;;  %v7704_v34 = vpack.c.bf16 %v342_v35, %v342_v35  ;;  %v7706_v59 = vpack.c.bf16 %v343_v38, %v343_v38  ;;  %v7708_v60 = vpack.c.bf16 %v356_v41, %v356_v41 }
  0x7b   : > { %v1078_v12 = vrot.slane %v1076_v1, 4  ;;  %v1081_v13 = vrot.slane %v1079_v17, 5  ;;  %v1085_v15 = vshll.u32 %v7679_v6, 16  ;;  %v1089_v16 = vshrl.u32 %v7679_v6, 16  ;;  %870 = vst [vmem:[#allocation2 + $0x98] sm:$0x1] %v869_v10 }
  0x7c   : > { %v1074_v19 = vsel %vm7439_vm9, %v1069_v3, %v1073_v50  ;;  %v1095_v5 = vshll.u32 %v7681_v8, 16  ;;  %v671_v20 = vor.u32 %v669_v63, %v668_v11  ;;  %v672_v23 = vrot.slane %v668_v11, 4 }
  0x7d   : > { %v5987_v28 = vcombine.low %v1064_v0, %v1074_v19  ;;  %v1082_v14 = vor.u32 %v1081_v13, %v1078_v12  ;;  %v1087_v29 = vrot.slane %v1085_v15, 5  ;;  %v1091_v30 = vrot.slane %v1089_v16, 4 }
  0x7e   : > { %v1097_v42 = vrot.slane %v1095_v5, 5  ;;  %v674_v46 = vshrl.u32 %v7669_v54, 16  ;;  %v677_v4 = vshll.u32 %v7669_v54, 16  ;;  %v872_v47 = vsel %vm7452_vm11, %v671_v20, %v871_v18  ;;  %v875_v5 = vld [vmem:[#allocation2 + $0xa4] sm:$0x1] }
  0x7f   : > { %6720 = vmatprep.mubr.msk.bf16.mxu0 %vm1389_vm8, %v5987_v28  ;;  %v1083_v48 = vrot.slane %v1082_v14, 4  ;;  %v1092_v49 = vor.u32 %v1091_v30, %v1087_v29  ;;  %873 = vst [vmem:[#allocation2 + $0x9c] sm:$0xf] %v872_v47  ;;  %v6535_v50 = vpack.c.bf16 %v340_v52, %v340_v52  ;;  %v7720_v9 = vpack.c.bf16 %v357_v56, %v357_v56  ;;  %v826_v56 = vld [vmem:[#allocation2 + $0x50] sm:$0x1] }
  0x80   : > { %v676_v57 = vrot.slane %v674_v46, 7  ;;  %v7714_v0 = vld [vmem:[#allocation2 + $0x90] sm:$0xf]  ;;  %v555_v35 = vshrl.u32 %v6536_v55, 16  ;;  %v558_v38 = vshll.u32 %v6536_v55, 16  ;;  %v564_v55 = vshrl.u32 %v7704_v34, 16 }
  0x81   : > { %v1088_v54 = vsel %vm7439_vm9, %v1083_v48, %v1087_v29  ;;  %v1093_v61 = vrot.slane %v1092_v49, 4  ;;  %v7712_v62 = vld [vmem:[#allocation2 + $0x94] sm:$0xf]  ;;  %v547_v51 = vshrl.u32 %v6535_v50, 16  ;;  %v550_v63 = vshll.u32 %v6535_v50, 16 }
  0x82   : > { %v7716_v1 = vld [vmem:[#allocation2 + $0x98] sm:$0x1]  ;;  %v1253_v17 = vshll.u32 %v7712_v62, 16  ;;  %v1257_v2 = vshrl.u32 %v7712_v62, 16  ;;  %v679_v3 = vor.u32 %v677_v4, %v676_v57  ;;  %v1244_v11 = vshrl.u32 %v7714_v0, 16 }
  0x83   : > { %v1098_v10 = vsel %vm7439_vm9, %v1093_v61, %v1097_v42  ;;  %v1247_v12 = vshll.u32 %v7714_v0, 16  ;;  %v1263_v13 = vshll.u32 %v7716_v1, 16  ;;  %v681_v28 = vrot.slane %v676_v57, 4  ;;  %v822_v4 = vld [vmem:[#allocation2 + $0x48] sm:$0xf] }
  0x84   : > { %v5988_v15 = vcombine.low %v1088_v54, %v1098_v10  ;;  %v1255_v16 = vrot.slane %v1253_v17, 5  ;;  %v1259_v18 = vrot.slane %v1257_v2, 4  ;;  %v680_v19 = vsel %vm7445_vm10, %v672_v23, %v679_v3 }
  0x85   : > { %v1246_v20 = vrot.slane %v1244_v11, 4  ;;  %v1249_v52 = vrot.slane %v1247_v12, 5  ;;  %v1265_v25 = vrot.slane %v1263_v13, 5  ;;  %874 = vst.msk [vmem:[#allocation2 + $0xa0] sm:$0xf] %vm274_vm1, %v680_v19  ;;  %v549_v30 = vrot.slane %v547_v51, 7 }
  0x86   : > { %6721 = vmatmul.mubr.msk.bf16.gmra.mxu0 %vm1389_vm8, %v5988_v15  ;;  %v1260_v14 = vor.u32 %v1259_v18, %v1255_v16  ;;  %v7731_v29 = vld [vmem:[#allocation2 + $0x9c] sm:$0xf]  ;;  %v876_v42 = vsel %vm7458_vm12, %v681_v28, %v875_v5  ;;  %v557_v50 = vrot.slane %v555_v35, 7  ;;  %v566_v11 = vrot.slane %v564_v55, 7 }
  0x87   : > { %v1250_v41 = vor.u32 %v1249_v52, %v1246_v20  ;;  %v1268_v23 = vshrl.u32 %v7731_v29, 16  ;;  %v1271_v46 = vshll.u32 %v7731_v29, 16  ;;  %877 = vst [vmem:[#allocation2 + $0xa4] sm:$0x1] %v876_v42  ;;  %v552_v48 = vor.u32 %v550_v63, %v549_v30  ;;  %v829_v20 = vld [vmem:[#allocation2 + $0x54] sm:$0xf] }
  0x88   : > { %v1261_v47 = vrot.slane %v1260_v14, 4  ;;  %v553_v49 = vrot.slane %v549_v30, 4  ;;  %v560_v17 = vor.u32 %v558_v38, %v557_v50  ;;  %v562_v2 = vrot.slane %v557_v50, 4  ;;  %v833_v28 = vld [vmem:[#allocation2 + $0x5c] sm:$0x1] }
  0x89   : > { %v1251_v57 = vrot.slane %v1250_v41, 4  ;;  %v1270_v54 = vrot.slane %v1268_v23, 4  ;;  %v1273_v61 = vrot.slane %v1271_v46, 5  ;;  %v823_v3 = vsel %vm7452_vm11, %v552_v48, %v822_v4 }
  0x8a   : > { %v1266_v51 = vsel %vm7439_vm9, %v1261_v47, %v1265_v25  ;;  %824 = vst [vmem:[#allocation2 + $0x48] sm:$0xf] %v823_v3  ;;  %v567_v12 = vshll.u32 %v7704_v34, 16  ;;  %v561_v18 = vsel %vm7445_vm10, %v553_v49, %v560_v17  ;;  %v827_v19 = vsel %vm7458_vm12, %v562_v2, %v826_v56  ;;  %v878_v56 = vld [vmem:[#allocation2 + $0xa8] sm:$0xf] }
  0x8b   : > { %v1256_v10 = vsel %vm7439_vm9, %v1251_v57, %v1255_v16  ;;  %v1274_v63 = vor.u32 %v1273_v61, %v1270_v54  ;;  %v572_v5 = vshrl.u32 %v7706_v59, 16  ;;  %825 = vst.msk [vmem:[#allocation2 + $0x4c] sm:$0xf] %vm274_vm1, %v561_v18  ;;  %828 = vst [vmem:[#allocation2 + $0x50] sm:$0x1] %v827_v19  ;;  %v570_v14 = vrot.slane %v566_v11, 4 }
  0x8c   : > { %v5995_v13 = vcombine.low %v1256_v10, %v1266_v51  ;;  %v7745_v15 = vld [vmem:[#allocation2 + $0xa0] sm:$0xf]  ;;  %v569_v34 = vor.u32 %v567_v12, %v566_v11  ;;  %v575_v35 = vshll.u32 %v7706_v59, 16  ;;  %v683_v38 = vshrl.u32 %v7708_v60, 16 }
  0x8d   : > { %v1275_v52 = vrot.slane %v1274_v63, 4  ;;  %v1277_v16 = vshll.u32 %v7745_v15, 16  ;;  %v1281_v25 = vshrl.u32 %v7745_v15, 16  ;;  %v574_v30 = vrot.slane %v572_v5, 7  ;;  %v358_v57 = vld [vmem:[%s7425_s17 + $0xe0] sm:$0xff] }
  0x8e   : > { %6736 = vmatprep.mubr.msk.bf16.mxu1 %vm1389_vm8, %v5995_v13  ;;  %v7758_v41 = vld [vmem:[#allocation2 + $0xa4] sm:$0x1]  ;;  %v830_v46 = vsel %vm7452_vm11, %v569_v34, %v829_v20  ;;  %v686_v4 = vshll.u32 %v7708_v60, 16  ;;  %v685_v50 = vrot.slane %v683_v38, 7  ;;  %v691_v54 = vshrl.u32 %v7720_v9, 16 }
  0x8f   : > { %v1279_v42 = vrot.slane %v1277_v16, 5  ;;  %v1283_v23 = vrot.slane %v1281_v25, 4  ;;  %v1287_v47 = vshll.u32 %v7758_v41, 16  ;;  %v577_v48 = vor.u32 %v575_v35, %v574_v30  ;;  %831 = vst [vmem:[#allocation2 + $0x54] sm:$0xf] %v830_v46 }
  0x90   : > { %v579_v49 = vrot.slane %v574_v30, 4  ;;  %v694_v61 = vshll.u32 %v7720_v9, 16  ;;  %v688_v2 = vor.u32 %v686_v4, %v685_v50  ;;  %v689_v13 = vrot.slane %v685_v50, 4  ;;  %v882_v35 = vld [vmem:[#allocation2 + $0xb0] sm:$0x1] }
  0x91   : > { %v1284_v59 = vor.u32 %v1283_v23, %v1279_v42  ;;  %v1289_v55 = vrot.slane %v1287_v47, 5  ;;  %v7767_v51 = vld [vmem:[#allocation2 + $0x48] sm:$0xf]  ;;  %v578_v17 = vsel %vm7445_vm10, %v570_v14, %v577_v48  ;;  %v1280_v3 = vsel %vm7439_vm9, %v1275_v52, %v1279_v42 }
  0x92   : > { %v834_v60 = vsel %vm7458_vm12, %v579_v49, %v833_v28  ;;  %v1100_v63 = vshrl.u32 %v7767_v51, 16  ;;  %v1103_v11 = vshll.u32 %v7767_v51, 16  ;;  %832 = vst.msk [vmem:[#allocation2 + $0x58] sm:$0xf] %vm274_vm1, %v578_v17  ;;  %v7778_v9 = vld [vmem:[#allocation2 + $0x4c] sm:$0xf]  ;;  %v879_v19 = vsel %vm7452_vm11, %v688_v2, %v878_v56 }
  0x93   : > { %v1285_v10 = vrot.slane %v1284_v59, 4  ;;  %835 = vst [vmem:[#allocation2 + $0x5c] sm:$0x1] %v834_v60  ;;  %v7780_v12 = vld [vmem:[#allocation2 + $0x50] sm:$0x1]  ;;  %v693_v18 = vrot.slane %v691_v54, 7  ;;  %v6553_v5 = vpack.c.bf16 %v358_v57, %v358_v57 }
  0x94   : > { %v1102_v52 = vrot.slane %v1100_v63, 4  ;;  %v1105_v16 = vrot.slane %v1103_v11, 5  ;;  %v1109_v25 = vshll.u32 %v7778_v9, 16  ;;  %880 = vst [vmem:[#allocation2 + $0xa8] sm:$0xf] %v879_v19  ;;  %v1113_v28 = vshrl.u32 %v7778_v9, 16 }
  0x95   : > { %v1290_v20 = vsel %vm7439_vm9, %v1285_v10, %v1289_v55  ;;  %v1119_v14 = vshll.u32 %v7780_v12, 16  ;;  %v696_v30 = vor.u32 %v694_v61, %v693_v18  ;;  %v698_v46 = vrot.slane %v693_v18, 4  ;;  %v359_v56 = vld [vmem:[%s7425_s17 + $0xe8] sm:$0xff] }
  0x96   : > { %v5996_v34 = vcombine.low %v1280_v3, %v1290_v20  ;;  %v1106_v38 = vor.u32 %v1105_v16, %v1102_v52  ;;  %v1111_v42 = vrot.slane %v1109_v25, 5  ;;  %v7789_v23 = vld [vmem:[#allocation2 + $0x54] sm:$0xf]  ;;  %v700_v4 = vshrl.u32 %v6553_v5, 16 }
  0x97   : > { %v1115_v47 = vrot.slane %v1113_v28, 4  ;;  %v1121_v48 = vrot.slane %v1119_v14, 5  ;;  %v1124_v49 = vshrl.u32 %v7789_v23, 16  ;;  %v1127_v50 = vshll.u32 %v7789_v23, 16 }
  0x98   : > { %6737 = vmatmul.mubr.msk.bf16.gmra.mxu1 %vm1389_vm8, %v5996_v34  ;;  %v1107_v57 = vrot.slane %v1106_v38, 4  ;;  %v697_v59 = vsel %vm7445_vm10, %v689_v13, %v696_v30  ;;  %v883_v54 = vsel %vm7458_vm12, %v698_v46, %v882_v35  ;;  %v702_v61 = vrot.slane %v700_v4, 7  ;;  %v885_v30 = vld [vmem:[#allocation2 + $0xb4] sm:$0xf] }
  0x99   : > { %v1116_v55 = vor.u32 %v1115_v47, %v1111_v42  ;;  %v7799_v17 = vld [vmem:[#allocation2 + $0x58] sm:$0xf]  ;;  %v1126_v2 = vrot.slane %v1124_v49, 4  ;;  %v1129_v3 = vrot.slane %v1127_v50, 5  ;;  %881 = vst.msk [vmem:[#allocation2 + $0xac] sm:$0xf] %vm274_vm1, %v697_v59  ;;  %v6554_v13 = vpack.c.bf16 %v359_v56, %v359_v56 }
  0x9a   : > { %v7801_v60 = vld [vmem:[#allocation2 + $0x5c] sm:$0x1]  ;;  %884 = vst [vmem:[#allocation2 + $0xb0] sm:$0x1] %v883_v54  ;;  %v1133_v10 = vshll.u32 %v7799_v17, 16  ;;  %v1137_v63 = vshrl.u32 %v7799_v17, 16  ;;  %v1112_v18 = vsel %vm7439_vm9, %v1107_v57, %v1111_v42 }
  0x9b   : > { %v1143_v11 = vshll.u32 %v7801_v60, 16  ;;  %v1117_v19 = vrot.slane %v1116_v55, 4  ;;  %v1130_v20 = vor.u32 %v1129_v3, %v1126_v2  ;;  %v7809_v52 = vld [vmem:[#allocation2 + $0xa8] sm:$0xf]  ;;  %v703_v16 = vshll.u32 %v6553_v5, 16 }
  0x9c   : > { %v1135_v25 = vrot.slane %v1133_v10, 5  ;;  %v1139_v34 = vrot.slane %v1137_v63, 4  ;;  %v1292_v14 = vshrl.u32 %v7809_v52, 16  ;;  %v1295_v46 = vshll.u32 %v7809_v52, 16 }
  0x9d   : > { %v1145_v28 = vrot.slane %v1143_v11, 5  ;;  %v1122_v35 = vsel %vm7439_vm9, %v1117_v19, %v1121_v48  ;;  %v1131_v38 = vrot.slane %v1130_v20, 4  ;;  %v705_v4 = vor.u32 %v703_v16, %v702_v61  ;;  %v1895_v16 = vld [vmem:[#allocation2] sm:$0xe] }
  0x9e   : > { %v5989_v47 = vcombine.low %v1112_v18, %v1122_v35  ;;  %v1140_v42 = vor.u32 %v1139_v34, %v1135_v25  ;;  %v1294_v49 = vrot.slane %v1292_v14, 4  ;;  %v708_v50 = vshrl.u32 %v6554_v13, 16  ;;  %v1896_v35 = vld [vmem:[#allocation2 + $0xc] sm:$0xe] }
  0x9f   : > { %v1297_v56 = vrot.slane %v1295_v46, 5  ;;  %v706_v57 = vrot.slane %v702_v61, 4  ;;  %v711_v5 = vshll.u32 %v6554_v13, 16  ;;  %v886_v59 = vsel %vm7452_vm11, %v705_v4, %v885_v30  ;;  %v889_v13 = vld [vmem:[#allocation2 + $0xbc] sm:$0x1] }
  0xa0   : > { %6724 = vmatprep.mubr.msk.bf16.mxu0 %vm1389_vm8, %v5989_v47  ;;  %v1136_v54 = vsel %vm7439_vm9, %v1131_v38, %v1135_v25  ;;  %v1141_v48 = vrot.slane %v1140_v42, 4  ;;  %v7820_v55 = vld [vmem:[#allocation2 + $0xac] sm:$0xf]  ;;  %v710_v3 = vrot.slane %v708_v50, 7  ;;  %887 = vst [vmem:[#allocation2 + $0xb4] sm:$0xf] %v886_v59 }
  0xa1   : > { %v7822_v2 = vld [vmem:[#allocation2 + $0xb0] sm:$0x1]  ;;  %v1298_v10 = vor.u32 %v1297_v56, %v1294_v49  ;;  %v1301_v63 = vshll.u32 %v7820_v55, 16  ;;  %v1305_v61 = vshrl.u32 %v7820_v55, 16  ;;  %vm1943_vm13 = vcmask 1042432  }
  0xa2   : > { %v1311_v11 = vshll.u32 %v7822_v2, 16  ;;  %v1146_v18 = vsel %vm7439_vm9, %v1141_v48, %v1145_v28  ;;  %v713_v19 = vor.u32 %v711_v5, %v710_v3  ;;  %v715_v20 = vrot.slane %v710_v3, 4  ;;  %v7123_v38 = vld [vmem:[#allocation2 + $0x14] sm:$0x1]  ;;  %v1897_v42 = vld [vmem:[#allocation2 + $0x18] sm:$0xe] }
  0xa3   : > { %v5990_v25 = vcombine.low %v1136_v54, %v1146_v18  ;;  %v1299_v34 = vrot.slane %v1298_v10, 4  ;;  %v1303_v14 = vrot.slane %v1301_v63, 5  ;;  %v1307_v30 = vrot.slane %v1305_v61, 4  ;;  %v7840_v5 = vld [vmem:[#allocation2 + $0x4] sm:$0xf] }
  0xa4   : > { %v1958_v46 = vrot.slane %v7123_v38, 5  ;;  %v714_v4 = vsel %vm7445_vm10, %v706_v57, %v713_v19  ;;  %v890_v47 = vsel %vm7458_vm12, %v715_v20, %v889_v13  ;;  %vm1944_vm14 = vcmask 1046532  }
  0xa5   : > { %6725 = vmatmul.mubr.msk.bf16.gmra.mxu0 %vm1389_vm8, %v5990_v25  ;;  %v1308_v28 = vor.u32 %v1307_v30, %v1303_v14  ;;  %v1313_v49 = vrot.slane %v1311_v11, 5  ;;  %888 = vst.msk [vmem:[#allocation2 + $0xb8] sm:$0xf] %vm274_vm1, %v714_v4  ;;  %891 = vst [vmem:[#allocation2 + $0xbc] sm:$0x1] %v890_v47  ;;  %v6047_v56 = vrot.slane %v1895_v16, 9  ;;  %v1304_v59 = vsel %vm7439_vm9, %v1299_v34, %v1303_v14 }
  0xa6   : > { %vm7836_vm15 = vmor %vm1943_vm13, %vm1944_vm14  ;;  %v1948_v57 = vrot.slane %v7840_v5, 5  ;;  %v6048_v54 = vrot.slane %v1896_v35, 9  ;;  %v1957_v48 = vrot.slane %v1955_v58, 4  ;;  %v3245_v3 = vsel %vm1438_vm0, %v7552_v45, 0  ;;  %v1898_v16 = vld [vmem:[#allocation2 + $0x24] sm:$0xe] }
  0xa7   : > { %v1309_v10 = vrot.slane %v1308_v28, 4  ;;  %v7849_v63 = vld [vmem:[#allocation2 + $0xb4] sm:$0xf]  ;;  %v6049_v13 = vrot.slane %v1897_v42, 9  ;;  %v7867_v30 = vld [vmem:[#allocation2 + $0x1c] sm:$0xf] }
  0xa8   : > { %v1949_v61 = vsel %vm7836_vm15, %v6047_v56, %v1948_v57  ;;  %v1950_v11 = vrot.slane %v1948_v57, 4  ;;  %v1316_v18 = vshrl.u32 %v7849_v63, 16  ;;  %v1319_v19 = vshll.u32 %v7849_v63, 16  ;;  %v1899_v47 = vld [vmem:[#allocation2 + $0x30] sm:$0xe] }
  0xa9   : > { %v1956_v20 = vsel %vm7836_vm15, %v6048_v54, %v1955_v58  ;;  %v1959_v45 = vsel %vm7836_vm15, %v1957_v48, %v1958_v46  ;;  %v1314_v25 = vsel %vm7439_vm9, %v1309_v10, %v1313_v49  ;;  %v1962_v39 = vrot.slane %v7867_v30, 5 }
  0xaa   : > { %v1952_v34 = vsel %vm7836_vm15, %v1950_v11, %v1951_v32  ;;  %v6065_v14 = vcombine.low %v1956_v20, %v1959_v45  ;;  %v5997_v35 = vcombine.low %v1304_v59, %v1314_v25  ;;  %v1318_v38 = vrot.slane %v1316_v18, 4  ;;  %v7876_v32 = vld [vmem:[%s10144_s1 + $0x18] sm:$0xf] }
  0xab   : > { %v1321_v58 = vrot.slane %v1319_v19, 5  ;;  %v6064_v4 = vcombine.low %v1949_v61, %v1952_v34  ;;  %v1963_v46 = vsel %vm7836_vm15, %v6049_v13, %v1962_v39  ;;  %v1964_v42 = vrot.slane %v1962_v39, 4  ;;  %v1900_v19 = vld [vmem:[#allocation2 + $0x3c] sm:$0xe]  ;;  %v1901_v39 = vld [vmem:[#allocation2 + $0x48] sm:$0xe] }
  0xac   : > { %v1965_v28 = vrot.slane %v7564_v40, 5  ;;  %v6050_v7 = vrot.slane %v1898_v16, 9  ;;  %6740 = vmatprep.mubr.msk.bf16.mxu1 %vm1389_vm8, %v5997_v35  ;;  %v7879_v49 = vld [vmem:[#allocation2 + $0xb8] sm:$0xf]  ;;  %v7881_v56 = vld [vmem:[#allocation2 + $0xbc] sm:$0x1] }
  0xad   : > { %v1322_v57 = vor.u32 %v1321_v58, %v1318_v38  ;;  %6780 = vmatprep.mubr.msk.bf16.mxu0 %vm1389_vm8, %v6064_v4  ;;  %v1969_v59 = vrot.slane %v7593_v21, 5  ;;  %v1972_v54 = vrot.slane %v7595_v22, 5  ;;  %v1325_v40 = vshll.u32 %v7879_v49, 16 }
  0xae   : > { %v1329_v48 = vshrl.u32 %v7879_v49, 16  ;;  %v1335_v10 = vshll.u32 %v7881_v56, 16  ;;  %6781 = vmatmul.mubr.msk.bf16.vlgmr.msra.gmra.mxu0 %vm1389_vm8, %v6065_v14  ;;  %v1966_v61 = vsel %vm7836_vm15, %v1964_v42, %v1965_v28  ;;  %v6051_v16 = vrot.slane %v1899_v47, 9 }
  0xaf   : > { %v1323_v11 = vrot.slane %v1322_v57, 4  ;;  %6847 = vmatpush3.bf16.msra.mxu0 %v3245_v3  ;;  %v6066_v13 = vcombine.low %v1963_v46, %v1966_v61  ;;  %v1970_v18 = vsel %vm7836_vm15, %v6050_v7, %v1969_v59  ;;  %v1971_v21 = vrot.slane %v1969_v59, 4 }
  0xb0   : > { %v1327_v22 = vrot.slane %v1325_v40, 5  ;;  %v1331_v20 = vrot.slane %v1329_v48, 4  ;;  %v1337_v45 = vrot.slane %v1335_v10, 5  ;;  %7025 = vmatprep.subr.msk.bf16.mxu0 %vm1438_vm0, %v7876_v32  ;;  %v1976_v3 = vrot.slane %v7660_v26, 5  ;;  %v1903_v40 = vld [vmem:[#allocation2 + $0x60] sm:$0xe] }
  0xb1   : > { %6784 = vmatprep.mubr.msk.bf16.mxu0 %vm1389_vm8, %v6066_v13  ;;  %v1973_v25 = vsel %vm7836_vm15, %v1971_v21, %v1972_v54  ;;  %v1979_v34 = vrot.slane %v7662_v27, 5  ;;  %v6019_v14 = vcombine.low %v7646_v44, %v7660_v26  ;;  %v6052_v4 = vrot.slane %v1900_v19, 9  ;;  %v1902_v54 = vld [vmem:[#allocation2 + $0x54] sm:$0xe]  ;;  %v7126_v13 = vld [vmem:[#allocation2] sm:$0xf] }
  0xb2   : > { %v1328_v35 = vsel %vm7439_vm9, %v1323_v11, %v1327_v22  ;;  %v1332_v38 = vor.u32 %v1331_v20, %v1327_v22  ;;  %v6067_v58 = vcombine.low %v1970_v18, %v1973_v25  ;;  %v1977_v47 = vsel %vm7836_vm15, %v6051_v16, %v1976_v3  ;;  %v1904_v16 = vld [vmem:[#allocation2 + $0x6c] sm:$0xe]  ;;  %v8048_v26 = vld [vmem:[#allocation2 + $0x60] sm:$0xf] }
  0xb3   : > { %v1978_v46 = vrot.slane %v1976_v3, 4  ;;  %v1983_v42 = vrot.slane %v7679_v6, 5  ;;  %v1986_v28 = vrot.slane %v7681_v8, 5  ;;  %v6020_v27 = vcombine.low %v7671_v33, %v7679_v6  ;;  %v7127_v3 = vld [vmem:[#allocation2 + $0x68] sm:$0x1] }
  0xb4   : > { %v1333_v7 = vrot.slane %v1332_v38, 4  ;;  %v6053_v57 = vrot.slane %v1901_v39, 9  ;;  %v1990_v59 = vrot.slane %v7778_v9, 5  ;;  %v1993_v61 = vrot.slane %v7780_v12, 5  ;;  %v7931_v38 = vld [vmem:[#allocation2 + $0x64] sm:$0xf] }
  0xb5   : > { %v1980_v48 = vsel %vm7836_vm15, %v1978_v46, %v1979_v34  ;;  %v1985_v10 = vrot.slane %v1983_v42, 4  ;;  %v6015_v8 = vcombine.low %v7126_v13, %v7840_v5  ;;  %v1984_v22 = vsel %vm7836_vm15, %v6052_v4, %v1983_v42  ;;  %v7129_v4 = vld [vmem:[#allocation2 + $0xc] sm:$0xf]  ;;  %v7942_v13 = vld [vmem:[#allocation2 + $0x7c] sm:$0xf] }
  0xb6   : > { %v1338_v11 = vsel %vm7439_vm9, %v1333_v7, %v1337_v45  ;;  %6785 = vmatmul.mubr.msk.bf16.gmra.mxu0 %vm1389_vm8, %v6067_v58  ;;  %v6068_v18 = vcombine.low %v1977_v47, %v1980_v48  ;;  %v1992_v21 = vrot.slane %v1990_v59, 4  ;;  %v1991_v12 = vsel %vm7836_vm15, %v6053_v57, %v1990_v59  ;;  %v7130_v47 = vld [vmem:[#allocation2 + $0x10] sm:$0xf]  ;;  %v1905_v7 = vld [vmem:[#allocation2 + $0x78] sm:$0xe] }
  0xb7   : > { %v5998_v19 = vcombine.low %v1328_v35, %v1338_v11  ;;  %v1987_v20 = vsel %vm7836_vm15, %v1985_v10, %v1986_v28  ;;  %v6054_v45 = vrot.slane %v1902_v54, 9  ;;  %v1997_v25 = vrot.slane %v7799_v17, 5  ;;  %v7935_v48 = vld [vmem:[#allocation2 + $0x70] sm:$0xf]  ;;  %v8095_v33 = vld [vmem:[#allocation2 + $0x84] sm:$0xf] }
  0xb8   : > { %6788 = vmatprep.mubr.msk.bf16.mxu0 %vm1389_vm8, %v6068_v18  ;;  %v1994_v5 = vsel %vm7836_vm15, %v1992_v21, %v1993_v61  ;;  %v2007_v34 = vrot.slane %v7127_v3, 5  ;;  %v2000_v39 = vrot.slane %v7801_v60, 5  ;;  %v6055_v35 = vrot.slane %v1903_v40, 9  ;;  %v7132_v61 = vld [vmem:[#allocation2 + $0x74] sm:$0x1] }
  0xb9   : > { %6741 = vmatmul.mubr.msk.bf16.gmra.mxu1 %vm1389_vm8, %v5998_v19  ;;  %v2004_v58 = vrot.slane %v7931_v38, 5  ;;  %v6016_v46 = vcombine.low %v7129_v4, %v7130_v47  ;;  %v6069_v42 = vcombine.low %v1984_v22, %v1987_v20  ;;  %v1999_v28 = vrot.slane %v1997_v25, 4  ;;  %v7134_v20 = vld [vmem:[#allocation2 + $0x18] sm:$0xf]  ;;  %v7136_v3 = vld [vmem:[#allocation2 + $0x24] sm:$0xf] }
  0xba   : > { %6746 = vmatprep.mubr.msk.bf16.mxu1 %vm1389_vm8, %v6015_v8  ;;  %v6070_v57 = vcombine.low %v1991_v12, %v1994_v5  ;;  %v6056_v54 = vrot.slane %v1904_v16, 9  ;;  %v2011_v60 = vrot.slane %v7935_v48, 5  ;;  %v1998_v40 = vsel %vm7836_vm15, %v6054_v45, %v1997_v25  ;;  %v1906_v12 = vld [vmem:[#allocation2 + $0x84] sm:$0xe]  ;;  %v1907_v5 = vld [vmem:[#allocation2 + $0x90] sm:$0xe] }
  0xbb   : > { %v2006_v59 = vrot.slane %v2004_v58, 4  ;;  %v2005_v10 = vsel %vm7836_vm15, %v6055_v35, %v2004_v58  ;;  %v2014_v11 = vrot.slane %v7132_v61, 5  ;;  %v2018_v8 = vrot.slane %v7942_v13, 5  ;;  %v7135_v45 = vld [vmem:[%s10144_s1 + $0xc] sm:$0xf] }
  0xbc   : > { %v2001_v18 = vsel %vm7836_vm15, %v1999_v28, %v2000_v39  ;;  %v2013_v19 = vrot.slane %v2011_v60, 4  ;;  %v6057_v22 = vrot.slane %v1905_v7, 9  ;;  %v6017_v16 = vcombine.low %v7134_v20, %v7867_v30  ;;  %v7137_v39 = vld [vmem:[#allocation2 + $0x28] sm:$0xf]  ;;  %v7138_v58 = vld [vmem:[#allocation2 + $0x80] sm:$0x1] }
  0xbd   : > { %v2008_v21 = vsel %vm7836_vm15, %v2006_v59, %v2007_v34  ;;  %v2519_v25 = vsel %vm1438_vm0, %v7135_v45, 0  ;;  %v6018_v35 = vcombine.low %v7136_v3, %v7137_v39  ;;  %v2020_v34 = vrot.slane %v2018_v8, 4  ;;  %v1908_v47 = vld [vmem:[#allocation2 + $0x9c] sm:$0xe]  ;;  %v7964_v59 = vld [vmem:[%s10144_s1 + $0x14] sm:$0xf] }
  0xbe   : > { %6789 = vmatmul.mubr.msk.bf16.gmra.mxu0 %vm1389_vm8, %v6069_v42  ;;  %v2021_v4 = vrot.slane %v7138_v58, 5  ;;  %v6071_v30 = vcombine.low %v1998_v40, %v2001_v18  ;;  %v6072_v28 = vcombine.low %v2005_v10, %v2008_v21  ;;  %v7958_v42 = vsel %vm7836_vm15, %v6056_v54, %v2011_v60  ;;  %v1909_v45 = vld [vmem:[#allocation2 + $0xa8] sm:$0xe]  ;;  %v1910_v39 = vld [vmem:[#allocation2 + $0xb4] sm:$0xe] }
  0xbf   : > { %6792 = vmatprep.mubr.msk.bf16.mxu0 %vm1389_vm8, %v6070_v57  ;;  %v2025_v7 = vrot.slane %v7629_v36, 5  ;;  %v7969_v57 = vsel %vm7836_vm15, %v2013_v19, %v2014_v11  ;;  %v7973_v40 = vsel %vm7836_vm15, %v6057_v22, %v2018_v8  ;;  %v6058_v10 = vrot.slane %v1906_v12, 9  ;;  %v6161_v58 = vld [vmem:[#allocation2 + $0xc] sm:$0xf]  ;;  %v8097_v6 = vld [vmem:[#allocation2 + $0x88] sm:$0xf] }
  0xc0   : > { %v6059_v54 = vrot.slane %v1907_v5, 9  ;;  %v2032_v36 = vrot.slane %v7712_v62, 5  ;;  %v2035_v60 = vrot.slane %v7716_v1, 5  ;;  %v6060_v61 = vrot.slane %v1908_v47, 9 }
  0xc1   : > { %6747 = vmatmul.mubr.msk.bf16.vlgmr.msra.gmra.mxu1 %vm1389_vm8, %v6016_v46  ;;  %v7982_v11 = vsel %vm7836_vm15, %v2020_v34, %v2021_v4  ;;  %v2039_v8 = vrot.slane %v7745_v15, 5  ;;  %v2042_v18 = vrot.slane %v7758_v41, 5  ;;  %v2027_v19 = vrot.slane %v2025_v7, 4 }
  0xc2   : > { %6813 = vmatpush3.bf16.msra.mxu1 %v2519_v25  ;;  %6750 = vmatprep.mubr.msk.bf16.mxu1 %vm1389_vm8, %v6017_v16  ;;  %v2028_v1 = vrot.slane %v7639_v53, 5  ;;  %v7993_v22 = vsel %vm7836_vm15, %v6059_v54, %v2032_v36  ;;  %v2034_v20 = vrot.slane %v2032_v36, 4  ;;  %v6021_v16 = vcombine.low %v7767_v51, %v7778_v9  ;;  %v8101_v51 = vld [vmem:[#allocation2 + $0x34] sm:$0xf] }
  0xc3   : > { %7024 = vmatprep.subr.msk.bf16.mxu1 %vm1438_vm0, %v7964_v59  ;;  %v6073_v41 = vcombine.low %v7958_v42, %v7969_v57  ;;  %v8001_v12 = vsel %vm7836_vm15, %v6060_v61, %v2039_v8  ;;  %v2041_v5 = vrot.slane %v2039_v8, 4  ;;  %v2046_v25 = vrot.slane %v7820_v55, 5  ;;  %v8025_v57 = vld [vmem:[#allocation2 + $0x10] sm:$0xf]  ;;  %v6164_v8 = vld [vmem:[#allocation2 + $0x18] sm:$0xf] }
  0xc4   : > { %v8006_v53 = vsel %vm7836_vm15, %v2034_v20, %v2035_v60  ;;  %v2053_v34 = vrot.slane %v7879_v49, 5  ;;  %v6074_v4 = vcombine.low %v7973_v40, %v7982_v11  ;;  %v8017_v47 = vsel %vm7836_vm15, %v6058_v10, %v2025_v7  ;;  %v6163_v10 = vld [vmem:[#allocation2 + $0x14] sm:$0x1]  ;;  %v6165_v20 = vld [vmem:[#allocation2 + $0x1c] sm:$0xf] }
  0xc5   : > { %v8023_v42 = vsel %vm7836_vm15, %v2041_v5, %v2042_v18  ;;  %v8029_v54 = vsel %vm7836_vm15, %v2027_v19, %v2028_v1  ;;  %v6061_v40 = vrot.slane %v1909_v45, 9  ;;  %v2049_v7 = vrot.slane %v7822_v2, 5 }
  0xc6   : > { %6793 = vmatmul.mubr.msk.bf16.gmra.mxu0 %vm1389_vm8, %v6071_v30  ;;  %v6076_v30 = vcombine.low %v7993_v22, %v8006_v53  ;;  %v6062_v36 = vrot.slane %v1910_v39, 9  ;;  %v2763_v61 = vshrl.u32 %v6161_v58, 16  ;;  %v2766_v11 = vshll.u32 %v6161_v58, 16  ;;  %v8140_v22 = vld [vmem:[#allocation2 + $0x38] sm:$0x1] }
  0xc7   : > { %6796 = vmatprep.mubr.msk.bf16.mxu0 %vm1389_vm8, %v6072_v28  ;;  %v2048_v18 = vrot.slane %v2046_v25, 4  ;;  %v2055_v19 = vrot.slane %v2053_v34, 4  ;;  %v2772_v1 = vshll.u32 %v8025_v57, 16  ;;  %v2776_v2 = vshrl.u32 %v8025_v57, 16 }
  0xc8   : > { %v2765_v5 = vrot.slane %v2763_v61, 4  ;;  %v2768_v45 = vrot.slane %v2766_v11, 5  ;;  %v2782_v39 = vshll.u32 %v6163_v10, 16  ;;  %v2787_v3 = vshrl.u32 %v6164_v8, 16  ;;  %v8057_v61 = vld [vmem:[#allocation2 + $0x78] sm:$0xf] }
  0xc9   : > { %6751 = vmatmul.mubr.msk.bf16.gmra.mxu1 %vm1389_vm8, %v6018_v35  ;;  %v2056_v35 = vrot.slane %v7881_v56, 5  ;;  %v8044_v60 = vrot.slane %v2772_v1, 5  ;;  %v2778_v58 = vrot.slane %v2776_v2, 4  ;;  %v2790_v21 = vshll.u32 %v6164_v8, 16  ;;  %v8053_v56 = vld [vmem:[#allocation2 + $0x6c] sm:$0xf] }
  0xca   : > { %6754 = vmatprep.mubr.msk.bf16.mxu1 %vm1389_vm8, %v6019_v14  ;;  %v6022_v44 = vcombine.low %v7789_v23, %v7799_v17  ;;  %v2796_v46 = vshll.u32 %v6165_v20, 16  ;;  %v2800_v28 = vshrl.u32 %v6165_v20, 16  ;;  %v2769_v8 = vor.u32 %v2768_v45, %v2765_v5  ;;  %v6167_v2 = vld [vmem:[#allocation2 + $0x24] sm:$0xf]  ;;  %v8077_v5 = vld [vmem:[#allocation2 + $0x28] sm:$0xf] }
  0xcb   : > { %v2779_v1 = vor.u32 %v2778_v58, %v8044_v60  ;;  %v6075_v20 = vcombine.low %v8017_v47, %v8029_v54  ;;  %v8071_v10 = vsel %vm7836_vm15, %v2048_v18, %v2049_v7  ;;  %v8075_v11 = vsel %vm7836_vm15, %v6062_v36, %v2053_v34  ;;  %v6166_v47 = vld [vmem:[#allocation2 + $0x20] sm:$0x1] }
  0xcc   : > { %v2784_v45 = vrot.slane %v2782_v39, 5  ;;  %v2789_v54 = vrot.slane %v2787_v3, 4  ;;  %v2792_v58 = vrot.slane %v2790_v21, 5  ;;  %v2811_v34 = vshrl.u32 %v6167_v2, 16  ;;  %v8105_v39 = vld [vmem:[#allocation2 + $0x2c] sm:$0x1] }
  0xcd   : > { %v2814_v7 = vshll.u32 %v6167_v2, 16  ;;  %v2770_v36 = vrot.slane %v2769_v8, 4  ;;  %v2780_v18 = vrot.slane %v2779_v1, 4  ;;  %v2820_v3 = vshll.u32 %v8077_v5, 16 }
  0xce   : > { %6797 = vmatmul.mubr.msk.bf16.gmra.mxu0 %vm1389_vm8, %v6073_v41  ;;  %v8067_v41 = vsel %vm7836_vm15, %v6061_v40, %v2046_v25  ;;  %v8087_v25 = vrot.slane %v2796_v46, 5  ;;  %v2802_v40 = vrot.slane %v2800_v28, 4  ;;  %v2824_v21 = vshrl.u32 %v8077_v5, 16 }
  0xcf   : > { %6800 = vmatprep.mubr.msk.bf16.mxu0 %vm1389_vm8, %v6074_v4  ;;  %v8081_v4 = vsel %vm7836_vm15, %v2055_v19, %v2056_v35  ;;  %v6170_v19 = vld [vmem:[#allocation2 + $0x30] sm:$0xf]  ;;  %v2806_v46 = vshll.u32 %v6166_v47, 16  ;;  %v2813_v28 = vrot.slane %v2811_v34, 4  ;;  %v2816_v35 = vrot.slane %v2814_v7, 5 }
  0xd0   : > { %v6078_v9 = vcombine.low %v8067_v41, %v8071_v10  ;;  %v8107_v8 = vrot.slane %v2820_v3, 5  ;;  %v2826_v1 = vrot.slane %v2824_v21, 4  ;;  %v2803_v14 = vor.u32 %v2802_v40, %v8087_v25  ;;  %v6173_v7 = vld [vmem:[#allocation2 + $0x3c] sm:$0xf]  ;;  %v8131_v21 = vld [vmem:[#allocation2 + $0x40] sm:$0xf] }
  0xd1   : > { %6755 = vmatmul.mubr.msk.bf16.gmra.mxu1 %vm1389_vm8, %v6020_v27  ;;  %v8114_v47 = vsel %vm1438_vm0, %v7964_v59, 0  ;;  %v2835_v34 = vshrl.u32 %v6170_v19, 16  ;;  %v2775_v10 = vsel %vm7439_vm9, %v2770_v36, %v8044_v60  ;;  %v2785_v41 = vsel %vm7439_vm9, %v2780_v18, %v2784_v45  ;;  %v8160_v27 = vld [vmem:[#allocation2 + $0x44] sm:$0x1] }
  0xd2   : > { %6758 = vmatprep.mubr.msk.bf16.mxu1 %vm1389_vm8, %v6021_v16  ;;  %v2793_v16 = vor.u32 %v2792_v58, %v2789_v54  ;;  %v2838_v54 = vshll.u32 %v6170_v19, 16  ;;  %v2844_v58 = vshll.u32 %v8101_v51, 16  ;;  %v8127_v59 = vrot.slane %v2806_v46, 5 }
  0xd3   : > { %v2817_v40 = vor.u32 %v2816_v35, %v2813_v28  ;;  %v2848_v3 = vshrl.u32 %v8101_v51, 16  ;;  %v8137_v45 = vsel %vm1438_vm0, %v7876_v32, 0  ;;  %v2827_v36 = vor.u32 %v2826_v1, %v8107_v8  ;;  %v6176_v28 = vld [vmem:[#allocation2 + $0x48] sm:$0xf] }
  0xd4   : > { %v8133_v60 = vrot.slane %v2793_v16, 4  ;;  %v2859_v53 = vshrl.u32 %v6173_v7, 16  ;;  %v8148_v18 = vrot.slane %v2803_v14, 4  ;;  %v2837_v19 = vrot.slane %v2835_v34, 4  ;;  %v8157_v14 = vld [vmem:[#allocation2 + $0x4c] sm:$0xf] }
  0xd5   : > { %v2862_v46 = vshll.u32 %v6173_v7, 16  ;;  %v10168_v32 = vcombine.low %v8048_v26, %v7931_v38  ;;  %v2840_v35 = vrot.slane %v2838_v54, 5  ;;  %v8154_v16 = vrot.slane %v2844_v58, 5 }
  0xd6   : > { %6801 = vmatmul.mubr.msk.bf16.gmra.mxu0 %vm1389_vm8, %v6075_v20  ;;  %v2830_v20 = vshll.u32 %v8105_v39, 16  ;;  %v2850_v1 = vrot.slane %v2848_v3, 4  ;;  %v2868_v23 = vshll.u32 %v8131_v21, 16  ;;  %v2818_v17 = vrot.slane %v2817_v40, 4 }
  0xd7   : > { %6804 = vmatprep.mubr.msk.bf16.mxu0 %vm1389_vm8, %v6076_v30  ;;  %v8146_v30 = vcombine.low %v2775_v10, %v2785_v41  ;;  %v2861_v10 = vrot.slane %v2859_v53, 4  ;;  %v2864_v41 = vrot.slane %v2862_v46, 5  ;;  %v2828_v34 = vrot.slane %v2827_v36, 4 }
  0xd8   : > { %v2854_v7 = vshll.u32 %v8140_v22, 16  ;;  %v2872_v38 = vshrl.u32 %v8131_v21, 16  ;;  %v2883_v26 = vshrl.u32 %v6176_v28, 16  ;;  %v2799_v54 = vsel %vm7439_vm9, %v8133_v60, %v8087_v25  ;;  %v6179_v25 = vld [vmem:[#allocation2 + $0x54] sm:$0xf] }
  0xd9   : > { %6759 = vmatmul.mubr.msk.bf16.gmra.mxu1 %vm1389_vm8, %v6022_v44  ;;  %v2832_v44 = vrot.slane %v2830_v20, 5  ;;  %v2809_v58 = vsel %vm7439_vm9, %v8148_v18, %v8127_v59  ;;  %v8171_v40 = vrot.slane %v2868_v23, 5  ;;  %v2886_v20 = vshll.u32 %v6176_v28, 16  ;;  %v8196_v23 = vld [vmem:[#allocation2 + $0x50] sm:$0x1] }
  0xda   : > { %6762 = vmatprep.mubr.msk.bf16.mxu1 %vm1389_vm8, %v10168_v32  ;;  %v10169_v3 = vcombine.low %v8001_v12, %v8023_v42  ;;  %v2841_v36 = vor.u32 %v2840_v35, %v2837_v19  ;;  %v2851_v53 = vor.u32 %v2850_v1, %v8154_v16  ;;  %v2874_v46 = vrot.slane %v2872_v38, 4  ;;  %v8185_v42 = vld [vmem:[#allocation2 + $0x58] sm:$0xf]  ;;  %v8204_v38 = vld [vmem:[#allocation2 + $0x5c] sm:$0x1] }
  0xdb   : > { %v2892_v32 = vshll.u32 %v8157_v14, 16  ;;  %v2823_v59 = vsel %vm7439_vm9, %v2818_v17, %v8107_v8  ;;  %v2865_v60 = vor.u32 %v2864_v41, %v2861_v10  ;;  %v2878_v18 = vshll.u32 %v8160_v27, 16 }
  0xdc   : > { %v2896_v12 = vshrl.u32 %v8157_v14, 16  ;;  %v2833_v19 = vsel %vm7439_vm9, %v2828_v34, %v2832_v44  ;;  %v8189_v28 = vrot.slane %v2854_v7, 5  ;;  %v2885_v35 = vrot.slane %v2883_v26, 4 }
  0xdd   : > { %v2888_v1 = vrot.slane %v2886_v20, 5  ;;  %v2875_v8 = vor.u32 %v2874_v46, %v8171_v40  ;;  %v8198_v17 = vrot.slane %v2892_v32, 5  ;;  %v2907_v41 = vshrl.u32 %v6179_v25, 16  ;;  %v6182_v32 = vld [vmem:[#allocation2 + $0x60] sm:$0xf] }
  0xde   : > { %6805 = vmatmul.mubr.msk.bf16.gmra.mxu0 %vm1389_vm8, %v10169_v3  ;;  %v2898_v10 = vrot.slane %v2896_v12, 4  ;;  %v10171_v44 = vcombine.low %v8057_v61, %v7942_v13  ;;  %v2842_v34 = vrot.slane %v2841_v36, 4  ;;  %v2852_v7 = vrot.slane %v2851_v53, 4  ;;  %v8211_v61 = vld [vmem:[#allocation2 + $0x64] sm:$0xf] }
  0xdf   : > { %6808 = vmatprep.mubr.msk.bf16.mxu0 %vm1389_vm8, %v6078_v9  ;;  %v10170_v9 = vcombine.low %v8053_v56, %v7935_v48  ;;  %v2910_v48 = vshll.u32 %v6179_v25, 16  ;;  %v2916_v56 = vshll.u32 %v8185_v42, 16  ;;  %v2866_v26 = vrot.slane %v2865_v60, 4 }
  0xe0   : > { %v2880_v20 = vrot.slane %v2878_v18, 5  ;;  %v2909_v3 = vrot.slane %v2907_v41, 4  ;;  %v2920_v46 = vshrl.u32 %v8185_v42, 16  ;;  %v2889_v12 = vor.u32 %v2888_v1, %v2885_v35 }
  0xe1   : > { %6763 = vmatmul.mubr.msk.bf16.gmra.mxu1 %vm1389_vm8, %v10170_v9  ;;  %v2902_v9 = vshll.u32 %v8196_v23, 16  ;;  %v2912_v2 = vrot.slane %v2910_v48, 5  ;;  %v8209_v13 = vrot.slane %v2916_v56, 5  ;;  %v2876_v36 = vrot.slane %v2875_v8, 4 }
  0xe2   : > { %6766 = vmatprep.mubr.msk.bf16.mxu1 %vm1389_vm8, %v10171_v44  ;;  %v2899_v53 = vor.u32 %v2898_v10, %v8198_v17  ;;  %v2922_v25 = vrot.slane %v2920_v46, 4  ;;  %v2926_v44 = vshll.u32 %v8204_v38, 16  ;;  %v10172_v60 = vcombine.low %v8075_v11, %v8081_v4  ;;  %v6185_v46 = vld [vmem:[#allocation2 + $0x6c] sm:$0xf] }
  0xe3   : > { %v6211_v18 = vcombine.low %v2799_v54, %v2809_v58  ;;  %v6212_v35 = vcombine.low %v2823_v59, %v2833_v19  ;;  %v2913_v1 = vor.u32 %v2912_v2, %v2909_v3  ;;  %v2931_v41 = vshrl.u32 %v6182_v32, 16  ;;  %v8235_v54 = vld [vmem:[#allocation2 + $0x70] sm:$0xf] }
  0xe4   : > { %v2847_v8 = vsel %vm7439_vm9, %v2842_v34, %v8154_v16  ;;  %v2934_v10 = vshll.u32 %v6182_v32, 16  ;;  %v2940_v48 = vshll.u32 %v8211_v61, 16  ;;  %v2944_v56 = vshrl.u32 %v8211_v61, 16 }
  0xe5   : > { %v2857_v11 = vsel %vm7439_vm9, %v2852_v7, %v8189_v28  ;;  %v2871_v4 = vsel %vm7439_vm9, %v2866_v26, %v8171_v40  ;;  %v8232_v2 = vrot.slane %v2902_v9, 5  ;;  %v10173_v16 = vcombine.low %v8095_v33, %v8097_v6  ;;  %v8249_v40 = vld [vmem:[#allocation2 + $0x68] sm:$0x1]  ;;  %v6188_v9 = vld [vmem:[#allocation2 + $0x78] sm:$0xf] }
  0xe6   : > { %6809 = vmatmul.mubr.msk.bf16.gmra.mxu0 %vm1389_vm8, %v10172_v60  ;;  %v2881_v58 = vsel %vm7439_vm9, %v2876_v36, %v2880_v20  ;;  %v8243_v59 = vrot.slane %v2889_v12, 4  ;;  %v8245_v19 = vrot.slane %v2899_v53, 4  ;;  %v8247_v28 = vrot.slane %v2926_v44, 5 }
  0xe7   : > { %6848 = vmatprep.mubr.msk.bf16.mxu0 %vm1389_vm8, %v8146_v30  ;;  %v2923_v30 = vor.u32 %v2922_v25, %v8209_v13  ;;  %v10174_v34 = vcombine.low %v7714_v0, %v7712_v62  ;;  %v8255_v7 = vrot.slane %v2913_v1, 4  ;;  %v2933_v33 = vrot.slane %v2931_v41, 4  ;;  %v8263_v0 = vld [vmem:[#allocation2 + $0x7c] sm:$0xf] }
  0xe8   : > { %v2955_v6 = vshrl.u32 %v6185_v46, 16  ;;  %v2958_v26 = vshll.u32 %v6185_v46, 16  ;;  %v2936_v3 = vrot.slane %v2934_v10, 5  ;;  %v8257_v20 = vrot.slane %v2940_v48, 5  ;;  %v8273_v10 = vld [vmem:[%s10144_s1 + $0x20] sm:$0xf] }
  0xe9   : > { %6767 = vmatmul.mubr.msk.bf16.gmra.mxu1 %vm1389_vm8, %v10173_v16  ;;  %v2946_v32 = vrot.slane %v2944_v56, 4  ;;  %v2964_v12 = vshll.u32 %v8235_v54, 16  ;;  %v8260_v36 = vrot.slane %v2923_v30, 4  ;;  %v2950_v53 = vshll.u32 %v8249_v40, 16  ;;  %v6191_v16 = vld [vmem:[#allocation2 + $0x84] sm:$0xf] }
  0xea   : > { %6770 = vmatprep.mubr.msk.bf16.mxu1 %vm1389_vm8, %v10174_v34  ;;  %v2957_v25 = vrot.slane %v2955_v6, 4  ;;  %v2960_v62 = vrot.slane %v2958_v26, 5  ;;  %v6213_v44 = vcombine.low %v2847_v8, %v2857_v11  ;;  %v6214_v60 = vcombine.low %v2871_v4, %v2881_v58  ;;  %v8285_v4 = vld [vmem:[#allocation2 + $0x74] sm:$0x1] }
  0xeb   : > { %v2895_v1 = vsel %vm7439_vm9, %v8243_v59, %v8198_v17  ;;  %v2968_v41 = vshrl.u32 %v8235_v54, 16  ;;  %v2905_v8 = vsel %vm7439_vm9, %v8245_v19, %v8232_v2  ;;  %v8280_v48 = vrot.slane %v2964_v12, 5  ;;  %v8296_v59 = vld [vmem:[#allocation2 + $0x88] sm:$0xf] }
  0xec   : > { %v2979_v56 = vshrl.u32 %v6188_v9, 16  ;;  %v2982_v46 = vshll.u32 %v6188_v9, 16  ;;  %v2937_v17 = vor.u32 %v2936_v3, %v2933_v33  ;;  %v2947_v11 = vor.u32 %v2946_v32, %v8257_v20  ;;  %v8313_v3 = vld [vmem:[#allocation2 + $0x80] sm:$0x1] }
  0xed   : > { %v2970_v30 = vrot.slane %v2968_v41, 4  ;;  %v2919_v2 = vsel %vm7439_vm9, %v8255_v7, %v8209_v13  ;;  %v2961_v58 = vor.u32 %v2960_v62, %v2957_v25  ;;  %v10175_v19 = vcombine.low %v7731_v29, %v7745_v15  ;;  %v6194_v41 = vld [vmem:[#allocation2 + $0x90] sm:$0xf] }
  0xee   : > { %6849 = vmatmul.mubr.msk.bf16.vlgmr.msra.gmra.mxu0 %vm1389_vm8, %v6211_v18  ;;  %v2988_v18 = vshll.u32 %v8263_v0, 16  ;;  %v2981_v34 = vrot.slane %v2979_v56, 4  ;;  %v2984_v33 = vrot.slane %v2982_v46, 5  ;;  %v2992_v7 = vshrl.u32 %v8263_v0, 16 }
  0xef   : > { %6915 = vmatpush3.bf16.msra.mxu0 %v8137_v45  ;;  %6852 = vmatprep.mubr.msk.bf16.mxu0 %vm1389_vm8, %v6212_v35  ;;  %v2929_v45 = vsel %vm7439_vm9, %v8260_v36, %v8247_v28  ;;  %v2952_v35 = vrot.slane %v2950_v53, 5  ;;  %v10176_v28 = vcombine.low %v7809_v52, %v7820_v55  ;;  %v2971_v6 = vor.u32 %v2970_v30, %v8280_v48  ;;  %v8315_v36 = vld [vmem:[#allocation2 + $0x8c] sm:$0x1] }
  0xf0   : > { %7027 = vmatprep.subr.msk.bf16.mxu0 %vm1438_vm0, %v8273_v10  ;;  %v8304_v13 = vrot.slane %v2988_v18, 5  ;;  %v2974_v26 = vshll.u32 %v8285_v4, 16  ;;  %v3003_v29 = vshrl.u32 %v6191_v16, 16  ;;  %v3006_v15 = vshll.u32 %v6191_v16, 16 }
  0xf1   : > { %6771 = vmatmul.mubr.msk.bf16.gmra.mxu1 %vm1389_vm8, %v10175_v19  ;;  %v2938_v32 = vrot.slane %v2937_v17, 4  ;;  %v2948_v12 = vrot.slane %v2947_v11, 4  ;;  %v2994_v9 = vrot.slane %v2992_v7, 4  ;;  %v3012_v53 = vshll.u32 %v8296_v59, 16  ;;  %v7091_v17 = vld [vmem:[#allocation2 + $0xc] sm:$0xff]  }
  0xf2   : > { %6774 = vmatprep.mubr.msk.bf16.mxu1 %vm1389_vm8, %v10176_v28  ;;  %v2962_v25 = vrot.slane %v2961_v58, 4  ;;  %v3005_v62 = vrot.slane %v3003_v29, 4  ;;  %v3008_v52 = vrot.slane %v3006_v15, 5  ;;  %v3016_v55 = vshrl.u32 %v8296_v59, 16 }
  0xf3   : > { %v2985_v56 = vor.u32 %v2984_v33, %v2981_v34  ;;  %v2995_v46 = vor.u32 %v2994_v9, %v8304_v13  ;;  %v2998_v30 = vshll.u32 %v8313_v3, 16  ;;  %v8321_v18 = vrot.slane %v3012_v53, 5  ;;  %v8326_v34 = vld [vmem:[#allocation2 + $0x94] sm:$0xf]  ;;  %v6197_v9 = vld [vmem:[#allocation2 + $0x9c] sm:$0xf] }
  0xf4   : > { %v2972_v11 = vrot.slane %v2971_v6, 4  ;;  %v2976_v16 = vrot.slane %v2974_v26, 5  ;;  %v3009_v19 = vor.u32 %v3008_v52, %v3005_v62  ;;  %v3018_v7 = vrot.slane %v3016_v55, 4  ;;  %v8350_v62 = vld [vmem:[#allocation2 + $0x98] sm:$0x1] }
  0xf5   : > { %v6215_v58 = vcombine.low %v2895_v1, %v2905_v8  ;;  %v6216_v28 = vcombine.low %v2919_v2, %v2929_v45  ;;  %v3022_v29 = vshll.u32 %v8315_v36, 16  ;;  %v3027_v33 = vshrl.u32 %v6194_v41, 16  ;;  %10179 = vst [vmem:[#allocation10_spill] sm:$0xff] %v8350_v62 }
  0xf6   : > { %6853 = vmatmul.mubr.msk.bf16.gmra.mxu0 %vm1389_vm8, %v6213_v44  ;;  %v2943_v15 = vsel %vm7439_vm9, %v2938_v32, %v8257_v20  ;;  %v2953_v44 = vsel %vm7439_vm9, %v2948_v12, %v2952_v35  ;;  %v3019_v6 = vor.u32 %v3018_v7, %v8321_v18  ;;  %v3030_v26 = vshll.u32 %v6194_v41, 16  ;;  %v8341_v20 = vld [vmem:[#allocation2 + $0xa0] sm:$0xf]  ;;  %v8359_v7 = vld [vmem:[#allocation2 + $0xac] sm:$0xf] }
  0xf7   : > { %6856 = vmatprep.mubr.msk.bf16.mxu0 %vm1389_vm8, %v6214_v60  ;;  %v10177_v60 = vcombine.low %v7849_v63, %v7879_v49  ;;  %v2967_v1 = vsel %vm7439_vm9, %v2962_v25, %v8280_v48  ;;  %v2986_v8 = vrot.slane %v2985_v56, 4  ;;  %v2996_v2 = vrot.slane %v2995_v46, 4  ;;  %10178 = vst [vmem:[#allocation9_spill] sm:$0xff] %v8341_v20  ;;  %v6200_v46 = vld [vmem:[#allocation2 + $0xa8] sm:$0xf]  ;;  %10180 = vst [vmem:[#allocation11_spill] sm:$0xff] %v8359_v7 }
  0xf8   : > { %v3000_v45 = vrot.slane %v2998_v30, 5  ;;  %v2977_v35 = vsel %vm7439_vm9, %v2972_v11, %v2976_v16  ;;  %v3010_v32 = vrot.slane %v3009_v19, 4  ;;  %v3036_v12 = vshll.u32 %v8326_v34, 16  ;;  %v7092_v30 = vld [vmem:[#allocation2 + $0x18] sm:$0xff]  }
  0xf9   : > { %6775 = vmatmul.mubr.msk.bf16.gmra.mxu1 %vm1389_vm8, %v10177_v60  ;;  %v3040_v63 = vshrl.u32 %v8326_v34, 16  ;;  %v8348_v49 = vcombine.low %v2943_v15, %v2953_v44  ;;  %v3024_v53 = vrot.slane %v3022_v29, 5  ;;  %v3029_v48 = vrot.slane %v3027_v33, 4  ;;  %v7093_v29 = vld [vmem:[#allocation2 + $0x24] sm:$0xff]  }
  0xfa   : > { %6814 = vmatprep.mubr.msk.bf16.mxu1 %vm1389_vm8, %v7091_v17  ;;  %v3051_v25 = vshrl.u32 %v6197_v9, 16  ;;  %v3020_v52 = vrot.slane %v3019_v6, 4  ;;  %v3032_v55 = vrot.slane %v3030_v26, 5  ;;  %v3054_v41 = vshll.u32 %v6197_v9, 16 }
  0xfb   : > { %v3060_v56 = vshll.u32 %v8341_v20, 16  ;;  %v6218_v17 = vcombine.low %v2967_v1, %v2977_v35  ;;  %v2991_v11 = vsel %vm7439_vm9, %v2986_v8, %v8304_v13  ;;  %v3001_v16 = vsel %vm7439_vm9, %v2996_v2, %v3000_v45  ;;  %v8369_v13 = vld [vmem:[#allocation2 + $0xa4] sm:$0x1]  ;;  %v6203_v45 = vld [vmem:[#allocation2 + $0xb4] sm:$0xf] }
  0xfc   : > { %v3064_v19 = vshrl.u32 %v8341_v20, 16  ;;  %v3015_v33 = vsel %vm7439_vm9, %v3010_v32, %v8321_v18  ;;  %v8365_v15 = vrot.slane %v3036_v12, 5  ;;  %v3042_v44 = vrot.slane %v3040_v63, 4  ;;  %10181 = vst [vmem:[#allocation12_spill] sm:$0xff] %v8369_v13  ;;  %v8379_v35 = vld [vmem:[%s10144_s1 + $0x1c] sm:$0xf] }
  0xfd   : > { %v3046_v6 = vshll.u32 %v8350_v62, 16  ;;  %v3053_v26 = vrot.slane %v3051_v25, 4  ;;  %v3056_v9 = vrot.slane %v3054_v41, 5  ;;  %v3075_v60 = vshrl.u32 %v6200_v46, 16  ;;  %10182 = vst [vmem:[#allocation13_spill] sm:$0xff] %v8379_v35 }
  0xfe   : > { %6857 = vmatmul.mubr.msk.bf16.gmra.mxu0 %vm1389_vm8, %v6215_v58  ;;  %v3078_v1 = vshll.u32 %v6200_v46, 16  ;;  %v3025_v58 = vsel %vm7439_vm9, %v3020_v52, %v3024_v53  ;;  %v3033_v8 = vor.u32 %v3032_v55, %v3029_v48  ;;  %v8373_v2 = vrot.slane %v3060_v56, 5  ;;  %v8383_v25 = vld [vmem:[#allocation2 + $0xb8] sm:$0xf]  ;;  %v8392_v55 = vld [vmem:[#allocation2 + $0xb0] sm:$0x1] }
  0xff   : > { %6860 = vmatprep.mubr.msk.bf16.mxu0 %vm1389_vm8, %v6216_v28  ;;  %v3084_v18 = vshll.u32 %v8359_v7, 16  ;;  %v3066_v28 = vrot.slane %v3064_v19, 4  ;;  %v3077_v32 = vrot.slane %v3075_v60, 4  ;;  %v3088_v63 = vshrl.u32 %v8359_v7, 16  ;;  %10183 = vst [vmem:[#allocation14_spill] sm:$0xff] %v8383_v25  ;;  %10184 = vst [vmem:[#allocation15_spill] sm:$0xff] %v8392_v55 }
 0x100   : > { %v3080_v12 = vrot.slane %v3078_v1, 5  ;;  %v8387_v53 = vcombine.low %v2991_v11, %v3001_v16  ;;  %v3043_v48 = vor.u32 %v3042_v44, %v8365_v15  ;;  %v8390_v52 = vrot.slane %v3046_v6, 5  ;;  %v360_v44 = vld [vmem:[%s7425_s17 + $0xf0] sm:$0xff]  ;;  %v7095_v7 = vld [vmem:[#allocation2 + $0x3c] sm:$0xff]  }
 0x101   : > { %6815 = vmatmul.mubr.msk.bf16.vlgmr.msra.gmra.mxu1 %vm1389_vm8, %v7092_v30  ;;  %v8394_v41 = vrot.slane %v3084_v18, 5  ;;  %v3057_v56 = vor.u32 %v3056_v9, %v3053_v26  ;;  %v3070_v46 = vshll.u32 %v8369_v13, 16  ;;  %v3090_v30 = vrot.slane %v3088_v63, 4  ;;  %v7094_v6 = vld [vmem:[#allocation2 + $0x30] sm:$0xff]   ;;  %v8404_v18 = vld [vmem:[#allocation2 + $0xbc] sm:$0x1] }
 0x102   : > { %6881 = vmatpush3.bf16.msra.mxu1 %v8114_v47  ;;  %6818 = vmatprep.mubr.msk.bf16.mxu1 %vm1389_vm8, %v7093_v29  ;;  %v3099_v19 = vshrl.u32 %v6203_v45, 16  ;;  %v6220_v47 = vcombine.low %v3015_v33, %v3025_v58  ;;  %v3034_v11 = vrot.slane %v3033_v8, 4  ;;  %v3102_v16 = vshll.u32 %v6203_v45, 16  ;;  %v361_v63 = vld [vmem:[%s7425_s17 + $0xf8] sm:$0xff]  ;;  %s9660_s17 = sand.u32 1, %s7237_s19  }
 0x103   : > { %7026 = vmatprep.subr.msk.bf16.mxu1 %vm1438_vm0, %v8379_v35  ;;  %v3108_v29 = vshll.u32 %v8383_v25, 16  ;;  %v3067_v60 = vor.u32 %v3066_v28, %v8373_v2  ;;  %v3081_v1 = vor.u32 %v3080_v12, %v3077_v32  ;;  %v3091_v26 = vor.u32 %v3090_v30, %v8394_v41  ;;  %s9665_s27 = scalar_lea.vmem [#allocation3], %s9660_s17  ;;  %s9677_s29 = scalar_lea.vmem [#allocation5], %s9660_s17 }
 0x104   : > { %v3094_v9 = vshll.u32 %v8392_v55, 16  ;;  %v3101_v33 = vrot.slane %v3099_v19, 4  ;;  %v3104_v58 = vrot.slane %v3102_v16, 5  ;;  %v3112_v45 = vshrl.u32 %v8383_v25, 16  ;;  %s5785_s14 = sshll.u32 %s9665_s27, 4  ;;  %s5798_s12 = sshll.u32 %s9677_s29, 4  ;;  %s10066_s14 = int_to_ptr.vmem [resolvable:$true] %s5785_s14  ;;  %s10075_s12 = int_to_ptr.vmem [resolvable:$true] %s5798_s12 }
 0x105   : > { %v8409_v8 = vrot.slane %v3108_v29, 5  ;;  %v3044_v28 = vrot.slane %v3043_v48, 4  ;;  %v3058_v32 = vrot.slane %v3057_v56, 4  ;;  %v3072_v12 = vrot.slane %v3070_v46, 5  ;;  %s5765_s8 = scalar_lea.sflag [#allocation4], %s9660_s17  ;;  %s7147_s9 = scalar_lea.vmem %s10066_s14, 16 }
 0x106   : > { %6861 = vmatmul.mubr.msk.bf16.gmra.mxu0 %vm1389_vm8, %v8348_v49  ;;  %v6555_v30 = vpack.c.bf16 %v360_v44, %v360_v44  ;;  %v3105_v35 = vor.u32 %v3104_v58, %v3101_v33  ;;  %v3114_v55 = vrot.slane %v3112_v45, 4  ;;  %v3118_v13 = vshll.u32 %v8404_v18, 16  ;;  %v896_v58 = vld [vmem:[#allocation2 + $0xc8] sm:$0x1]  ;;  %v7097_v45 = vld [vmem:[#allocation2 + $0x54] sm:$0xff]   ;;  %p7148_p12 = scmp.ne.s32.totalorder %s10066_s14, %s7147_s9 }
 0x107   : > { %6864 = vmatprep.mubr.msk.bf16.mxu0 %vm1389_vm8, %v6218_v17  ;;  %v6556_v20 = vpack.c.bf16 %v361_v63, %v361_v63  ;;  %v3068_v49 = vrot.slane %v3067_v60, 4  ;;  %v3082_v19 = vrot.slane %v3081_v1, 4  ;;  %v3092_v25 = vrot.slane %v3091_v26, 4  ;;  %v7096_v26 = vld [vmem:[#allocation2 + $0x48] sm:$0xff]  }
 0x108   : > { %v717_v16 = vshrl.u32 %v6555_v30, 16  ;;  %v720_v29 = vshll.u32 %v6555_v30, 16  ;;  %v3096_v62 = vrot.slane %v3094_v9, 5  ;;  %v3115_v17 = vor.u32 %v3114_v55, %v8409_v8  ;;  %p7149_p13 = pnand %p7148_p12, %p7329_p4 }
 0x109   : > { %6819 = vmatmul.mubr.msk.bf16.gmra.mxu1 %vm1389_vm8, %v7094_v6  ;;  %v725_v48 = vshrl.u32 %v6556_v20, 16  ;;  %v3039_v56 = vsel %vm7439_vm9, %v3034_v11, %v8365_v15  ;;  %v3049_v46 = vsel %vm7439_vm9, %v3044_v28, %v8390_v52  ;;  %v728_v6 = vshll.u32 %v6556_v20, 16 }
 0x10a   : > { %6822 = vmatprep.mubr.msk.bf16.mxu1 %vm1389_vm8, %v7095_v7  ;;  %v719_v44 = vrot.slane %v717_v16, 7  ;;  %v3106_v60 = vrot.slane %v3105_v35, 4  ;;  %v3116_v1 = vrot.slane %v3115_v17, 4  ;;  %v3120_v63 = vrot.slane %v3118_v13, 5  ;;  %v892_v7 = vld [vmem:[#allocation2 + $0xc0] sm:$0xf]  ;;  %p7150_p0 = pneg %p7149_p13 }
 0x10b   : > { %v727_v33 = vrot.slane %v725_v48, 7  ;;  %v3063_v55 = vsel %vm7439_vm9, %v3058_v32, %v8373_v2  ;;  %v3073_v9 = vsel %vm7439_vm9, %v3068_v49, %v3072_v12  ;;  %v3087_v20 = vsel %vm7439_vm9, %v3082_v19, %v8394_v41  ;;  %v6244_v2 = vld [vmem:[#allocation2 + $0x24] sm:$0xe]  ;;  %v6245_v12 = vld [vmem:[#allocation2 + $0x30] sm:$0xe] }
 0x10c   : > { %v722_v15 = vor.u32 %v720_v29, %v719_v44  ;;  %v723_v11 = vrot.slane %v719_v44, 4  ;;  %v3097_v13 = vsel %vm7439_vm9, %v3092_v25, %v3096_v62  ;;  %v6221_v28 = vcombine.low %v3039_v56, %v3049_v46  ;;  %v6247_v46 = vld [vmem:[#allocation2 + $0x48] sm:$0xe] }
 0x10d   : > { %v730_v35 = vor.u32 %v728_v6, %v727_v33  ;;  %v732_v52 = vrot.slane %v727_v33, 4  ;;  %v3121_v41 = vsel %vm7439_vm9, %v3116_v1, %v3120_v63  ;;  %v6222_v37 = vcombine.low %v3063_v55, %v3073_v9  ;;  %v6248_v6 = vld [vmem:[#allocation2 + $0x54] sm:$0xe]  ;;  %v7099_v63 = vld [vmem:[#allocation2 + $0x6c] sm:$0xff]  }
 0x10e   : > { %6865 = vmatmul.mubr.msk.bf16.gmra.mxu0 %vm1389_vm8, %v8387_v53  ;;  %v893_v32 = vsel %vm7452_vm11, %v722_v15, %v892_v7  ;;  %v3111_v53 = vsel %vm7439_vm9, %v3106_v60, %v8409_v8  ;;  %v8448_v30 = vcombine.low %v3087_v20, %v3097_v13  ;;  %v3506_v8 = vrot.slane %v8025_v57, 5  ;;  %v7098_v60 = vld [vmem:[#allocation2 + $0x60] sm:$0xff]   ;;  %v6372_v57 = vld [vmem:[#allocation2 + $0x18] sm:$0xf] }
 0x10f   : > { %6868 = vmatprep.mubr.msk.bf16.mxu0 %vm1389_vm8, %v6220_v47  ;;  %v731_v62 = vsel %vm7445_vm10, %v723_v11, %v730_v35  ;;  %894 = vst [vmem:[#allocation2 + $0xc0] sm:$0xf] %v893_v32  ;;  %v897_v25 = vsel %vm7458_vm12, %v732_v52, %v896_v58  ;;  %v6246_v47 = vld [vmem:[#allocation2 + $0x3c] sm:$0xe]  ;;  %v6260_v49 = vrot.slane %v6244_v2, 9  ;;  %v3520_v31 = vrot.slane %v8077_v5, 5 }
 0x110   : > { %895 = vst.msk [vmem:[#allocation2 + $0xc4] sm:$0xf] %vm274_vm1, %v731_v62  ;;  %898 = vst [vmem:[#allocation2 + $0xc8] sm:$0x1] %v897_v25  ;;  %v3523_v19 = vrot.slane %v8105_v39, 5  ;;  %v6261_v43 = vrot.slane %v6245_v12, 9  ;;  %v8456_v29 = vcombine.low %v3111_v53, %v3121_v41 }
 0x111   : > { %6823 = vmatmul.mubr.msk.bf16.gmra.mxu1 %vm1389_vm8, %v7096_v26  ;;  %v3527_v16 = vrot.slane %v8101_v51, 5  ;;  %v3530_v17 = vrot.slane %v8140_v22, 5  ;;  %v6262_v48 = vrot.slane %v6246_v47, 9  ;;  %v3534_v56 = vrot.slane %v8131_v21, 5  ;;  %v6249_v52 = vld [vmem:[#allocation2 + $0x60] sm:$0xe] }
 0x112   : > { %6826 = vmatprep.mubr.msk.bf16.mxu1 %vm1389_vm8, %v7097_v45  ;;  %v8462_v44 = vsel %vm1438_vm0, %v8273_v10, 0  ;;  %v8466_v5 = vsel %vm7836_vm15, %v6260_v49, %v3520_v31  ;;  %v3522_v39 = vrot.slane %v3520_v31, 4  ;;  %v3537_v10 = vrot.slane %v8160_v27, 5  ;;  %v6250_v53 = vld [vmem:[#allocation2 + $0x6c] sm:$0xe] }
 0x113   : > { %v8470_v51 = vsel %vm7836_vm15, %v6261_v43, %v3527_v16  ;;  %v3529_v22 = vrot.slane %v3527_v16, 4  ;;  %v8474_v21 = vsel %vm7836_vm15, %v6262_v48, %v3534_v56  ;;  %v3536_v1 = vrot.slane %v3534_v56, 4  ;;  %v7100_v56 = vld [vmem:[#allocation2 + $0x78] sm:$0xff]  }
 0x114   : > { %v8480_v33 = vsel %vm7836_vm15, %v3522_v39, %v3523_v19  ;;  %v6263_v7 = vrot.slane %v6247_v46, 9  ;;  %v3541_v26 = vrot.slane %v8157_v14, 5  ;;  %v3544_v55 = vrot.slane %v8196_v23, 5 }
 0x115   : > { %v6277_v15 = vcombine.low %v8466_v5, %v8480_v33  ;;  %v8489_v27 = vsel %vm7836_vm15, %v3529_v22, %v3530_v17  ;;  %v8493_v11 = vsel %vm7836_vm15, %v3536_v1, %v3537_v10  ;;  %v6264_v58 = vrot.slane %v6248_v6, 9 }
 0x116   : > { %6869 = vmatmul.mubr.msk.bf16.gmra.mxu0 %vm1389_vm8, %v6221_v28  ;;  %v6206_v9 = vld [vmem:[#allocation2 + $0xc0] sm:$0xf]  ;;  %v6278_v13 = vcombine.low %v8470_v51, %v8489_v27  ;;  %v6279_v35 = vcombine.low %v8474_v21, %v8493_v11  ;;  %v8509_v12 = vsel %vm7836_vm15, %v6263_v7, %v3541_v26  ;;  %v3543_v25 = vrot.slane %v3541_v26, 4 }
 0x117   : > { %6872 = vmatprep.mubr.msk.bf16.mxu0 %vm1389_vm8, %v6222_v37  ;;  %v8495_v45 = vld [vmem:[#allocation2 + $0xc4] sm:$0xf]  ;;  %v8497_v14 = vld [vmem:[#allocation2 + $0xc8] sm:$0x1]  ;;  %v3123_v23 = vshrl.u32 %v6206_v9, 16  ;;  %v3126_v20 = vshll.u32 %v6206_v9, 16 }
 0x118   : > { %v3132_v2 = vshll.u32 %v8495_v45, 16  ;;  %v3136_v28 = vshrl.u32 %v8495_v45, 16  ;;  %v3142_v32 = vshll.u32 %v8497_v14, 16  ;;  %v3548_v47 = vrot.slane %v8185_v42, 5 }
 0x119   : > { %6827 = vmatmul.mubr.msk.bf16.gmra.mxu1 %vm1389_vm8, %v7098_v60  ;;  %v3125_v41 = vrot.slane %v3123_v23, 4  ;;  %v3128_v62 = vrot.slane %v3126_v20, 5  ;;  %v3551_v19 = vrot.slane %v8204_v38, 5  ;;  %v8516_v16 = vsel %vm7836_vm15, %v3543_v25, %v3544_v55  ;;  %v6251_v60 = vld [vmem:[#allocation2 + $0x78] sm:$0xe]  ;;  %v7101_v38 = vld [vmem:[#allocation2 + $0x84] sm:$0xff]  }
 0x11a   : > { %6830 = vmatprep.mubr.msk.bf16.mxu1 %vm1389_vm8, %v7099_v63  ;;  %v3134_v37 = vrot.slane %v3132_v2, 5  ;;  %v3138_v49 = vrot.slane %v3136_v28, 4  ;;  %v3144_v31 = vrot.slane %v3142_v32, 5  ;;  %v8520_v17 = vsel %vm7836_vm15, %v6264_v58, %v3548_v47  ;;  %v6252_v23 = vld [vmem:[#allocation2 + $0x84] sm:$0xe] }
 0x11b   : > { %v3129_v43 = vor.u32 %v3128_v62, %v3125_v41  ;;  %v3550_v48 = vrot.slane %v3548_v47, 4  ;;  %v6265_v39 = vrot.slane %v6249_v52, 9  ;;  %v3555_v6 = vrot.slane %v8211_v61, 5  ;;  %v6253_v28 = vld [vmem:[#allocation2 + $0x90] sm:$0xe]  ;;  %v7107_v41 = vld [vmem:[#allocation2 + $0x18] sm:$0xff]  }
 0x11c   : > { %v3139_v46 = vor.u32 %v3138_v49, %v3134_v37  ;;  %v3558_v10 = vrot.slane %v8249_v40, 5  ;;  %v6266_v63 = vrot.slane %v6250_v53, 9  ;;  %v3562_v9 = vrot.slane %v8235_v54, 5 }
 0x11d   : > { %v3130_v22 = vrot.slane %v3129_v43, 4  ;;  %v8529_v1 = vsel %vm7836_vm15, %v3550_v48, %v3551_v19  ;;  %v8538_v26 = vsel %vm7836_vm15, %v6265_v39, %v3555_v6  ;;  %v3565_v40 = vrot.slane %v8285_v4, 5  ;;  %v6254_v19 = vld [vmem:[#allocation2 + $0x9c] sm:$0xe]  ;;  %v7102_v43 = vld [vmem:[#allocation2 + $0x90] sm:$0xff]  }
 0x11e   : > { %6873 = vmatmul.mubr.msk.bf16.gmra.mxu0 %vm1389_vm8, %v8448_v30  ;;  %v3140_v7 = vrot.slane %v3139_v46, 4  ;;  %v3557_v30 = vrot.slane %v3555_v6, 4  ;;  %v6267_v58 = vrot.slane %v6251_v60, 9  ;;  %v3569_v52 = vrot.slane %v8263_v0, 5  ;;  %v6255_v39 = vld [vmem:[#allocation2 + $0xa8] sm:$0xe] }
 0x11f   : > { %6876 = vmatprep.mubr.msk.bf16.mxu0 %vm1389_vm8, %v8456_v29  ;;  %v3135_v55 = vsel %vm7439_vm9, %v3130_v22, %v3134_v37  ;;  %v3572_v2 = vrot.slane %v8313_v3, 5  ;;  %v8558_v32 = vsel %vm7836_vm15, %v6266_v63, %v3562_v9  ;;  %v3564_v53 = vrot.slane %v3562_v9, 4  ;;  %v7103_v6 = vld [vmem:[#allocation2 + $0x9c] sm:$0xff]   ;;  %v6378_v48 = vld [vmem:[#allocation2 + $0x30] sm:$0xf] }
 0x120   : > { %v3145_v29 = vsel %vm7439_vm9, %v3140_v7, %v3144_v31  ;;  %v8549_v20 = vsel %vm7836_vm15, %v3557_v30, %v3558_v10  ;;  %v8562_v62 = vsel %vm7836_vm15, %v6267_v58, %v3569_v52  ;;  %v3571_v0 = vrot.slane %v3569_v52, 4  ;;  %v10186_v7 = vld [vmem:[#allocation9_spill] sm:$0xff]  ;;  %v10188_v52 = vld [vmem:[#allocation11_spill] sm:$0xff]  ;;  %v6454_v58 = vld [vmem:[#allocation2 + $0x24] sm:$0xe] }
 0x121   : > { %6831 = vmatmul.mubr.msk.bf16.gmra.mxu1 %vm1389_vm8, %v7100_v56  ;;  %v6225_v54 = vcombine.low %v3135_v55, %v3145_v29  ;;  %v6268_v25 = vrot.slane %v6252_v23, 9  ;;  %v3576_v3 = vrot.slane %v8296_v59, 5  ;;  %v8567_v47 = vsel %vm7836_vm15, %v3564_v53, %v3565_v40  ;;  %v10187_v55 = vld [vmem:[#allocation12_spill] sm:$0xff] }
 0x122   : > { %6834 = vmatprep.mubr.msk.bf16.mxu1 %vm1389_vm8, %v7101_v38  ;;  %v3579_v37 = vrot.slane %v8315_v36, 5  ;;  %v6269_v49 = vrot.slane %v6253_v28, 9  ;;  %v3583_v31 = vrot.slane %v8326_v34, 5  ;;  %v8575_v56 = vsel %vm7836_vm15, %v3571_v0, %v3572_v2  ;;  %v10185_v38 = vld [vmem:[#allocation10_spill] sm:$0xff]  ;;  %v6256_v40 = vld [vmem:[#allocation2 + $0xb4] sm:$0xe] }
 0x123   : > { %v8579_v59 = vsel %vm7836_vm15, %v6268_v25, %v3576_v3  ;;  %v3578_v46 = vrot.slane %v3576_v3, 4  ;;  %v3586_v22 = vrot.slane %v10185_v38, 5  ;;  %v6270_v63 = vrot.slane %v6254_v19, 9  ;;  %v6257_v28 = vld [vmem:[#allocation2 + $0xc0] sm:$0xe]  ;;  %v10189_v0 = vld [vmem:[#allocation15_spill] sm:$0xff] }
 0x124   : > { %v8586_v34 = vsel %vm7836_vm15, %v6269_v49, %v3583_v31  ;;  %v3585_v60 = vrot.slane %v3583_v31, 4  ;;  %v3590_v30 = vrot.slane %v10186_v7, 5  ;;  %v3593_v9 = vrot.slane %v10187_v55, 5  ;;  %v7108_v3 = vld [vmem:[#allocation2 + $0x24] sm:$0xff]  }
 0x125   : > { %v8592_v10 = vsel %vm7836_vm15, %v3578_v46, %v3579_v37  ;;  %v6271_v29 = vrot.slane %v6255_v39, 9  ;;  %v3597_v2 = vrot.slane %v10188_v52, 5  ;;  %v3600_v25 = vrot.slane %v10189_v0, 5  ;;  %v10190_v19 = vld [vmem:[#allocation14_spill] sm:$0xff]  ;;  %v6242_v46 = vld [vmem:[#allocation2 + $0xc] sm:$0xe] }
 0x126   : > { %6877 = vmatmul.mubr.msk.bf16.gmra.mxu0 %vm1389_vm8, %v6225_v54  ;;  %v8600_v23 = vsel %vm7836_vm15, %v3585_v60, %v3586_v22  ;;  %v8608_v53 = vsel %vm7836_vm15, %v6270_v63, %v3590_v30  ;;  %v6272_v31 = vrot.slane %v6256_v40, 9  ;;  %v7109_v39 = vld [vmem:[#allocation2 + $0x30] sm:$0xff]   ;;  %v3607_v38 = vrot.slane %v8404_v18, 5  ;;  %v7104_v40 = vld [vmem:[#allocation2 + $0xa8] sm:$0xff]  }
 0x127   : > { %6916 = vmatprep.mubr.msk.bf16.mxu0 %vm1389_vm8, %v7107_v41  ;;  %v3592_v41 = vrot.slane %v3590_v30, 4  ;;  %v8614_v37 = vsel %vm7836_vm15, %v6271_v29, %v3597_v2  ;;  %v3599_v49 = vrot.slane %v3597_v2, 4  ;;  %v6273_v22 = vrot.slane %v6257_v28, 9  ;;  %v7105_v52 = vld [vmem:[#allocation2 + $0xb4] sm:$0xff]  }
 0x128   : > { %v3614_v29 = vrot.slane %v8497_v14, 5  ;;  %v6258_v2 = vrot.slane %v6242_v46, 9  ;;  %v7144_v0 = vld [vmem:[#allocation2 + $0x14] sm:$0x1] }
 0x129   : > { %6835 = vmatmul.mubr.msk.bf16.gmra.mxu1 %vm1389_vm8, %v7102_v43  ;;  %v3604_v43 = vrot.slane %v10190_v19, 5  ;;  %v8619_v60 = vsel %vm7836_vm15, %v3592_v41, %v3593_v9  ;;  %v8627_v7 = vsel %vm7836_vm15, %v3599_v49, %v3600_v25  ;;  %v3508_v41 = vrot.slane %v3506_v8, 4  ;;  %v6376_v9 = vld [vmem:[#allocation2 + $0x28] sm:$0xf] }
 0x12a   : > { %6838 = vmatprep.mubr.msk.bf16.mxu1 %vm1389_vm8, %v7103_v6  ;;  %v3611_v6 = vrot.slane %v8495_v45, 5  ;;  %v3509_v25 = vrot.slane %v7144_v0, 5 }
 0x12b   : > { %v8631_v30 = vsel %vm7836_vm15, %v6272_v31, %v3604_v43  ;;  %v3606_v55 = vrot.slane %v3604_v43, 4  ;;  %v7145_v31 = vld [vmem:[#allocation2 + $0x1c] sm:$0xf] }
 0x12c   : > { %v8637_v18 = vsel %vm7836_vm15, %v6273_v22, %v3611_v6  ;;  %v3613_v45 = vrot.slane %v3611_v6, 4  ;;  %v3513_v19 = vrot.slane %v7145_v31, 5  ;;  %v7110_v43 = vld [vmem:[#allocation2 + $0x3c] sm:$0xff]   ;;  %v3510_v46 = vsel %vm7836_vm15, %v3508_v41, %v3509_v25  ;;  %v7112_v41 = vld [vmem:[#allocation2 + $0x54] sm:$0xff]  }
 0x12d   : > { %v8643_v28 = vsel %vm7836_vm15, %v3606_v55, %v3607_v38  ;;  %v7111_v38 = vld [vmem:[#allocation2 + $0x48] sm:$0xff]   ;;  %v7106_v22 = vld [vmem:[#allocation2 + $0xc0] sm:$0xff]   ;;  %v6373_v31 = vld [vmem:[#allocation2 + $0x1c] sm:$0xf] }
 0x12e   : > { %6917 = vmatmul.mubr.msk.bf16.vlgmr.msra.gmra.mxu0 %vm1389_vm8, %v7108_v3  ;;  %v8653_v49 = vsel %vm7836_vm15, %v3613_v45, %v3614_v29  ;;  %v3515_v45 = vrot.slane %v3513_v19, 4  ;;  %v7113_v25 = vld [vmem:[#allocation2 + $0x60] sm:$0xff]   ;;  %v4334_v14 = vshrl.u32 %v6373_v31, 16 }
 0x12f   : > { %6983 = vmatpush3.bf16.msra.mxu0 %v8462_v44  ;;  %6920 = vmatprep.mubr.msk.bf16.mxu0 %vm1389_vm8, %v7109_v39  ;;  %v3507_v44 = vsel %vm7836_vm15, %v6258_v2, %v3506_v8  ;;  %v6243_v39 = vld [vmem:[#allocation2 + $0x18] sm:$0xe] }
 0x130   : > { %v6275_v6 = vcombine.low %v3507_v44, %v3510_v46  ;;  %v6259_v55 = vrot.slane %v6243_v39, 9  ;;  %v4324_v44 = vshll.u32 %v6372_v57, 16 }
 0x131   : > { %6839 = vmatmul.mubr.msk.bf16.gmra.mxu1 %vm1389_vm8, %v7104_v40  ;;  %v7146_v40 = vld [vmem:[#allocation2 + $0x20] sm:$0x1] }
 0x132   : > { %6842 = vmatprep.mubr.msk.bf16.mxu1 %vm1389_vm8, %v7105_v52  ;;  %v3516_v29 = vrot.slane %v7146_v40, 5  ;;  %v8666_v52 = vpop.f32.mrf.mxu0  ;;  %v3514_v8 = vsel %vm7836_vm15, %v6259_v55, %v3513_v19  ;;  %v6375_v40 = vld [vmem:[#allocation2 + $0x24] sm:$0xf]  ;;  %v10191_v19 = vld [vmem:[#allocation13_spill] sm:$0xff]  ;;  %v4326_v3 = vrot.slane %v4324_v44, 5  ;;  %v5071_v44 = vrot.slane %v6376_v9, 5 }
 0x133   : > { %v4803_v55 = vsel %vm1438_vm0, %v10191_v19, 0 }
 0x134   : > { %v3517_v2 = vsel %vm7836_vm15, %v3515_v45, %v3516_v29  ;;  %v8675_v0 = vpop.f32.mrf.mxu0  ;;  %v6374_v45 = vld [vmem:[#allocation2 + $0x20] sm:$0x1] }
 0x135   : > { %v6276_v46 = vcombine.low %v3514_v8, %v3517_v2  ;;  %v4345_v2 = vshrl.u32 %v6375_v40, 16  ;;  %v5067_v63 = vrot.slane %v6374_v45, 5  ;;  %v4340_v33 = vshll.u32 %v6374_v45, 16 }
 0x136   : > { %6921 = vmatmul.mubr.msk.bf16.gmra.mxu0 %vm1389_vm8, %v7110_v43  ;;  %v4321_v43 = vshrl.u32 %v6372_v57, 16  ;;  %v8678_v39 = vpop.f32.mrf.mxu0  ;;  %v7114_v57 = vld [vmem:[#allocation2 + $0x6c] sm:$0xff]  }
 0x137   : > { %6924 = vmatprep.mubr.msk.bf16.mxu0 %vm1389_vm8, %v7111_v38  ;;  %v6453_v38 = vld [vmem:[#allocation2 + $0x18] sm:$0xe] }
 0x138   : > { %v4323_v29 = vrot.slane %v4321_v43, 4  ;;  %v6469_v8 = vrot.slane %v6453_v38, 9  ;;  %v8688_v19 = vpop.f32.mrf.mxu0  ;;  %v4336_v38 = vrot.slane %v4334_v14, 4  ;;  %v6470_v14 = vrot.slane %v6454_v58, 9  ;;  %v7116_v58 = vld [vmem:[#allocation2 + $0x84] sm:$0xff]  }
 0x139   : > { %6843 = vmatmul.mubr.msk.bf16.gmra.mxu1 %vm1389_vm8, %v7106_v22  ;;  %v5064_v22 = vrot.slane %v6373_v31, 5  ;;  %10192 = vst [vmem:[#allocation10_spill] sm:$0xff] %v8688_v19 }
 0x13a   : > { %6882 = vmatprep.mubr.msk.bf16.mxu1 %vm1389_vm8, %v6275_v6  ;;  %v4330_v6 = vshll.u32 %v6373_v31, 16  ;;  %v8692_v31 = vld [vmem:[#allocation2 + $0x2c] sm:$0x1]  ;;  %v4327_v54 = vor.u32 %v4326_v3, %v4323_v29  ;;  %v5073_v3 = vrot.slane %v5071_v44, 4  ;;  %v8730_v51 = vsel %vm7836_vm15, %v6470_v14, %v5071_v44  ;;  %v8742_v44 = vld [vmem:[#allocation2 + $0x40] sm:$0xf] }
 0x13b   : > { %v8696_v5 = vsel %vm7836_vm15, %v6469_v8, %v5064_v22 }
 0x13c   : > { %v8690_v43 = vrot.slane %v4330_v6, 5  ;;  %v8699_v6 = vpop.f32.mrf.mxu0 }
 0x13d   : > { %10193 = vst [vmem:[#allocation9_spill] sm:$0xff] %v8699_v6  ;;  %v6384_v6 = vld [vmem:[#allocation2 + $0x48] sm:$0xf] }
 0x13e   : > { %6925 = vmatmul.mubr.msk.bf16.gmra.mxu0 %vm1389_vm8, %v7112_v41  ;;  %v4348_v41 = vshll.u32 %v6375_v40, 16  ;;  %v4354_v40 = vshll.u32 %v6376_v9, 16  ;;  %v4337_v45 = vor.u32 %v4336_v38, %v8690_v43  ;;  %v8726_v38 = vrot.slane %v4340_v33, 5  ;;  %v6380_v33 = vld [vmem:[#allocation2 + $0x38] sm:$0x1] }
 0x13f   : > { %6928 = vmatprep.mubr.msk.bf16.mxu0 %vm1389_vm8, %v7113_v25  ;;  %v5066_v25 = vrot.slane %v5064_v22, 4  ;;  %v8707_v22 = vrot.slane %v4327_v54, 4 }
 0x140   : > { %v4350_v36 = vrot.slane %v4348_v41, 5  ;;  %v8710_v29 = vrot.slane %v4354_v40, 5  ;;  %v7117_v41 = vld [vmem:[#allocation2 + $0x90] sm:$0xff]   ;;  %v6381_v40 = vld [vmem:[#allocation2 + $0x3c] sm:$0xf]  ;;  %v4338_v11 = vrot.slane %v4337_v45, 4 }
 0x141   : > { %6883 = vmatmul.mubr.msk.bf16.vlgmr.msra.gmra.mxu1 %vm1389_vm8, %v6276_v46  ;;  %v7115_v46 = vld [vmem:[#allocation2 + $0x78] sm:$0xff]   ;;  %v8703_v4 = vsel %vm7836_vm15, %v5066_v25, %v5067_v63  ;;  %v8716_v63 = vpop.f32.mrf.mxu1  ;;  %v4333_v21 = vsel %vm7439_vm9, %v8707_v22, %v8690_v43  ;;  %v5081_v45 = vrot.slane %v6380_v33, 5 }
 0x142   : > { %6949 = vmatpush3.bf16.msra.mxu1 %v4803_v55  ;;  %6886 = vmatprep.mubr.msk.bf16.mxu1 %vm1389_vm8, %v6277_v15  ;;  %v4358_v55 = vshrl.u32 %v6376_v9, 16  ;;  %v4347_v15 = vrot.slane %v4345_v2, 4  ;;  %v5074_v9 = vrot.slane %v8692_v31, 5  ;;  %v4372_v2 = vshll.u32 %v6378_v48, 16  ;;  %10194 = vst [vmem:[#allocation12_spill] sm:$0xff] %v8716_v63 }
 0x143   : > { %v8744_v54 = vpop.f32.mrf.mxu1  ;;  %v4393_v63 = vshrl.u32 %v6381_v40, 16 }
 0x144   : > { %v4360_v8 = vrot.slane %v4358_v55, 4  ;;  %v4351_v25 = vor.u32 %v4350_v36, %v4347_v15  ;;  %v8734_v27 = vsel %vm7836_vm15, %v5073_v3, %v5074_v9  ;;  %v4364_v55 = vshll.u32 %v8692_v31, 16  ;;  %10196 = vst [vmem:[#allocation15_spill] sm:$0xff] %v8744_v54 }
 0x145   : > { %v4374_v14 = vrot.slane %v4372_v2, 5  ;;  %v4402_v31 = vshll.u32 %v8742_v44, 16  ;;  %v8764_v19 = vpop.f32.mrf.mxu1  ;;  %v6385_v2 = vld [vmem:[#allocation2 + $0x4c] sm:$0xf] }
 0x146   : > { %6929 = vmatmul.mubr.msk.bf16.gmra.mxu0 %vm1389_vm8, %v7114_v57  ;;  %v4369_v57 = vshrl.u32 %v6378_v48, 16  ;;  %v8724_v48 = vpop.f32.mrf.mxu0  ;;  %v4352_v61 = vrot.slane %v4351_v25, 4  ;;  %10199 = vst [vmem:[#allocation13_spill] sm:$0xff] %v8764_v19 }
 0x147   : > { %6932 = vmatprep.mubr.msk.bf16.mxu0 %vm1389_vm8, %v7115_v46  ;;  %v6379_v46 = vld [vmem:[#allocation2 + $0x34] sm:$0xf]  ;;  %10195 = vst [vmem:[#allocation11_spill] sm:$0xff] %v8724_v48  ;;  %v4396_v48 = vshll.u32 %v6381_v40, 16 }
 0x148   : > { %v5078_v36 = vrot.slane %v6379_v46, 5  ;;  %v4371_v15 = vrot.slane %v4369_v57, 4  ;;  %v4378_v3 = vshll.u32 %v6379_v46, 16  ;;  %v4382_v9 = vshrl.u32 %v6379_v46, 16  ;;  %v8747_v43 = vpop.f32.mrf.mxu0 }
 0x149   : > { %6887 = vmatmul.mubr.msk.bf16.gmra.mxu1 %vm1389_vm8, %v6278_v13  ;;  %v6455_v13 = vld [vmem:[#allocation2 + $0x30] sm:$0xe]  ;;  %10197 = vst [vmem:[#allocation14_spill] sm:$0xff] %v8747_v43  ;;  %v4343_v57 = vsel %vm7439_vm9, %v4338_v11, %v8726_v38  ;;  %v4366_v46 = vrot.slane %v4364_v55, 5  ;;  %v5085_v43 = vrot.slane %v8742_v44, 5  ;;  %v4357_v38 = vsel %vm7439_vm9, %v4352_v61, %v8710_v29 }
 0x14a   : > { %6890 = vmatprep.mubr.msk.bf16.mxu1 %vm1389_vm8, %v6279_v35  ;;  %v4361_v35 = vor.u32 %v4360_v8, %v8710_v29  ;;  %v6471_v42 = vrot.slane %v6455_v13, 9  ;;  %v5080_v22 = vrot.slane %v5078_v36, 4  ;;  %v4406_v8 = vshrl.u32 %v8742_v44, 16 }
 0x14b   : > { %v4375_v13 = vor.u32 %v4374_v14, %v4371_v15  ;;  %v8757_v40 = vrot.slane %v4378_v3, 5  ;;  %v4384_v54 = vrot.slane %v4382_v9, 4  ;;  %v4395_v55 = vrot.slane %v4393_v63, 4 }
 0x14c   : > { %v4362_v25 = vrot.slane %v4361_v35, 4  ;;  %v8771_v11 = vsel %vm7836_vm15, %v6471_v42, %v5078_v36  ;;  %v6383_v35 = vld [vmem:[#allocation2 + $0x44] sm:$0x1]  ;;  %v4398_v15 = vrot.slane %v4396_v48, 5  ;;  %v10200_v44 = vcombine.low %v8520_v17, %v8529_v1  ;;  %v7119_v36 = vld [vmem:[#allocation2 + $0xa8] sm:$0xff]  }
 0x14d   : > { %v8781_v14 = vsel %vm7836_vm15, %v5080_v22, %v5081_v45  ;;  %v4388_v61 = vshll.u32 %v6380_v33, 16  ;;  %v8783_v29 = vrot.slane %v4402_v31, 5  ;;  %v4408_v42 = vrot.slane %v4406_v8, 4  ;;  %v8790_v22 = vpop.f32.mrf.mxu1 }
 0x14e   : > { %6933 = vmatmul.mubr.msk.bf16.gmra.mxu0 %vm1389_vm8, %v7116_v58  ;;  %v6456_v58 = vld [vmem:[#allocation2 + $0x3c] sm:$0xe]  ;;  %v4367_v63 = vsel %vm7439_vm9, %v4362_v25, %v4366_v46  ;;  %v4417_v3 = vshrl.u32 %v6384_v6, 16  ;;  %v4420_v17 = vshll.u32 %v6384_v6, 16  ;;  %v8787_v1 = vrot.slane %v4375_v13, 4  ;;  %10201 = vst [vmem:[#allocation16_spill] sm:$0xff] %v8790_v22 }
 0x14f   : > { %6936 = vmatprep.mubr.msk.bf16.mxu0 %vm1389_vm8, %v7117_v41  ;;  %v10198_v41 = vcombine.low %v8509_v12, %v8516_v16  ;;  %v7118_v12 = vld [vmem:[#allocation2 + $0x9c] sm:$0xff]   ;;  %v8777_v16 = vpop.f32.mrf.mxu0  ;;  %v6472_v48 = vrot.slane %v6456_v58, 9  ;;  %v4385_v9 = vor.u32 %v4384_v54, %v8757_v40  ;;  %v8792_v33 = vcombine.low %v4333_v21, %v4343_v57  ;;  %v8802_v13 = vld [vmem:[#allocation2 + $0x50] sm:$0x1]  ;;  %v6457_v22 = vld [vmem:[#allocation2 + $0x48] sm:$0xe] }
 0x150   : > { %v4399_v31 = vor.u32 %v4398_v15, %v4395_v55  ;;  %v5092_v8 = vrot.slane %v6385_v2, 5  ;;  %v8799_v6 = vcombine.low %v4357_v38, %v4367_v63  ;;  %v4390_v46 = vrot.slane %v4388_v61, 5  ;;  %v6387_v15 = vld [vmem:[#allocation2 + $0x54] sm:$0xf] }
 0x151   : > { %6891 = vmatmul.mubr.msk.bf16.gmra.mxu1 %vm1389_vm8, %v10198_v41  ;;  %v5087_v41 = vrot.slane %v5085_v43, 4  ;;  %v8797_v25 = vpop.f32.mrf.mxu0  ;;  %v4409_v54 = vor.u32 %v4408_v42, %v8783_v29  ;;  %v4412_v58 = vshll.u32 %v6383_v35, 16  ;;  %v4419_v21 = vrot.slane %v4417_v3, 4 }
 0x152   : > { %6894 = vmatprep.mubr.msk.bf16.mxu1 %vm1389_vm8, %v10200_v44  ;;  %v5088_v44 = vrot.slane %v6383_v35, 5  ;;  %10202 = vst [vmem:[#allocation17_spill] sm:$0xff] %v8797_v25  ;;  %v4422_v57 = vrot.slane %v4420_v17, 5  ;;  %v4426_v45 = vshll.u32 %v6385_v2, 16  ;;  %v4430_v55 = vshrl.u32 %v6385_v2, 16  ;;  %v8821_v2 = vpop.f32.mrf.mxu1 }
 0x153   : > { %v4381_v38 = vsel %vm7439_vm9, %v8787_v1, %v8757_v40  ;;  %v8811_v61 = vsel %vm7836_vm15, %v6472_v48, %v5085_v43  ;;  %v10203_v42 = vcombine.low %v8538_v26, %v8549_v20  ;;  %10204 = vst [vmem:[#allocation18_spill] sm:$0xff] %v8821_v2  ;;  %v6473_v63 = vrot.slane %v6457_v22, 9  ;;  %v6388_v17 = vld [vmem:[#allocation2 + $0x58] sm:$0xf]  ;;  %v8828_v1 = vpop.f32.mrf.mxu0  ;;  %v6458_v2 = vld [vmem:[#allocation2 + $0x54] sm:$0xe] }
 0x154   : > { %v8815_v35 = vsel %vm7836_vm15, %v5087_v41, %v5088_v44  ;;  %v5094_v3 = vrot.slane %v5092_v8, 4  ;;  %v5095_v40 = vrot.slane %v8802_v13, 5  ;;  %v10205_v43 = vcombine.low %v8558_v32, %v8567_v47  ;;  %v7120_v48 = vld [vmem:[#allocation2 + $0xb4] sm:$0xff]   ;;  %10206 = vst [vmem:[#allocation19_spill] sm:$0xff] %v8828_v1  ;;  %v7121_v44 = vld [vmem:[#allocation2 + $0xc0] sm:$0xff]  }
 0x155   : > { %v4414_v26 = vrot.slane %v4412_v58, 5  ;;  %v4441_v20 = vshrl.u32 %v6387_v15, 16  ;;  %v4444_v41 = vshll.u32 %v6387_v15, 16  ;;  %v4432_v22 = vrot.slane %v4430_v55, 4  ;;  %v8836_v47 = vld [vmem:[#allocation2 + $0x5c] sm:$0x1]  ;;  %v8838_v58 = vpop.f32.mrf.mxu1  ;;  %v8855_v15 = vpop.f32.mrf.mxu0 }
 0x156   : > { %6937 = vmatmul.mubr.msk.bf16.gmra.mxu0 %vm1389_vm8, %v7118_v12  ;;  %v4386_v12 = vrot.slane %v4385_v9, 4  ;;  %v4410_v9 = vrot.slane %v4409_v54, 4  ;;  %v5099_v19 = vrot.slane %v6388_v17, 5  ;;  %v4454_v54 = vshrl.u32 %v6388_v17, 16  ;;  %10207 = vst [vmem:[#allocation20_spill] sm:$0xff] %v8838_v58  ;;  %10208 = vst [vmem:[#allocation21_spill] sm:$0xff] %v8855_v15 }
 0x157   : > { %6940 = vmatprep.mubr.msk.bf16.mxu0 %vm1389_vm8, %v7119_v36  ;;  %v4400_v36 = vrot.slane %v4399_v31, 4  ;;  %v8830_v31 = vrot.slane %v4426_v45, 5  ;;  %v8852_v55 = vld [vmem:[#allocation2 + $0x64] sm:$0xf] }
 0x158   : > { %v4391_v25 = vsel %vm7439_vm9, %v4386_v12, %v4390_v46  ;;  %v8849_v46 = vsel %vm7836_vm15, %v5094_v3, %v5095_v40  ;;  %v4415_v12 = vsel %vm7439_vm9, %v4410_v9, %v4414_v26  ;;  %v5102_v40 = vrot.slane %v8836_v47, 5  ;;  %v8874_v26 = vpop.f32.mrf.mxu1 }
 0x159   : > { %6895 = vmatmul.mubr.msk.bf16.gmra.mxu1 %vm1389_vm8, %v10203_v42  ;;  %v4423_v42 = vor.u32 %v4422_v57, %v4419_v21  ;;  %v4405_v45 = vsel %vm7439_vm9, %v4400_v36, %v8783_v29  ;;  %v8845_v21 = vsel %vm7836_vm15, %v6473_v63, %v5092_v8  ;;  %v4436_v57 = vshll.u32 %v8802_v13, 16  ;;  %v6390_v8 = vld [vmem:[#allocation2 + $0x60] sm:$0xf]  ;;  %10210 = vst [vmem:[#allocation22_spill] sm:$0xff] %v8874_v26 }
 0x15a   : > { %6898 = vmatprep.mubr.msk.bf16.mxu1 %vm1389_vm8, %v10205_v43  ;;  %v4450_v43 = vshll.u32 %v6388_v17, 16  ;;  %v6474_v29 = vrot.slane %v6458_v2, 9  ;;  %v4443_v36 = vrot.slane %v4441_v20, 4  ;;  %v4446_v17 = vrot.slane %v4444_v41, 5 }
 0x15b   : > { %v8860_v63 = vrot.slane %v4423_v42, 4  ;;  %v4433_v3 = vor.u32 %v4432_v22, %v8830_v31  ;;  %v5101_v13 = vrot.slane %v5099_v19, 4  ;;  %v8864_v32 = vcombine.low %v4381_v38, %v4391_v25  ;;  %v6393_v38 = vld [vmem:[#allocation2 + $0x6c] sm:$0xf]  ;;  %v8882_v22 = vpop.f32.mrf.mxu0 }
 0x15c   : > { %v8868_v58 = vrot.slane %v4450_v43, 5  ;;  %v4456_v2 = vrot.slane %v4454_v54, 4  ;;  %v10209_v9 = vcombine.low %v8562_v62, %v8575_v56  ;;  %v4465_v20 = vshrl.u32 %v6390_v8, 16  ;;  %10212 = vst [vmem:[#allocation23_spill] sm:$0xff] %v8882_v22  ;;  %v7122_v43 = vld [vmem:[#allocation2 + $0xcc] sm:$0xff]  }
 0x15d   : > { %v4468_v41 = vshll.u32 %v6390_v8, 16  ;;  %v4478_v25 = vshrl.u32 %v8852_v55, 16  ;;  %v10211_v42 = vcombine.low %v8579_v59, %v8592_v10  ;;  %v8884_v62 = vcombine.low %v4405_v45, %v4415_v12  ;;  %v6459_v45 = vld [vmem:[#allocation2 + $0x60] sm:$0xe]  ;;  %v8903_v12 = vld [vmem:[#allocation2 + $0x70] sm:$0xf] }
 0x15e   : > { %6941 = vmatmul.mubr.msk.bf16.gmra.mxu0 %vm1389_vm8, %v7120_v48  ;;  %v8886_v56 = vrot.slane %v4436_v57, 5  ;;  %v8890_v54 = vsel %vm7836_vm15, %v6474_v29, %v5099_v19  ;;  %v4447_v8 = vor.u32 %v4446_v17, %v4443_v36  ;;  %v8896_v59 = vrot.slane %v4433_v3, 4  ;;  %v6392_v36 = vld [vmem:[#allocation2 + $0x68] sm:$0x1]  ;;  %v8907_v48 = vpop.f32.mrf.mxu1 }
 0x15f   : > { %6944 = vmatprep.mubr.msk.bf16.mxu0 %vm1389_vm8, %v7121_v44  ;;  %v4474_v44 = vshll.u32 %v8852_v55, 16  ;;  %v8900_v10 = vsel %vm7836_vm15, %v5101_v13, %v5102_v40  ;;  %v5106_v57 = vrot.slane %v8852_v55, 5  ;;  %v4457_v19 = vor.u32 %v4456_v2, %v8868_v58  ;;  %10213 = vst [vmem:[#allocation24_spill] sm:$0xff] %v8907_v48  ;;  %v6460_v48 = vld [vmem:[#allocation2 + $0x6c] sm:$0xe] }
 0x160   : > { %v4460_v29 = vshll.u32 %v8836_v47, 16  ;;  %v4489_v17 = vshrl.u32 %v6393_v38, 16  ;;  %v4467_v3 = vrot.slane %v4465_v20, 4  ;;  %v4480_v13 = vrot.slane %v4478_v25, 4 }
 0x161   : > { %6899 = vmatmul.mubr.msk.bf16.gmra.mxu1 %vm1389_vm8, %v10209_v9  ;;  %v4470_v9 = vrot.slane %v4468_v41, 5  ;;  %v8909_v26 = vrot.slane %v4474_v44, 5  ;;  %v8914_v55 = vrot.slane %v4447_v8, 4  ;;  %v6475_v22 = vrot.slane %v6459_v45, 9 }
 0x162   : > { %6902 = vmatprep.mubr.msk.bf16.mxu1 %vm1389_vm8, %v10211_v42  ;;  %v4492_v42 = vshll.u32 %v6393_v38, 16  ;;  %v4498_v2 = vshll.u32 %v8903_v12, 16  ;;  %v4502_v47 = vshrl.u32 %v8903_v12, 16  ;;  %v10215_v38 = vcombine.low %v8696_v5, %v8703_v4 }
 0x163   : > { %v4439_v20 = vsel %vm7439_vm9, %v8896_v59, %v8886_v56  ;;  %v5108_v44 = vrot.slane %v5106_v57, 4  ;;  %v5109_v25 = vrot.slane %v6392_v36, 5  ;;  %v8932_v45 = vrot.slane %v4460_v29, 5  ;;  %v8939_v56 = vpop.f32.mrf.mxu1 }
 0x164   : > { %v5113_v4 = vrot.slane %v8903_v12, 5  ;;  %v4491_v5 = vrot.slane %v4489_v17, 4  ;;  %10218 = vst [vmem:[#allocation27_spill] sm:$0xff] %v8939_v56  ;;  %v4458_v59 = vrot.slane %v4457_v19, 4  ;;  %v4471_v41 = vor.u32 %v4470_v9, %v4467_v3 }
 0x165   : > { %v8911_v40 = vpop.f32.mrf.mxu0  ;;  %v4481_v15 = vor.u32 %v4480_v13, %v8909_v26  ;;  %v4484_v1 = vshll.u32 %v6392_v36, 16  ;;  %v10219_v29 = vcombine.low %v8608_v53, %v8619_v60  ;;  %v8956_v9 = vrot.slane %v4498_v2, 5  ;;  %v6397_v36 = vld [vmem:[#allocation2 + $0x7c] sm:$0xf]  ;;  %v8967_v2 = vpop.f32.mrf.mxu1 }
 0x166   : > { %10214 = vst [vmem:[#allocation25_spill] sm:$0xff] %v8911_v40  ;;  %6945 = vmatmul.mubr.msk.bf16.gmra.mxu0 %vm1389_vm8, %v7122_v43  ;;  %v8928_v43 = vld [vmem:[#allocation2 + $0x74] sm:$0x1]  ;;  %v10217_v40 = vcombine.low %v8586_v34, %v8600_v23  ;;  %v4453_v34 = vsel %vm7439_vm9, %v8914_v55, %v8868_v58  ;;  %v8954_v23 = vsel %vm7836_vm15, %v6475_v22, %v5106_v57  ;;  %v4504_v19 = vrot.slane %v4502_v47, 4  ;;  %v6461_v22 = vld [vmem:[#allocation2 + $0x78] sm:$0xe] }
 0x167   : > { %6984 = vmatprep.mubr.msk.bf16.mxu0 %vm1389_vm8, %v10215_v38  ;;  %v8930_v8 = vpop.f32.mrf.mxu0  ;;  %v4494_v38 = vrot.slane %v4492_v42, 5  ;;  %v8960_v53 = vsel %vm7836_vm15, %v5108_v44, %v5109_v25  ;;  %v6476_v60 = vrot.slane %v6460_v48, 9  ;;  %v5116_v17 = vrot.slane %v8928_v43, 5  ;;  %v8963_v42 = vld [vmem:[#allocation2 + $0x80] sm:$0x1]  ;;  %10222 = vst [vmem:[#allocation30_spill] sm:$0xff] %v8967_v2 }
 0x168   : > { %10216 = vst [vmem:[#allocation26_spill] sm:$0xff] %v8930_v8  ;;  %v6396_v8 = vld [vmem:[#allocation2 + $0x78] sm:$0xf]  ;;  %v5120_v3 = vrot.slane %v6397_v36, 5  ;;  %v5115_v58 = vrot.slane %v5113_v4, 4  ;;  %v4463_v47 = vsel %vm7439_vm9, %v4458_v59, %v8932_v45  ;;  %v4472_v44 = vrot.slane %v4471_v41, 4 }
 0x169   : > { %6903 = vmatmul.mubr.msk.bf16.gmra.mxu1 %vm1389_vm8, %v10217_v40  ;;  %v8946_v12 = vpop.f32.mrf.mxu0  ;;  %v4495_v40 = vor.u32 %v4494_v38, %v4491_v5  ;;  %v4513_v57 = vshrl.u32 %v6396_v8, 16  ;;  %v4516_v55 = vshll.u32 %v6396_v8, 16  ;;  %v4482_v48 = vrot.slane %v4481_v15, 4 }
 0x16a   : > { %6906 = vmatprep.mubr.msk.bf16.mxu1 %vm1389_vm8, %v10219_v29  ;;  %10220 = vst [vmem:[#allocation28_spill] sm:$0xff] %v8946_v12  ;;  %v4486_v25 = vrot.slane %v4484_v1, 5  ;;  %v10223_v56 = vcombine.low %v8730_v51, %v8734_v27  ;;  %v4505_v5 = vor.u32 %v4504_v19, %v8956_v9  ;;  %v4508_v8 = vshll.u32 %v8928_v43, 16 }
 0x16b   : > { %v8965_v13 = vpop.f32.mrf.mxu0  ;;  %v4522_v38 = vshll.u32 %v6397_v36, 16  ;;  %v4526_v2 = vshrl.u32 %v6397_v36, 16  ;;  %v8986_v1 = vsel %vm7836_vm15, %v6476_v60, %v5113_v4  ;;  %v6477_v15 = vrot.slane %v6461_v22, 9 }
 0x16c   : > { %10221 = vst [vmem:[#allocation29_spill] sm:$0xff] %v8965_v13  ;;  %v10224_v13 = vcombine.low %v8771_v11, %v8781_v14  ;;  %v5122_v41 = vrot.slane %v5120_v3, 4  ;;  %v5123_v51 = vrot.slane %v8963_v42, 5  ;;  %v8993_v43 = vsel %vm7836_vm15, %v5115_v58, %v5116_v17  ;;  %v8999_v14 = vpop.f32.mrf.mxu1 }
 0x16d   : > { %v4496_v45 = vrot.slane %v4495_v40, 4  ;;  %v4518_v59 = vrot.slane %v4516_v55, 5  ;;  %v10225_v11 = vcombine.low %v8614_v37, %v8627_v7  ;;  %10226 = vst [vmem:[#allocation31_spill] sm:$0xff] %v8999_v14  ;;  %v10227_v4 = vsel %vm7439_vm9, %v8860_v63, %v8830_v31  ;;  %v9015_v7 = vld [vmem:[#allocation2 + $0x88] sm:$0xf] }
 0x16e   : > { %v8972_v29 = vpop.f32.mrf.mxu0  ;;  %6985 = vmatmul.mubr.msk.bf16.vlgmr.msra.gmra.mxu0 %vm1389_vm8, %v10223_v56  ;;  %v4515_v56 = vrot.slane %v4513_v57, 4  ;;  %v9006_v19 = vcombine.low %v10227_v4, %v4439_v20  ;;  %v4477_v60 = vsel %vm7439_vm9, %v4472_v44, %v8909_v26  ;;  %v4487_v37 = vsel %vm7439_vm9, %v4482_v48, %v4486_v25  ;;  %v6399_v40 = vld [vmem:[#allocation2 + $0x84] sm:$0xf]  ;;  %v9047_v48 = vld [vmem:[#allocation2 + $0x94] sm:$0xf]  ;;  %v9049_v25 = vpop.f32.mrf.mxu1 }
 0x16f   : > { %6988 = vmatprep.mubr.msk.bf16.mxu0 %vm1389_vm8, %v10224_v13  ;;  %v10228_v17 = vcombine.low %v8631_v30, %v8643_v28  ;;  %v4506_v63 = vrot.slane %v4505_v5, 4  ;;  %v4510_v20 = vrot.slane %v4508_v8, 5  ;;  %v9023_v13 = vrot.slane %v4522_v38, 5  ;;  %v9037_v28 = vld [vmem:[#allocation2 + $0x8c] sm:$0x1]  ;;  %10229 = vst [vmem:[#allocation32_spill] sm:$0xff] %v9049_v25 }
 0x170   : > { %v8989_v27 = vpop.f32.mrf.mxu0  ;;  %v4528_v58 = vrot.slane %v4526_v2, 4  ;;  %v9025_v22 = vcombine.low %v4453_v34, %v4463_v47  ;;  %v9031_v57 = vsel %vm7836_vm15, %v6477_v15, %v5120_v3  ;;  %v9035_v30 = vsel %vm7836_vm15, %v5122_v41, %v5123_v51  ;;  %v6402_v3 = vld [vmem:[#allocation2 + $0x90] sm:$0xf]  ;;  %v6462_v5 = vld [vmem:[#allocation2 + $0x84] sm:$0xe] }
 0x171   : > { %6907 = vmatmul.mubr.msk.bf16.gmra.mxu1 %vm1389_vm8, %v10225_v11  ;;  %v9041_v44 = vcombine.low %v4477_v60, %v4487_v37  ;;  %v4501_v34 = vsel %vm7439_vm9, %v4496_v45, %v8956_v9  ;;  %v4519_v2 = vor.u32 %v4518_v59, %v4515_v56  ;;  %v5127_v47 = vrot.slane %v9015_v7, 5 }
 0x172   : > { %6910 = vmatprep.mubr.msk.bf16.mxu1 %vm1389_vm8, %v10228_v17  ;;  %v9021_v31 = vpop.f32.mrf.mxu0  ;;  %v4537_v8 = vshrl.u32 %v6399_v40, 16  ;;  %v4540_v38 = vshll.u32 %v6399_v40, 16  ;;  %v4546_v15 = vshll.u32 %v9015_v7, 16  ;;  %v4550_v41 = vshrl.u32 %v9015_v7, 16 }
 0x173   : > { %v10230_v9 = vcombine.low %v8811_v61, %v8815_v35  ;;  %v4511_v45 = vsel %vm7439_vm9, %v4506_v63, %v4510_v20  ;;  %v4529_v59 = vor.u32 %v4528_v58, %v9023_v13  ;;  %v4532_v11 = vshll.u32 %v8963_v42, 16 }
 0x174   : > { %v9039_v55 = vpop.f32.mrf.mxu0  ;;  %v10231_v4 = vcombine.low %v8845_v21, %v8849_v46  ;;  %v4561_v60 = vshrl.u32 %v6402_v3, 16  ;;  %v4564_v37 = vshll.u32 %v6402_v3, 16  ;;  %v4570_v61 = vshll.u32 %v9047_v48, 16 }
 0x175   : > { %v4574_v35 = vshrl.u32 %v9047_v48, 16  ;;  %v9073_v17 = vrot.slane %v4519_v2, 4  ;;  %v6478_v63 = vrot.slane %v6462_v5, 9  ;;  %v5129_v20 = vrot.slane %v5127_v47, 4 }
 0x176   : > { %v9053_v51 = vpop.f32.mrf.mxu0  ;;  %6989 = vmatmul.mubr.msk.bf16.gmra.mxu0 %vm1389_vm8, %v10230_v9  ;;  %v5130_v58 = vrot.slane %v9037_v28, 5  ;;  %v10233_v21 = vcombine.low %v8637_v18, %v8653_v49  ;;  %v4539_v46 = vrot.slane %v4537_v8, 4  ;;  %v4542_v40 = vrot.slane %v4540_v38, 5  ;;  %v6463_v49 = vld [vmem:[#allocation2 + $0x90] sm:$0xe] }
 0x177   : > { %6992 = vmatprep.mubr.msk.bf16.mxu0 %vm1389_vm8, %v10231_v4  ;;  %v9082_v3 = vrot.slane %v4546_v15, 5  ;;  %v4552_v9 = vrot.slane %v4550_v41, 4  ;;  %v6405_v4 = vld [vmem:[#allocation2 + $0x9c] sm:$0xf]  ;;  %v9088_v5 = vcombine.low %v4501_v34, %v4511_v45  ;;  %v4530_v56 = vrot.slane %v4529_v59, 4 }
 0x178   : > { %v9071_v7 = vpop.f32.mrf.mxu0  ;;  %v4534_v26 = vrot.slane %v4532_v11, 5  ;;  %v4556_v36 = vshll.u32 %v9037_v28, 16  ;;  %v4563_v8 = vrot.slane %v4561_v60, 4  ;;  %v4566_v38 = vrot.slane %v4564_v37, 5  ;;  %v6404_v28 = vld [vmem:[#allocation2 + $0x98] sm:$0x1] }
 0x179   : > { %v9076_v42 = vpop.f32.mrf.mxu1  ;;  %6911 = vmatmul.mubr.msk.bf16.gmra.mxu1 %vm1389_vm8, %v10233_v21  ;;  %10234 = vst [vmem:[#allocation34_spill] sm:$0xff] %v9088_v5  ;;  %v9093_v15 = vrot.slane %v4570_v61, 5  ;;  %v4576_v41 = vrot.slane %v4574_v35, 4  ;;  %v9103_v34 = vsel %vm7836_vm15, %v6478_v63, %v5127_v47  ;;  %v4585_v45 = vshrl.u32 %v6405_v4, 16 }
 0x17a   : > { %10232 = vst [vmem:[#allocation33_spill] sm:$0xff] %v9076_v42  ;;  %6950 = vmatprep.mubr.msk.bf16.mxu1 %vm1389_vm8, %v8792_v33  ;;  %v9086_v2 = vpop.f32.mrf.mxu0  ;;  %v4525_v33 = vsel %vm7439_vm9, %v9073_v17, %v9023_v13  ;;  %v4588_v59 = vshll.u32 %v6405_v4, 16  ;;  %v9109_v60 = vsel %vm7836_vm15, %v5129_v20, %v5130_v58  ;;  %v4543_v37 = vor.u32 %v4542_v40, %v4539_v46  ;;  %v6464_v58 = vld [vmem:[#allocation2 + $0x9c] sm:$0xe] }
 0x17b   : > { %v9091_v18 = vpop.f32.mrf.mxu1  ;;  %v4553_v61 = vor.u32 %v4552_v9, %v9082_v3  ;;  %v5134_v35 = vrot.slane %v9047_v48, 5  ;;  %v10237_v47 = vcombine.low %v8890_v54, %v8900_v10  ;;  %v4535_v17 = vsel %vm7439_vm9, %v4530_v56, %v4534_v26 }
 0x17c   : > { %10235 = vst [vmem:[#allocation35_spill] sm:$0xff] %v9091_v18  ;;  %v9095_v21 = vpop.f32.mrf.mxu0  ;;  %v6406_v18 = vld [vmem:[#allocation2 + $0xa0] sm:$0xf]  ;;  %v9121_v63 = vrot.slane %v4556_v36, 5  ;;  %v6479_v20 = vrot.slane %v6463_v49, 9  ;;  %v10239_v48 = vcombine.low %v8954_v23, %v8960_v53  ;;  %v5137_v9 = vrot.slane %v6404_v28, 5 }
 0x17d   : > { %v9105_v11 = vpop.f32.mrf.mxu1  ;;  %v5141_v46 = vrot.slane %v6406_v18, 5  ;;  %v4567_v4 = vor.u32 %v4566_v38, %v4563_v8  ;;  %v4577_v54 = vor.u32 %v4576_v41, %v9093_v15  ;;  %v4580_v10 = vshll.u32 %v6404_v28, 16 }
 0x17e   : > { %10236 = vst [vmem:[#allocation36_spill] sm:$0xff] %v9105_v11  ;;  %v9113_v13 = vpop.f32.mrf.mxu0  ;;  %6993 = vmatmul.mubr.msk.bf16.gmra.mxu0 %vm1389_vm8, %v10237_v47  ;;  %v9130_v47 = vld [vmem:[#allocation2 + $0xa4] sm:$0x1]  ;;  %v4587_v36 = vrot.slane %v4585_v45, 4  ;;  %v4590_v56 = vrot.slane %v4588_v59, 5  ;;  %v4594_v49 = vshll.u32 %v6406_v18, 16  ;;  %v9140_v38 = vcombine.low %v4525_v33, %v4535_v17 }
 0x17f   : > { %v9123_v40 = vpop.f32.mrf.mxu1  ;;  %6996 = vmatprep.mubr.msk.bf16.mxu0 %vm1389_vm8, %v10239_v48  ;;  %v4598_v11 = vshrl.u32 %v6406_v18, 16  ;;  %v4544_v23 = vrot.slane %v4543_v37, 4  ;;  %v4554_v53 = vrot.slane %v4553_v61, 4  ;;  %v5136_v48 = vrot.slane %v5134_v35, 4  ;;  %v6409_v45 = vld [vmem:[#allocation2 + $0xac] sm:$0xf] }
 0x180   : > { %10238 = vst [vmem:[#allocation37_spill] sm:$0xff] %v9123_v40  ;;  %v9132_v26 = vpop.f32.mrf.mxu0  ;;  %v6480_v40 = vrot.slane %v6464_v58, 9  ;;  %10240 = vst [vmem:[#allocation38_spill] sm:$0xff] %v9140_v38  ;;  %v5143_v28 = vrot.slane %v5141_v46, 4  ;;  %v5144_v18 = vrot.slane %v9130_v47, 5  ;;  %v4568_v37 = vrot.slane %v4567_v4, 4 }
 0x181   : > { %v6748_v42 = vpop.f32.mrf.mxu1  ;;  %6951 = vmatmul.mubr.msk.bf16.vlgmr.msra.gmra.mxu1 %vm1389_vm8, %v8799_v6  ;;  %v6408_v59 = vld [vmem:[#allocation2 + $0xa8] sm:$0xf]  ;;  %v4578_v61 = vrot.slane %v4577_v54, 4  ;;  %v4582_v25 = vrot.slane %v4580_v10, 5  ;;  %v5148_v14 = vrot.slane %v6409_v45, 5  ;;  %v4591_v33 = vor.u32 %v4590_v56, %v4587_v36 }
 0x182   : > { %6954 = vmatprep.mubr.msk.bf16.mxu1 %vm1389_vm8, %v8864_v32  ;;  %v9138_v8 = vpop.f32.mrf.mxu0  ;;  %v6465_v58 = vld [vmem:[#allocation2 + $0xa8] sm:$0xe]  ;;  %v9149_v32 = vsel %vm7836_vm15, %v6479_v20, %v5134_v35  ;;  %v9151_v17 = vrot.slane %v4594_v49, 5  ;;  %v4600_v41 = vrot.slane %v4598_v11, 4  ;;  %v9153_v38 = vld [vmem:[#allocation2 + $0xb0] sm:$0x1]  ;;  %v4549_v4 = vsel %vm7439_vm9, %v4544_v23, %v9082_v3 }
 0x183   : > { %v1768_v6 = vpop.f32.mrf.mxu1  ;;  %v4559_v54 = vsel %vm7439_vm9, %v4554_v53, %v9121_v63  ;;  %v5138_v10 = vsel %vm7836_vm15, %v5136_v48, %v5137_v9  ;;  %v9165_v35 = vsel %vm7836_vm15, %v6480_v40, %v5141_v46  ;;  %v10241_v11 = vcombine.low %v8986_v1, %v8993_v43 }
 0x184   : > { %v9145_v12 = vpop.f32.mrf.mxu0  ;;  %v9175_v3 = vsel %vm7836_vm15, %v5143_v28, %v5144_v18  ;;  %v6481_v36 = vrot.slane %v6465_v58, 9  ;;  %v4609_v63 = vshrl.u32 %v6408_v59, 16  ;;  %v4612_v56 = vshll.u32 %v6408_v59, 16 }
 0x185   : > { %v6749_v5 = vpop.f32.mrf.mxu1  ;;  %v10242_v9 = vcombine.low %v9031_v57, %v9035_v30  ;;  %v4573_v46 = vsel %vm7439_vm9, %v4568_v37, %v9093_v15  ;;  %v4583_v1 = vsel %vm7439_vm9, %v4578_v61, %v4582_v25  ;;  %v5150_v43 = vrot.slane %v5148_v14, 4 }
 0x186   : > { %v9167_v20 = vpop.f32.mrf.mxu0  ;;  %6997 = vmatmul.mubr.msk.bf16.gmra.mxu0 %vm1389_vm8, %v10241_v11  ;;  %v5151_v40 = vrot.slane %v9153_v38, 5  ;;  %v6496_v53 = vcombine.low %v9149_v32, %v5138_v10  ;;  %v9190_v48 = vrot.slane %v4591_v33, 4  ;;  %v4601_v57 = vor.u32 %v4600_v41, %v9151_v17 }
 0x187   : > { %v1771_v49 = vpop.f32.mrf.mxu1  ;;  %7000 = vmatprep.mubr.msk.bf16.mxu0 %vm1389_vm8, %v10242_v9  ;;  %v4604_v30 = vshll.u32 %v9130_v47, 16  ;;  %v9196_v15 = vcombine.low %v4549_v4, %v4559_v54  ;;  %v6497_v25 = vcombine.low %v9165_v35, %v9175_v3  ;;  %v4618_v18 = vshll.u32 %v6409_v45, 16  ;;  %v10243_v4 = vld [vmem:[#allocation10_spill] sm:$0xff] }
 0x188   : > { %v9187_v23 = vpop.f32.mrf.mxu0  ;;  %v4622_v59 = vshrl.u32 %v6409_v45, 16  ;;  %v9204_v61 = vcombine.low %v4573_v46, %v4583_v1  ;;  %v9208_v47 = vsel %vm7836_vm15, %v6481_v36, %v5148_v14  ;;  %v4611_v41 = vrot.slane %v4609_v63, 4  ;;  %v10258_v14 = vld [vmem:[#allocation25_spill] sm:$0xff] }
 0x189   : > { %v6752_v28 = vpop.f32.mrf.mxu1  ;;  %6955 = vmatmul.mubr.msk.bf16.gmra.mxu1 %vm1389_vm8, %v8884_v62  ;;  %v4614_v62 = vrot.slane %v4612_v56, 5  ;;  %v1777_v58 = vadd.f32 %v6748_v42, %v8666_v52  ;;  %v1769_v32 = vadd.f32 %v1768_v6, %v8675_v0  ;;  %v1780_v33 = vadd.f32 %v6749_v5, %v8678_v39  ;;  %v10244_v0 = vld [vmem:[#allocation9_spill] sm:$0xff]  ;;  %v10245_v42 = vld [vmem:[#allocation11_spill] sm:$0xff]  ;;  %v6466_v56 = vld [vmem:[#allocation2 + $0xb4] sm:$0xe] }
 0x18a   : > { %6958 = vmatprep.mubr.msk.bf16.mxu1 %vm1389_vm8, %v9006_v19  ;;  %v9202_v37 = vpop.f32.mrf.mxu0  ;;  %v9215_v19 = vsel %vm7836_vm15, %v5150_v43, %v5151_v40  ;;  %v1772_v54 = vadd.f32 %v1771_v49, %v10243_v4  ;;  %v9224_v11 = vrot.slane %v4601_v57, 4  ;;  %v9226_v52 = vrot.slane %v4604_v30, 5  ;;  %v10246_v49 = vld [vmem:[#allocation14_spill] sm:$0xff]  ;;  %v9242_v30 = vld [vmem:[#allocation2 + $0xb8] sm:$0xf] }
 0x18b   : > { %v1784_v45 = vpop.f32.mrf.mxu1  ;;  %v1793_v39 = vadd.f32 %v6752_v28, %v10244_v0  ;;  %v9230_v36 = vrot.slane %v4618_v18, 5  ;;  %v4624_v63 = vrot.slane %v4622_v59, 4  ;;  %v10247_v1 = vcombine.low %v9103_v34, %v9109_v60  ;;  %v9246_v59 = vld [vmem:[#allocation2 + $0xb4] sm:$0xf] }
 0x18c   : > { %v9218_v10 = vpop.f32.mrf.mxu0  ;;  %v1785_v5 = vadd.f32 %v1784_v45, %v10245_v42  ;;  %v6498_v43 = vcombine.low %v9208_v47, %v9215_v19  ;;  %v4615_v40 = vor.u32 %v4614_v62, %v4611_v41  ;;  %v4628_v57 = vshll.u32 %v9153_v38, 16  ;;  %v9248_v45 = vld [vmem:[#allocation2 + $0xc4] sm:$0xf]  ;;  %v6467_v19 = vld [vmem:[#allocation2 + $0xc0] sm:$0xe] }
 0x18d   : > { %v6753_v6 = vpop.f32.mrf.mxu1  ;;  %v5155_v18 = vrot.slane %v9242_v30, 5  ;;  %v9251_v34 = vadd.f32 %v8972_v29, %v1777_v58  ;;  %v9254_v60 = vadd.f32 %v8989_v27, %v1769_v32  ;;  %v9257_v47 = vadd.f32 %v9021_v31, %v1780_v33  ;;  %v9271_v31 = vld [vmem:[#allocation2 + $0xc8] sm:$0x1]  ;;  %v10249_v33 = vld [vmem:[#allocation17_spill] sm:$0xff] }
 0x18e   : > { %v1796_v9 = vadd.f32 %v6753_v6, %v10246_v49  ;;  %v9233_v46 = vpop.f32.mrf.mxu0  ;;  %7001 = vmatmul.mubr.msk.bf16.gmra.mxu0 %vm1389_vm8, %v10247_v1  ;;  %v6482_v62 = vrot.slane %v6466_v56, 9  ;;  %v5162_v4 = vrot.slane %v9248_v45, 5  ;;  %v9266_v0 = vadd.f32 %v9039_v55, %v1772_v54  ;;  %v6414_v1 = vld [vmem:[#allocation2 + $0xc0] sm:$0xf] }
 0x18f   : > { %v1787_v28 = vpop.f32.mrf.mxu1  ;;  %7004 = vmatprep.mubr.msk.bf16.mxu0 %vm1389_vm8, %v6496_v53  ;;  %v9262_v53 = vld [vmem:[#allocation2 + $0xbc] sm:$0x1]  ;;  %v4625_v27 = vor.u32 %v4624_v63, %v9230_v36  ;;  %v9277_v58 = vadd.f32 %v9071_v7, %v1785_v5  ;;  %v4633_v42 = vshrl.u32 %v9246_v59, 16  ;;  %v9293_v7 = vrot.slane %v4615_v40, 4  ;;  %v10251_v63 = vld [vmem:[#allocation19_spill] sm:$0xff] }
 0x190   : > { %v1788_v38 = vadd.f32 %v1787_v28, %v8777_v16  ;;  %v9260_v41 = vpop.f32.mrf.mxu0  ;;  %v9274_v16 = vadd.f32 %v9053_v51, %v1793_v39  ;;  %v9280_v32 = vadd.f32 %v9086_v2, %v1796_v9  ;;  %v5157_v5 = vrot.slane %v5155_v18, 4 }
 0x191   : > { %v6756_v29 = vpop.f32.mrf.mxu1  ;;  %6959 = vmatmul.mubr.msk.bf16.gmra.mxu1 %vm1389_vm8, %v9025_v22  ;;  %v9287_v22 = vrot.slane %v4628_v57, 5  ;;  %v5158_v2 = vrot.slane %v9262_v53, 5  ;;  %v6483_v6 = vrot.slane %v6467_v19, 9  ;;  %v5165_v9 = vrot.slane %v9271_v31, 5 }
 0x192   : > { %10248 = vst [vmem:[#allocation10_spill] sm:$0xff] %v9280_v32  ;;  %v1809_v55 = vadd.f32 %v6756_v29, %v10249_v33  ;;  %6962 = vmatprep.mubr.msk.bf16.mxu1 %vm1389_vm8, %v9041_v44  ;;  %v9285_v54 = vpop.f32.mrf.mxu0  ;;  %v9291_v51 = vadd.f32 %v9095_v21, %v1788_v38  ;;  %v5164_v44 = vrot.slane %v5162_v4, 4  ;;  %v9303_v28 = vrot.slane %v4625_v27, 4  ;;  %v10253_v29 = vld [vmem:[#allocation21_spill] sm:$0xff] }
 0x193   : > { %v1800_v39 = vpop.f32.mrf.mxu1  ;;  %v5156_v40 = vsel %vm7836_vm15, %v6482_v62, %v5155_v18  ;;  %v4636_v38 = vshll.u32 %v9246_v59, 16  ;;  %v4642_v19 = vshll.u32 %v9242_v30, 16  ;;  %v4646_v27 = vshrl.u32 %v9242_v30, 16 }
 0x194   : > { %10250 = vst [vmem:[#allocation9_spill] sm:$0xff] %v9291_v51  ;;  %v1801_v56 = vadd.f32 %v1800_v39, %v10251_v63  ;;  %v9297_v49 = vpop.f32.mrf.mxu0  ;;  %v9301_v57 = vadd.f32 %v9113_v13, %v1809_v55  ;;  %v9316_v13 = vrot.slane %v4633_v42, 4  ;;  %v9319_v55 = vld [vmem:[#allocation2 + $0xd0] sm:$0xf]  ;;  %v5159_v62 = vsel %vm7836_vm15, %v5157_v5, %v5158_v2  ;;  %v10257_v2 = vld [vmem:[#allocation34_spill] sm:$0xff] }
 0x195   : > { %v6757_v21 = vpop.f32.mrf.mxu1  ;;  %v5163_v35 = vsel %vm7836_vm15, %v6483_v6, %v5162_v4  ;;  %v4657_v3 = vshrl.u32 %v6414_v1, 16  ;;  %v10255_v42 = vld [vmem:[#allocation23_spill] sm:$0xff]  ;;  %v4638_v4 = vrot.slane %v4636_v38, 5  ;;  %v9342_v6 = vrot.slane %v4642_v19, 5  ;;  %v10260_v51 = vld [vmem:[#allocation26_spill] sm:$0xff] }
 0x196   : > { %10252 = vst [vmem:[#allocation11_spill] sm:$0xff] %v9301_v57  ;;  %v1812_v33 = vadd.f32 %v6757_v21, %v10253_v29  ;;  %v9310_v39 = vpop.f32.mrf.mxu0  ;;  %7005 = vmatmul.mubr.msk.bf16.gmra.mxu0 %vm1389_vm8, %v6497_v25  ;;  %v9322_v18 = vadd.f32 %v9132_v26, %v1801_v56  ;;  %v5169_v25 = vrot.slane %v9319_v55, 5  ;;  %v5166_v26 = vsel %vm7836_vm15, %v5164_v44, %v5165_v9  ;;  %v9335_v21 = vld [vmem:[#allocation2 + $0xd4] sm:$0x1]  ;;  %v10259_v9 = vld [vmem:[#allocation38_spill] sm:$0xff] }
 0x197   : > { %v1803_v59 = vpop.f32.mrf.mxu1  ;;  %7008 = vmatprep.mubr.msk.bf16.mxu0 %vm1389_vm8, %v6498_v43  ;;  %v4660_v56 = vshll.u32 %v6414_v1, 16  ;;  %v6468_v43 = vld [vmem:[#allocation2 + $0xcc] sm:$0xe]  ;;  %v6500_v38 = vcombine.low %v5163_v35, %v5166_v26  ;;  %v5172_v57 = vrot.slane %v9335_v21, 5  ;;  %v10261_v35 = vld [vmem:[#allocation28_spill] sm:$0xff]  ;;  %v4690_v50 = vshll.u32 %v9319_v55, 16 }
 0x198   : > { %10254 = vst [vmem:[#allocation14_spill] sm:$0xff] %v9322_v18  ;;  %v1804_v63 = vadd.f32 %v1803_v59, %v10255_v42  ;;  %v9331_v30 = vpop.f32.mrf.mxu0  ;;  %v9338_v29 = vadd.f32 %v9138_v8, %v1812_v33  ;;  %v4666_v59 = vshll.u32 %v9248_v45, 16  ;;  %v4670_v42 = vshrl.u32 %v9248_v45, 16 }
 0x199   : > { %v6760_v5 = vpop.f32.mrf.mxu1  ;;  %6963 = vmatmul.mubr.msk.bf16.gmra.mxu1 %vm1389_vm8, %v10257_v2  ;;  %v6499_v8 = vcombine.low %v5156_v40, %v5159_v62  ;;  %v4648_v33 = vrot.slane %v4646_v27, 4  ;;  %v6484_v19 = vrot.slane %v6468_v43, 9  ;;  %v5171_v18 = vrot.slane %v5169_v25, 4 }
 0x19a   : > { %10256 = vst [vmem:[#allocation17_spill] sm:$0xff] %v9338_v29  ;;  %v1825_v44 = vadd.f32 %v6760_v5, %v10258_v14  ;;  %6966 = vmatprep.mubr.msk.bf16.mxu1 %vm1389_vm8, %v10259_v9  ;;  %v9349_v1 = vpop.f32.mrf.mxu0  ;;  %v9352_v29 = vadd.f32 %v9145_v12, %v1804_v63  ;;  %v4659_v14 = vrot.slane %v4657_v3, 4  ;;  %v4662_v5 = vrot.slane %v4660_v56, 5 }
 0x19b   : > { %v1816_v2 = vpop.f32.mrf.mxu1  ;;  %v4607_v12 = vsel %vm7439_vm9, %v9224_v11, %v9226_v52  ;;  %v4621_v27 = vsel %vm7439_vm9, %v9293_v7, %v9230_v36  ;;  %v9369_v62 = vrot.slane %v4666_v59, 5  ;;  %v4652_v11 = vshll.u32 %v9262_v53, 16  ;;  %v6417_v52 = vld [vmem:[#allocation2 + $0xcc] sm:$0xf] }
 0x19c   : > { %v1817_v45 = vadd.f32 %v1816_v2, %v10260_v51  ;;  %v9356_v32 = vpop.f32.mrf.mxu0  ;;  %v9359_v9 = vadd.f32 %v9167_v20, %v1825_v44  ;;  %v4672_v51 = vrot.slane %v4670_v42, 4  ;;  %v4631_v20 = vsel %vm7439_vm9, %v9303_v28, %v9287_v22  ;;  %v10262_v28 = vld [vmem:[#allocation29_spill] sm:$0xff] }
 0x19d   : > { %v6761_v40 = vpop.f32.mrf.mxu1  ;;  %v4639_v7 = vor.u32 %v4638_v4, %v9316_v13  ;;  %v4649_v56 = vor.u32 %v4648_v33, %v9342_v6  ;;  %v5170_v43 = vsel %vm7836_vm15, %v6484_v19, %v5169_v25  ;;  %v5173_v22 = vsel %vm7836_vm15, %v5171_v18, %v5172_v57  ;;  %v10263_v57 = vld [vmem:[#allocation12_spill] sm:$0xff] }
 0x19e   : > { %v1828_v3 = vadd.f32 %v6761_v40, %v10261_v35  ;;  %v9372_v63 = vpop.f32.mrf.mxu0  ;;  %7009 = vmatmul.mubr.msk.bf16.gmra.mxu0 %vm1389_vm8, %v6499_v8  ;;  %v9381_v26 = vadd.f32 %v9187_v23, %v1817_v45  ;;  %v4663_v42 = vor.u32 %v4662_v5, %v4659_v14  ;;  %v4676_v23 = vshll.u32 %v9271_v31, 16  ;;  %v10265_v40 = vld [vmem:[#allocation15_spill] sm:$0xff] }
 0x19f   : > { %v1819_v36 = vpop.f32.mrf.mxu1  ;;  %7012 = vmatprep.mubr.msk.bf16.mxu0 %vm1389_vm8, %v6500_v38  ;;  %v4673_v4 = vor.u32 %v4672_v51, %v9369_v62  ;;  %v4681_v25 = vshrl.u32 %v6417_v52, 16  ;;  %v4684_v8 = vshll.u32 %v6417_v52, 16  ;;  %v6501_v31 = vcombine.low %v5170_v43, %v5173_v22 }
 0x1a0   : > { %v1820_v59 = vadd.f32 %v1819_v36, %v10262_v28  ;;  %v9391_v53 = vpop.f32.mrf.mxu0  ;;  %v9395_v44 = vadd.f32 %v9202_v37, %v1828_v3  ;;  %v4694_v37 = vshrl.u32 %v9319_v55, 16  ;;  %v10264_v38 = vsel %vm7439_vm9, %v9190_v48, %v9151_v17  ;;  %v10266_v28 = vld [vmem:[#allocation13_spill] sm:$0xff] }
 0x1a1   : > { %v6764_v13 = vpop.f32.mrf.mxu1  ;;  %6967 = vmatmul.mubr.msk.bf16.gmra.mxu1 %vm1389_vm8, %v9196_v15  ;;  %v6432_v19 = vcombine.low %v10264_v38, %v4607_v12  ;;  %v6433_v45 = vcombine.low %v4621_v27, %v4631_v20  ;;  %v4640_v14 = vrot.slane %v4639_v7, 4  ;;  %v4654_v5 = vrot.slane %v4652_v11, 5  ;;  %v10267_v7 = vld [vmem:[#allocation16_spill] sm:$0xff] }
 0x1a2   : > { %v1841_v18 = vadd.f32 %v6764_v13, %v10263_v57  ;;  %6970 = vmatprep.mubr.msk.bf16.mxu1 %vm1389_vm8, %v9204_v61  ;;  %v9404_v33 = vpop.f32.mrf.mxu0  ;;  %v9408_v2 = vadd.f32 %v9218_v10, %v1820_v59  ;;  %v4650_v51 = vrot.slane %v4649_v56, 4  ;;  %v4664_v3 = vrot.slane %v4663_v42, 4 }
 0x1a3   : > { %v1832_v15 = vpop.f32.mrf.mxu1  ;;  %v4674_v52 = vrot.slane %v4673_v4, 4  ;;  %v4678_v36 = vrot.slane %v4676_v23, 5  ;;  %v4683_v43 = vrot.slane %v4681_v25, 4  ;;  %v4686_v22 = vrot.slane %v4684_v8, 5  ;;  %v10268_v25 = vld [vmem:[#allocation18_spill] sm:$0xff] }
 0x1a4   : > { %v1833_v61 = vadd.f32 %v1832_v15, %v10265_v40  ;;  %v9416_v35 = vpop.f32.mrf.mxu0  ;;  %v9419_v55 = vadd.f32 %v9233_v46, %v1841_v18  ;;  %v4692_v12 = vrot.slane %v4690_v50, 5  ;;  %v4696_v27 = vrot.slane %v4694_v37, 4  ;;  %v10269_v37 = vld [vmem:[#allocation20_spill] sm:$0xff]  ;;  %v10270_v40 = vld [vmem:[#allocation22_spill] sm:$0xff] }
 0x1a5   : > { %v6765_v10 = vpop.f32.mrf.mxu1  ;;  %v4645_v56 = vsel %vm7439_vm9, %v4640_v14, %v9342_v6  ;;  %v4655_v13 = vsel %vm7439_vm9, %v4650_v51, %v4654_v5  ;;  %v4679_v4 = vsel %vm7439_vm9, %v4674_v52, %v4678_v36  ;;  %v4700_v6 = vshll.u32 %v9335_v21, 16  ;;  %v10271_v52 = vld [vmem:[#allocation24_spill] sm:$0xff] }
 0x1a6   : > { %v1844_v17 = vadd.f32 %v6765_v10, %v10266_v28  ;;  %v9422_v48 = vpop.f32.mrf.mxu0  ;;  %7013 = vmatmul.mubr.msk.bf16.gmra.mxu0 %vm1389_vm8, %v6501_v31  ;;  %v9426_v20 = vadd.f32 %v9260_v41, %v1833_v61  ;;  %v4669_v41 = vsel %vm7439_vm9, %v4664_v3, %v9369_v62  ;;  %v4697_v50 = vor.u32 %v4696_v27, %v4692_v12  ;;  %v10272_v28 = vld [vmem:[#allocation27_spill] sm:$0xff] }
 0x1a7   : > { %v1835_v11 = vpop.f32.mrf.mxu1  ;;  %v6434_v14 = vcombine.low %v4645_v56, %v4655_v13  ;;  %v6435_v21 = vcombine.low %v4669_v41, %v4679_v4  ;;  %v4702_v5 = vrot.slane %v4700_v6, 5  ;;  %v10274_v6 = vld [vmem:[#allocation31_spill] sm:$0xff] }
 0x1a8   : > { %v1836_v46 = vadd.f32 %v1835_v11, %v10267_v7  ;;  %v9432_v59 = vpop.f32.mrf.mxu0  ;;  %v9435_v42 = vadd.f32 %v9285_v54, %v1844_v17  ;;  %v4687_v54 = vor.u32 %v4686_v22, %v4683_v43  ;;  %v4698_v51 = vrot.slane %v4697_v50, 4 }
 0x1a9   : > { %v6768_v23 = vpop.f32.mrf.mxu1  ;;  %6971 = vmatmul.mubr.msk.bf16.gmra.mxu1 %vm1389_vm8, %v6432_v19 }
 0x1aa   : > { %v1857_v8 = vadd.f32 %v6768_v23, %v10268_v25  ;;  %6974 = vmatprep.mubr.msk.bf16.mxu1 %vm1389_vm8, %v6433_v45  ;;  %v6811_v57 = vpop.f32.mrf.mxu0  ;;  %v9449_v18 = vadd.f32 %v9297_v49, %v1836_v46  ;;  %v4688_v45 = vrot.slane %v4687_v54, 4  ;;  %v10275_v54 = vld [vmem:[#allocation32_spill] sm:$0xff] }
 0x1ab   : > { %v1848_v31 = vpop.f32.mrf.mxu1 }
 0x1ac   : > { %v1849_v15 = vadd.f32 %v1848_v31, %v10269_v37  ;;  %v2308_v38 = vpop.f32.mrf.mxu0  ;;  %v9453_v62 = vadd.f32 %v9310_v39, %v1857_v8  ;;  %v4693_v27 = vsel %vm7439_vm9, %v4688_v45, %v4692_v12 }
 0x1ad   : > { %v6769_v19 = vpop.f32.mrf.mxu1 }
 0x1ae   : > { %v1860_v61 = vadd.f32 %v6769_v19, %v10270_v40  ;;  %v6850_v3 = vpop.f32.mrf.mxu0  ;;  %v9457_v10 = vadd.f32 %v9331_v30, %v1849_v15  ;;  %v4703_v30 = vsel %vm7439_vm9, %v4698_v51, %v4702_v5  ;;  %v10277_v5 = vld [vmem:[#allocation35_spill] sm:$0xff]  ;;  %v10278_v51 = vld [vmem:[#allocation36_spill] sm:$0xff] }
 0x1af   : > { %v1851_v49 = vpop.f32.mrf.mxu1  ;;  %v6436_v4 = vcombine.low %v4693_v27, %v4703_v30 }
 0x1b0   : > { %v1852_v36 = vadd.f32 %v1851_v49, %v10271_v52  ;;  %v3281_v43 = vpop.f32.mrf.mxu0  ;;  %v9461_v22 = vadd.f32 %v9349_v1, %v1860_v61  ;;  %v10273_v1 = vld [vmem:[#allocation30_spill] sm:$0xff] }
 0x1b1   : > { %v6772_v39 = vpop.f32.mrf.mxu1  ;;  %6975 = vmatmul.mubr.msk.bf16.gmra.mxu1 %vm1389_vm8, %v6434_v14 }
 0x1b2   : > { %v1873_v17 = vadd.f32 %v6772_v39, %v10272_v28  ;;  %6978 = vmatprep.mubr.msk.bf16.mxu1 %vm1389_vm8, %v6435_v21  ;;  %v6851_v11 = vpop.f32.mrf.mxu0  ;;  %v9471_v7 = vadd.f32 %v9356_v32, %v1852_v36  ;;  %v10279_v39 = vld [vmem:[#allocation37_spill] sm:$0xff] }
 0x1b3   : > { %v1864_v46 = vpop.f32.mrf.mxu1 }
 0x1b4   : > { %v1865_v56 = vadd.f32 %v1864_v46, %v10273_v1  ;;  %v3284_v23 = vpop.f32.mrf.mxu0  ;;  %v9475_v13 = vadd.f32 %v9372_v63, %v1873_v17  ;;  %v10276_v63 = vld [vmem:[#allocation33_spill] sm:$0xff] }
 0x1b5   : > { %v6773_v41 = vpop.f32.mrf.mxu1 }
 0x1b6   : > { %v1876_v25 = vadd.f32 %v6773_v41, %v10274_v6  ;;  %v6854_v8 = vpop.f32.mrf.mxu0  ;;  %v9479_v12 = vadd.f32 %v9391_v53, %v1865_v56 }
 0x1b7   : > { %v1867_v24 = vpop.f32.mrf.mxu1 }
 0x1b8   : > { %v1868_v50 = vadd.f32 %v1867_v24, %v10275_v54  ;;  %v3297_v32 = vpop.f32.mrf.mxu0  ;;  %v9483_v31 = vadd.f32 %v9404_v33, %v1876_v25 }
 0x1b9   : > { %v6776_v37 = vpop.f32.mrf.mxu1  ;;  %6979 = vmatmul.mubr.msk.bf16.gmra.mxu1 %vm1389_vm8, %v6436_v4 }
 0x1ba   : > { %v1889_v15 = vadd.f32 %v6776_v37, %v10276_v63  ;;  %v6855_v19 = vpop.f32.mrf.mxu0  ;;  %v9488_v14 = vadd.f32 %v9416_v35, %v1868_v50 }
 0x1bb   : > { %v1880_v21 = vpop.f32.mrf.mxu1 }
 0x1bc   : > { %v1881_v53 = vadd.f32 %v1880_v21, %v10277_v5  ;;  %v3300_v40 = vpop.f32.mrf.mxu0  ;;  %v9492_v61 = vadd.f32 %v9422_v48, %v1889_v15  ;;  %v10280_v5 = vld [vmem:[#allocation10_spill] sm:$0xff] }
 0x1bd   : > { %v6777_v45 = vpop.f32.mrf.mxu1 }
 0x1be   : > { %v1892_v33 = vadd.f32 %v6777_v45, %v10278_v51  ;;  %v6858_v49 = vpop.f32.mrf.mxu0  ;;  %v9496_v52 = vadd.f32 %v9432_v59, %v1881_v53  ;;  %v10281_v51 = vld [vmem:[#allocation9_spill] sm:$0xff] }
 0x1bf   : > { %v1883_v36 = vpop.f32.mrf.mxu1 }
 0x1c0   : > { %v1884_v28 = vadd.f32 %v1883_v36, %v10279_v39  ;;  %v3313_v17 = vpop.f32.mrf.mxu0  ;;  %v9499_v35 = vadd.f32 %v6811_v57, %v1892_v33  ;;  %v10282_v39 = vld [vmem:[#allocation11_spill] sm:$0xff] }
 0x1c1   : > { %v6816_v27 = vpop.f32.mrf.mxu1 }
 0x1c2   : > { %v2684_v30 = vadd.f32 %v6816_v27, %v9251_v34  ;;  %v6859_v46 = vpop.f32.mrf.mxu0  ;;  %v9502_v1 = vadd.f32 %v2308_v38, %v1884_v28 }
 0x1c3   : > { %v2555_v48 = vpop.f32.mrf.mxu1 }
 0x1c4   : > { %v2682_v56 = vadd.f32 %v2555_v48, %v9254_v60  ;;  %v3316_v41 = vpop.f32.mrf.mxu0  ;;  %v9505_v4 = vadd.f32 %v6850_v3, %v2684_v30  ;;  %v10283_v30 = vld [vmem:[#allocation14_spill] sm:$0xff] }
 0x1c5   : > { %v6817_v59 = vpop.f32.mrf.mxu1 }
 0x1c6   : > { %v2685_v6 = vadd.f32 %v6817_v59, %v9257_v47  ;;  %v6862_v25 = vpop.f32.mrf.mxu0  ;;  %v9508_v24 = vadd.f32 %v3281_v43, %v2682_v56 }
 0x1c7   : > { %v2558_v57 = vpop.f32.mrf.mxu1 }
 0x1c8   : > { %v2683_v54 = vadd.f32 %v2558_v57, %v9266_v0  ;;  %v3329_v50 = vpop.f32.mrf.mxu0  ;;  %v9511_v34 = vadd.f32 %v6851_v11, %v2685_v6  ;;  %v10284_v6 = vld [vmem:[#allocation17_spill] sm:$0xff] }
 0x1c9   : > { %v6820_v38 = vpop.f32.mrf.mxu1 }
 0x1ca   : > { %v2688_v37 = vadd.f32 %v6820_v38, %v9274_v16  ;;  %v6863_v63 = vpop.f32.mrf.mxu0  ;;  %v9514_v60 = vadd.f32 %v3284_v23, %v2683_v54 }
 0x1cb   : > { %v2571_v3 = vpop.f32.mrf.mxu1 }
 0x1cc   : > { %v2686_v15 = vadd.f32 %v2571_v3, %v9277_v58  ;;  %v3332_v21 = vpop.f32.mrf.mxu0  ;;  %v9517_v47 = vadd.f32 %v6854_v8, %v2688_v37 }
 0x1cd   : > { %v6821_v43 = vpop.f32.mrf.mxu1 }
 0x1ce   : > { %v2689_v53 = vadd.f32 %v6821_v43, %v10280_v5  ;;  %v6866_v45 = vpop.f32.mrf.mxu0  ;;  %v9520_v0 = vadd.f32 %v3297_v32, %v2686_v15 }
 0x1cf   : > { %v2574_v11 = vpop.f32.mrf.mxu1 }
 0x1d0   : > { %v2687_v33 = vadd.f32 %v2574_v11, %v10281_v51  ;;  %v3345_v36 = vpop.f32.mrf.mxu0  ;;  %v9523_v16 = vadd.f32 %v6855_v19, %v2689_v53 }
 0x1d1   : > { %v6824_v23 = vpop.f32.mrf.mxu1 }
 0x1d2   : > { %v2692_v28 = vadd.f32 %v6824_v23, %v10282_v39  ;;  %v6867_v27 = vpop.f32.mrf.mxu0  ;;  %v9526_v58 = vadd.f32 %v3300_v40, %v2687_v33 }
 0x1d3   : > { %v2587_v8 = vpop.f32.mrf.mxu1 }
 0x1d4   : > { %v2690_v48 = vadd.f32 %v2587_v8, %v10283_v30  ;;  %v3348_v56 = vpop.f32.mrf.mxu0  ;;  %v9529_v59 = vadd.f32 %v6858_v49, %v2692_v28 }
 0x1d5   : > { %v6825_v32 = vpop.f32.mrf.mxu1 }
 0x1d6   : > { %v2693_v57 = vadd.f32 %v6825_v32, %v10284_v6  ;;  %v6870_v54 = vpop.f32.mrf.mxu0  ;;  %v9532_v38 = vadd.f32 %v3313_v17, %v2690_v48 }
 0x1d7   : > { %v2590_v19 = vpop.f32.mrf.mxu1 }
 0x1d8   : > { %v2691_v37 = vadd.f32 %v2590_v19, %v9352_v29  ;;  %v3361_v3 = vpop.f32.mrf.mxu0  ;;  %v9535_v15 = vadd.f32 %v6859_v46, %v2693_v57 }
 0x1d9   : > { %v6828_v40 = vpop.f32.mrf.mxu1 }
 0x1da   : > { %10285 = vst [vmem:[#allocation19_spill] sm:$0xff] %v9535_v15  ;;  %v2696_v43 = vadd.f32 %v6828_v40, %v9359_v9  ;;  %v6871_v5 = vpop.f32.mrf.mxu0  ;;  %v9538_v53 = vadd.f32 %v3316_v41, %v2691_v37 }
 0x1db   : > { %v2603_v49 = vpop.f32.mrf.mxu1 }
 0x1dc   : > { %10286 = vst [vmem:[#allocation21_spill] sm:$0xff] %v9538_v53  ;;  %v2694_v11 = vadd.f32 %v2603_v49, %v9381_v26  ;;  %v3364_v51 = vpop.f32.mrf.mxu0  ;;  %v9541_v33 = vadd.f32 %v6862_v25, %v2696_v43 }
 0x1dd   : > { %v6829_v17 = vpop.f32.mrf.mxu1 }
 0x1de   : > { %10287 = vst [vmem:[#allocation23_spill] sm:$0xff] %v9541_v33  ;;  %v2697_v23 = vadd.f32 %v6829_v17, %v9395_v44  ;;  %v6874_v39 = vpop.f32.mrf.mxu0  ;;  %v9544_v29 = vadd.f32 %v3329_v50, %v2694_v11 }
 0x1df   : > { %v2606_v46 = vpop.f32.mrf.mxu1 }
 0x1e0   : > { %10288 = vst [vmem:[#allocation34_spill] sm:$0xff] %v9544_v29  ;;  %v2695_v28 = vadd.f32 %v2606_v46, %v9408_v2  ;;  %v3377_v8 = vpop.f32.mrf.mxu0  ;;  %v9547_v9 = vadd.f32 %v6863_v63, %v2697_v23 }
 0x1e1   : > { %v6832_v41 = vpop.f32.mrf.mxu1 }
 0x1e2   : > { %v2700_v30 = vadd.f32 %v6832_v41, %v9419_v55  ;;  %v6875_v48 = vpop.f32.mrf.mxu0  ;;  %v9550_v26 = vadd.f32 %v3332_v21, %v2695_v28 }
 0x1e3   : > { %v2619_v25 = vpop.f32.mrf.mxu1 }
 0x1e4   : > { %10289 = vst [vmem:[#allocation25_spill] sm:$0xff] %v9550_v26  ;;  %v2698_v32 = vadd.f32 %v2619_v25, %v9426_v20  ;;  %v3380_v6 = vpop.f32.mrf.mxu0  ;;  %v9553_v44 = vadd.f32 %v6866_v45, %v2700_v30 }
 0x1e5   : > { %v6833_v50 = vpop.f32.mrf.mxu1 }
 0x1e6   : > { %10290 = vst [vmem:[#allocation38_spill] sm:$0xff] %v9553_v44  ;;  %v2701_v57 = vadd.f32 %v6833_v50, %v9435_v42  ;;  %v6878_v19 = vpop.f32.mrf.mxu0  ;;  %v9556_v2 = vadd.f32 %v3345_v36, %v2698_v32 }
 0x1e7   : > { %v2622_v63 = vpop.f32.mrf.mxu1 }
 0x1e8   : > { %10291 = vst [vmem:[#allocation26_spill] sm:$0xff] %v9556_v2  ;;  %v2699_v37 = vadd.f32 %v2622_v63, %v9449_v18  ;;  %v3393_v40 = vpop.f32.mrf.mxu0  ;;  %v9559_v55 = vadd.f32 %v6867_v27, %v2701_v57 }
 0x1e9   : > { %v6836_v21 = vpop.f32.mrf.mxu1 }
 0x1ea   : > { %v2704_v43 = vadd.f32 %v6836_v21, %v9453_v62  ;;  %v6879_v49 = vpop.f32.mrf.mxu0  ;;  %v9562_v20 = vadd.f32 %v3348_v56, %v2699_v37 }
 0x1eb   : > { %v2635_v45 = vpop.f32.mrf.mxu1 }
 0x1ec   : > { %v2702_v11 = vadd.f32 %v2635_v45, %v9457_v10  ;;  %v3396_v17 = vpop.f32.mrf.mxu0  ;;  %v9565_v42 = vadd.f32 %v6870_v54, %v2704_v43 }
 0x1ed   : > { %v6837_v36 = vpop.f32.mrf.mxu1 }
 0x1ee   : > { %v2705_v23 = vadd.f32 %v6837_v36, %v9461_v22  ;;  %v9568_v46 = vpop.f32.mrf.mxu0  ;;  %v9570_v18 = vadd.f32 %v3361_v3, %v2702_v11 }
 0x1ef   : > { %v2638_v27 = vpop.f32.mrf.mxu1 }
 0x1f0   : > { %v2703_v28 = vadd.f32 %v2638_v27, %v9471_v7  ;;  %v9573_v62 = vpop.f32.mrf.mxu0  ;;  %v9575_v56 = vadd.f32 %v6871_v5, %v2705_v23 }
 0x1f1   : > { %v6840_v41 = vpop.f32.mrf.mxu1 }
 0x1f2   : > { %v2708_v10 = vadd.f32 %v6840_v41, %v9475_v13  ;;  %v9578_v30 = vpop.f32.mrf.mxu0  ;;  %v9580_v54 = vadd.f32 %v3364_v51, %v2703_v28 }
 0x1f3   : > { %v2651_v25 = vpop.f32.mrf.mxu1 }
 0x1f4   : > { %v2706_v22 = vadd.f32 %v2651_v25, %v9479_v12  ;;  %v9583_v32 = vpop.f32.mrf.mxu0  ;;  %v9585_v3 = vadd.f32 %v6874_v39, %v2708_v10 }
 0x1f5   : > { %v6841_v50 = vpop.f32.mrf.mxu1 }
 0x1f6   : > { %10292 = vst [vmem:[#allocation28_spill] sm:$0xff] %v9585_v3  ;;  %v2709_v7 = vadd.f32 %v6841_v50, %v9483_v31  ;;  %v9588_v57 = vpop.f32.mrf.mxu0  ;;  %v9590_v5 = vadd.f32 %v3377_v8, %v2706_v22 }
 0x1f7   : > { %v2654_v63 = vpop.f32.mrf.mxu1 }
 0x1f8   : > { %v2707_v13 = vadd.f32 %v2654_v63, %v9488_v14  ;;  %v9593_v37 = vpop.f32.mrf.mxu0  ;;  %v9595_v51 = vadd.f32 %v6875_v48, %v2709_v7 }
 0x1f9   : > { %v6844_v21 = vpop.f32.mrf.mxu1 }
 0x1fa   : > { %v2712_v12 = vadd.f32 %v6844_v21, %v9492_v61  ;;  %v9598_v43 = vpop.f32.mrf.mxu0  ;;  %v9600_v39 = vadd.f32 %v3380_v6, %v2707_v13 }
 0x1fb   : > { %10293 = vst [vmem:[#allocation29_spill] sm:$0xff] %v9598_v43  ;;  %v2667_v45 = vpop.f32.mrf.mxu1 }
 0x1fc   : > { %v2710_v31 = vadd.f32 %v2667_v45, %v9496_v52  ;;  %v9603_v11 = vpop.f32.mrf.mxu0  ;;  %v9605_v8 = vadd.f32 %v6878_v19, %v2712_v12 }
 0x1fd   : > { %10294 = vst [vmem:[#allocation12_spill] sm:$0xff] %v9603_v11  ;;  %v6845_v36 = vpop.f32.mrf.mxu1 }
 0x1fe   : > { %v2713_v14 = vadd.f32 %v6845_v36, %v9499_v35  ;;  %v9608_v23 = vpop.f32.mrf.mxu0  ;;  %v9610_v48 = vadd.f32 %v3393_v40, %v2710_v31 }
 0x1ff   : > { %10295 = vst [vmem:[#allocation15_spill] sm:$0xff] %v9608_v23  ;;  %v2670_v27 = vpop.f32.mrf.mxu1 }
 0x200   : > { %v2711_v61 = vadd.f32 %v2670_v27, %v9502_v1  ;;  %v9613_v28 = vpop.f32.mrf.mxu0  ;;  %v9615_v6 = vadd.f32 %v6879_v49, %v2713_v14 }
 0x201   : > { %10296 = vst [vmem:[#allocation13_spill] sm:$0xff] %v9613_v28  ;;  %v9617_v41 = vpop.f32.mrf.mxu1 }
 0x202   : > { %v9619_v52 = vpop.f32.mrf.mxu0  ;;  %v9621_v19 = vadd.f32 %v3396_v17, %v2711_v61 }
 0x203   : > { %10297 = vst [vmem:[#allocation16_spill] sm:$0xff] %v9619_v52  ;;  %v9623_v10 = vpop.f32.mrf.mxu1 }
 0x204   : > { %v9625_v35 = vpop.f32.mrf.mxu0 }
 0x205   : > { %10298 = vst [vmem:[#allocation18_spill] sm:$0xff] %v9625_v35  ;;  %v9627_v25 = vpop.f32.mrf.mxu1  ;;  %v7256_v35 = vmov 0.0  }
 0x206   : > { %v9629_v40 = vpop.f32.mrf.mxu0  ;;  %5575 = vst.msk [vmem:[%s9665_s27] sm:$0x1] %vm277_vm2, %v7256_v35  ;;  %5576 = vst.msk [vmem:[%s9677_s29] sm:$0x1] %vm277_vm2, %v7256_v35 }
 0x207   : > { %10299 = vst [vmem:[#allocation20_spill] sm:$0xff] %v9629_v40  ;;  %v9631_v22 = vpop.f32.mrf.mxu1 }
 0x208   : > { %v9633_v1 = vpop.f32.mrf.mxu0 }
 0x209   : > { %10300 = vst [vmem:[#allocation22_spill] sm:$0xff] %v9633_v1  ;;  %v9635_v49 = vpop.f32.mrf.mxu1 }
 0x20a   : > { %v6931_v50 = vpop.f32.mrf.mxu0 }
 0x20b   : > { %v9637_v7 = vpop.f32.mrf.mxu1 }
 0x20c   : > { %v9639_v17 = vpop.f32.mrf.mxu0 }
 0x20d   : > { %10301 = vst [vmem:[#allocation24_spill] sm:$0xff] %v9639_v17  ;;  %v9641_v63 = vpop.f32.mrf.mxu1 }
 0x20e   : > { %v9643_v13 = vpop.f32.mrf.mxu0 }
 0x20f   : > { %10302 = vst [vmem:[#allocation27_spill] sm:$0xff] %v9643_v13  ;;  %v9645_v21 = vpop.f32.mrf.mxu1 }
 0x210   : > { %v9647_v12 = vpop.f32.mrf.mxu0 }
 0x211   : > { %10303 = vst [vmem:[#allocation30_spill] sm:$0xff] %v9647_v12  ;;  %v9649_v45 = vpop.f32.mrf.mxu1 }
 0x212   : > { %v6935_v31 = vpop.f32.mrf.mxu0 }
 0x213   : > { %v9651_v36 = vpop.f32.mrf.mxu1 }
 0x214   : > { %v4180_v14 = vpop.f32.mrf.mxu0 }
 0x215   : > { %v9653_v27 = vpop.f32.mrf.mxu1 }
 0x216   : > { %10304 = vst [vmem:[#allocation31_spill] sm:$0xff] %v9653_v27  ;;  %v6938_v61 = vpop.f32.mrf.mxu0 }
 0x217   : > { %v9655_v3 = vpop.f32.mrf.mxu1 }
 0x218   : > { %10305 = vst [vmem:[#allocation32_spill] sm:$0xff] %v9655_v3  ;;  %v4193_v17 = vpop.f32.mrf.mxu0 }
 0x219   : > { %v9657_v1 = vpop.f32.mrf.mxu1 }
 0x21a   : > { %10306 = vst [vmem:[#allocation33_spill] sm:$0xff] %v9657_v1  ;;  %v6939_v40 = vpop.f32.mrf.mxu0 }
 0x21b   : > { %v9662_v12 = vpop.f32.mrf.mxu1 }
 0x21c   : > { %10307 = vst [vmem:[#allocation35_spill] sm:$0xff] %v9662_v12  ;;  %v4196_v13 = vpop.f32.mrf.mxu0 }
 0x21d   : > { %v6897_v52 = vpop.f32.mrf.mxu1 }
 0x21e   : > { %v3893_v2 = vadd.f32 %v6897_v52, %v9547_v9  ;;  %v9670_v28 = vpop.f32.mrf.mxu0 }
 0x21f   : > { %10308 = vst [vmem:[#allocation36_spill] sm:$0xff] %v9670_v28  ;;  %v9672_v23 = vpop.f32.mrf.mxu1 }
 0x220   : > { %10309 = vst [vmem:[#allocation37_spill] sm:$0xff] %v9672_v23  ;;  %v4209_v11 = vpop.f32.mrf.mxu0  ;;  %v9674_v44 = vadd.f32 %v6931_v50, %v3893_v2 }
 0x221   : > { %v9681_v26 = vpop.f32.mrf.mxu1 }
 0x222   : > { %10310 = vst [vmem:[#allocation10_spill] sm:$0xff] %v9674_v44  ;;  %10311 = vst [vmem:[#allocation9_spill] sm:$0xff] %v9681_v26  ;;  %v6943_v12 = vpop.f32.mrf.mxu0 }
 0x223   : > { %v9683_v29 = vpop.f32.mrf.mxu1 }
 0x224   : > { %10312 = vst [vmem:[#allocation11_spill] sm:$0xff] %v9683_v29  ;;  %v4212_v1 = vpop.f32.mrf.mxu0 }
 0x225   : > { %v6901_v33 = vpop.f32.mrf.mxu1 }
 0x226   : > { %v3897_v9 = vadd.f32 %v6901_v33, %v9559_v55  ;;  %v6946_v52 = vpop.f32.mrf.mxu0 }
 0x227   : > { %v3818_v28 = vpop.f32.mrf.mxu1 }
 0x228   : > { %v3895_v23 = vadd.f32 %v3818_v28, %v9562_v20  ;;  %v4225_v2 = vpop.f32.mrf.mxu0  ;;  %v9687_v50 = vadd.f32 %v6935_v31, %v3897_v9 }
 0x229   : > { %v6904_v44 = vpop.f32.mrf.mxu1 }
 0x22a   : > { %v3900_v3 = vadd.f32 %v6904_v44, %v9565_v42  ;;  %v6947_v35 = vpop.f32.mrf.mxu0  ;;  %v9690_v53 = vadd.f32 %v4180_v14, %v3895_v23 }
 0x22b   : > { %v3831_v26 = vpop.f32.mrf.mxu1 }
 0x22c   : > { %v3898_v29 = vadd.f32 %v3831_v26, %v9570_v18  ;;  %v4228_v27 = vpop.f32.mrf.mxu0  ;;  %v9693_v15 = vadd.f32 %v6938_v61, %v3900_v3 }
 0x22d   : > { %v6905_v33 = vpop.f32.mrf.mxu1 }
 0x22e   : > { %v3901_v55 = vadd.f32 %v6905_v33, %v9575_v56  ;;  %v6986_v43 = vpop.f32.mrf.mxu0  ;;  %v9696_v20 = vadd.f32 %v4193_v17, %v3898_v29 }
 0x22f   : > { %v3834_v28 = vpop.f32.mrf.mxu1 }
 0x230   : > { %v3899_v31 = vadd.f32 %v3834_v28, %v9580_v54  ;;  %v5309_v9 = vpop.f32.mrf.mxu0  ;;  %v9699_v44 = vadd.f32 %v6939_v40, %v3901_v55 }
 0x231   : > { %v9701_v42 = vpop.f32.mrf.mxu1 }
 0x232   : > { %v9703_v23 = vpop.f32.mrf.mxu0  ;;  %v9705_v26 = vadd.f32 %v4196_v13, %v3899_v31 }
 0x233   : > { %v3847_v18 = vpop.f32.mrf.mxu1 }
 0x234   : > { %v3902_v3 = vadd.f32 %v3847_v18, %v9590_v5  ;;  %v9708_v14 = vpop.f32.mrf.mxu0 }
 0x235   : > { %v6909_v56 = vpop.f32.mrf.mxu1 }
 0x236   : > { %v3905_v29 = vadd.f32 %v6909_v56, %v9595_v51  ;;  %v9711_v17 = vpop.f32.mrf.mxu0  ;;  %v9713_v54 = vadd.f32 %v4209_v11, %v3902_v3  ;;  %v3880_v51 = vadd.f32 %v9617_v41, %v9505_v4  ;;  %v3881_v4 = vadd.f32 %v9627_v25, %v9511_v34 }
 0x237   : > { %v3850_v40 = vpop.f32.mrf.mxu1  ;;  %v3885_v34 = vadd.f32 %v9641_v63, %v9523_v16 }
 0x238   : > { %v3903_v61 = vadd.f32 %v3850_v40, %v9600_v39  ;;  %v9716_v33 = vpop.f32.mrf.mxu0  ;;  %v9718_v55 = vadd.f32 %v6943_v12, %v3905_v29  ;;  %v3878_v12 = vadd.f32 %v9623_v10, %v9508_v24  ;;  %v3884_v40 = vadd.f32 %v9635_v49, %v9517_v47  ;;  %v9763_v47 = vld [vmem:[%s10145_s2] ss:$0 sm:$0xff] }
 0x239   : > { %v6912_v13 = vpop.f32.mrf.mxu1  ;;  %v3882_v24 = vadd.f32 %v9637_v7, %v9520_v0 }
 0x23a   : > { %v3908_v28 = vadd.f32 %v6912_v13, %v9605_v8  ;;  %v9721_v5 = vpop.f32.mrf.mxu0  ;;  %v9723_v31 = vadd.f32 %v4212_v1, %v3903_v61  ;;  %v4246_v63 = vadd.f32 %v9588_v57, %v3884_v40  ;;  %v3888_v13 = vadd.f32 %v9649_v45, %v9529_v59  ;;  %v10319_v59 = vld [vmem:[#allocation33_spill] sm:$0xff] }
 0x23b   : > { %v3863_v18 = vpop.f32.mrf.mxu1 }
 0x23c   : > { %v3906_v11 = vadd.f32 %v3863_v18, %v9610_v48  ;;  %v9728_v3 = vpop.f32.mrf.mxu0  ;;  %v9730_v39 = vadd.f32 %v6946_v52, %v3908_v28  ;;  %v3879_v48 = vadd.f32 %v9631_v22, %v9514_v60  ;;  %v4242_v52 = vadd.f32 %v9568_v46, %v3880_v51  ;;  %v10314_v51 = vld [vmem:[#allocation19_spill] sm:$0xff] }
 0x23d   : > { %v6913_v56 = vpop.f32.mrf.mxu1  ;;  %v4240_v22 = vadd.f32 %v9573_v62, %v3878_v12  ;;  %v4244_v62 = vadd.f32 %v9593_v37, %v3882_v24  ;;  %v10315_v18 = vld [vmem:[#allocation31_spill] sm:$0xff] }
 0x23e   : > { %v3909_v8 = vadd.f32 %v6913_v56, %v9615_v6  ;;  %v9735_v29 = vpop.f32.mrf.mxu0  ;;  %v9737_v1 = vadd.f32 %v4225_v2, %v3906_v11  ;;  %v4241_v49 = vadd.f32 %v9583_v32, %v3879_v48  ;;  %v10313_v32 = vld [vmem:[#allocation29_spill] sm:$0xff]  ;;  %v3889_v57 = vadd.f32 %v10315_v18, %v10314_v51  ;;  %v10320_v48 = vld [vmem:[#allocation34_spill] sm:$0xff] }
 0x23f   : > { %v3866_v41 = vpop.f32.mrf.mxu1  ;;  %v10328_v18 = vld [vmem:[#allocation13_spill] sm:$0xff] }
 0x240   : > { %v3907_v6 = vadd.f32 %v3866_v41, %v9621_v19  ;;  %v9749_v10 = vpop.f32.mrf.mxu0  ;;  %v9751_v2 = vadd.f32 %v6947_v35, %v3909_v8  ;;  %v4243_v19 = vadd.f32 %v9578_v30, %v3881_v4  ;;  %v3886_v30 = vadd.f32 %v9651_v36, %v9532_v38  ;;  %v10316_v8 = vld [vmem:[#allocation21_spill] sm:$0xff]  ;;  %v10318_v4 = vld [vmem:[#allocation23_spill] sm:$0xff] }
 0x241   : > { %v6952_v25 = vpop.f32.mrf.mxu1  ;;  %v3892_v45 = vadd.f32 %v10319_v59, %v10318_v4  ;;  %v10321_v38 = vld [vmem:[#allocation35_spill] sm:$0xff]  ;;  %v10322_v41 = vld [vmem:[#allocation25_spill] sm:$0xff] }
 0x242   : > { %v4968_v60 = vadd.f32 %v6952_v25, %v4242_v52  ;;  %v9756_v46 = vpop.f32.mrf.mxu0  ;;  %v9758_v61 = vadd.f32 %v4228_v27, %v3907_v6  ;;  %v3883_v27 = vadd.f32 %v9645_v21, %v9526_v58  ;;  %v10317_v58 = vld [vmem:[#allocation32_spill] sm:$0xff]  ;;  %v3890_v36 = vadd.f32 %v10321_v38, %v10320_v48  ;;  %v10323_v52 = vld [vmem:[#allocation37_spill] sm:$0xff] }
 0x243   : > { %v4839_v0 = vpop.f32.mrf.mxu1  ;;  %v3887_v21 = vadd.f32 %v10317_v58, %v10316_v8  ;;  %v3891_v40 = vadd.f32 %v10323_v52, %v10322_v41  ;;  %v9807_v8 = vadd.f32 %v10328_v18, %v3886_v30  ;;  %v10330_v58 = vld [vmem:[#allocation11_spill] sm:$0xff]  ;;  %v10331_v38 = vld [vmem:[#allocation16_spill] sm:$0xff]  ;;  %v10332_v30 = vld [vmem:[#allocation18_spill] sm:$0xff] }
 0x244   : > { %v5438_v7 = vadd.f32 %v6986_v43, %v4968_v60  ;;  %v4966_v16 = vadd.f32 %v4839_v0, %v4240_v22  ;;  %v9769_v35 = vpop.f32.mrf.mxu0  ;;  %v4247_v43 = vadd.f32 %v10313_v32, %v3885_v34  ;;  %v10324_v22 = vld [vmem:[#allocation38_spill] sm:$0xff]  ;;  %v10325_v0 = vld [vmem:[#allocation9_spill] sm:$0xff]  ;;  %v10327_v32 = vld [vmem:[#allocation15_spill] sm:$0xff] }
 0x245   : > { %v6953_v28 = vpop.f32.mrf.mxu1  ;;  %v4250_v51 = vadd.f32 %v10327_v32, %v3888_v13  ;;  %v9818_v13 = vadd.f32 %v10331_v38, %v3889_v57  ;;  %v9821_v41 = vadd.f32 %v10332_v30, %v3887_v21 }
 0x246   : > { %v5477_v37 = vadd.f32 %v9763_v47, %v5438_v7  ;;  %v5436_v11 = vadd.f32 %v5309_v9, %v4966_v16  ;;  %v4969_v56 = vadd.f32 %v6953_v28, %v4243_v19  ;;  %v9781_v12 = vpop.f32.mrf.mxu0  ;;  %v3896_v19 = vadd.f32 %v10325_v0, %v10324_v22  ;;  %v10326_v16 = vld [vmem:[#allocation12_spill] sm:$0xff] }
 0x247   : > { %v4842_v9 = vpop.f32.mrf.mxu1  ;;  %v4245_v28 = vadd.f32 %v10326_v16, %v3883_v27  ;;  %v10336_v16 = vld [vmem:[#allocation27_spill] sm:$0xff] }
 0x248   : > { %v5509_v24 = vmax.f32 %v5477_v37, 0.0  ;;  %v5475_v6 = vadd.f32 %v9763_v47, %v5436_v11  ;;  %v5439_v34 = vadd.f32 %v9703_v23, %v4969_v56  ;;  %v4967_v25 = vadd.f32 %v4842_v9, %v4241_v49  ;;  %v9800_v60 = vpop.f32.mrf.mxu0  ;;  %v10329_v37 = vld [vmem:[#allocation26_spill] sm:$0xff]  ;;  %v10333_v9 = vld [vmem:[#allocation20_spill] sm:$0xff] }
 0x249   : > { %v6956_v7 = vpop.f32.mrf.mxu1  ;;  %v3894_v11 = vadd.f32 %v10330_v58, %v10329_v37  ;;  %v9839_v32 = vadd.f32 %v10336_v16, %v3896_v19 }
 0x24a   : > { %5541 = vst.msk [vmem:[%s9796_s11 + $0x10] sm:$0xff] %vm1389_vm8, %v5509_v24  ;;  %v5653_v23 = vmul.f32 %v5509_v24, %v5509_v24  ;;  %v5507_v49 = vmax.f32 %v5475_v6, 0.0  ;;  %v5478_v56 = vadd.f32 %v9763_v47, %v5439_v34  ;;  %v9814_v4 = vpop.f32.mrf.mxu0  ;;  %v5437_v59 = vadd.f32 %v9708_v14, %v4967_v25  ;;  %v10334_v34 = vld [vmem:[#allocation22_spill] sm:$0xff]  ;;  %v10335_v14 = vld [vmem:[#allocation24_spill] sm:$0xff] }
 0x24b   : > { %v4972_v48 = vadd.f32 %v6956_v7, %v4246_v63  ;;  %v4855_v27 = vpop.f32.mrf.mxu1  ;;  %v9826_v6 = vadd.f32 %v10333_v9, %v3892_v45  ;;  %v9829_v22 = vadd.f32 %v10334_v34, %v3890_v36  ;;  %v9834_v63 = vadd.f32 %v10335_v14, %v3891_v40  ;;  %v10337_v40 = vld [vmem:[#allocation30_spill] sm:$0xff] }
 0x24c   : > { %5539 = vst.msk [vmem:[%s9796_s11] sm:$0xff] %vm1389_vm8, %v5507_v49  ;;  %v5510_v52 = vmax.f32 %v5478_v56, 0.0  ;;  %v9831_v0 = vpop.f32.mrf.mxu0  ;;  %v5476_v57 = vadd.f32 %v9763_v47, %v5437_v59  ;;  %v4970_v21 = vadd.f32 %v4855_v27, %v4244_v62  ;;  %v5581_v45 = vsel %vm1389_vm8, %v5509_v24, 0.0 }
 0x24d   : > { %v5442_v25 = vadd.f32 %v9711_v17, %v4972_v48  ;;  %v6957_v7 = vpop.f32.mrf.mxu1  ;;  %v5686_v36 = vsel %vm1389_vm8, %v5653_v23, 0.0  ;;  %v9848_v58 = vadd.f32 %v10337_v40, %v3894_v11  ;;  %v5651_v56 = vmul.f32 %v5507_v49, %v5507_v49 }
 0x24e   : > { %5542 = vst.msk [vmem:[%s9796_s11 + $0x18] sm:$0xff] %vm1389_vm8, %v5510_v52  ;;  %v4973_v18 = vadd.f32 %v6957_v7, %v4247_v43  ;;  %v9845_v37 = vpop.f32.mrf.mxu0  ;;  %v5508_v17 = vmax.f32 %v5476_v57, 0.0  ;;  %v5440_v19 = vadd.f32 %v9716_v33, %v4970_v21  ;;  %v5578_v24 = vsel %vm1389_vm8, %v5507_v49, 0.0 }
 0x24f   : > { %v5481_v62 = vadd.f32 %v9763_v47, %v5442_v25  ;;  %v4858_v59 = vpop.f32.mrf.mxu1  ;;  %v5654_v48 = vmul.f32 %v5510_v52, %v5510_v52  ;;  %v5583_v57 = vsel %vm1389_vm8, %v5510_v52, 0.0 }
 0x250   : > { %v5443_v23 = vadd.f32 %v9721_v5, %v4973_v18  ;;  %v4971_v27 = vadd.f32 %v4858_v59, %v4245_v28  ;;  %v9854_v43 = vpop.f32.mrf.mxu0  ;;  %5540 = vst.msk [vmem:[%s9796_s11 + $0x8] sm:$0xff] %vm1389_vm8, %v5508_v17  ;;  %v5579_v11 = vsel %vm1389_vm8, %v5508_v17, 0.0  ;;  %v5652_v38 = vmul.f32 %v5508_v17, %v5508_v17 }
 0x251   : > { %v5513_v30 = vmax.f32 %v5481_v62, 0.0  ;;  %v5479_v9 = vadd.f32 %v9763_v47, %v5440_v19  ;;  %v6960_v34 = vpop.f32.mrf.mxu1  ;;  %v5580_v33 = vadd.f32 %v5579_v11, %v5578_v24  ;;  %v5683_v28 = vsel %vm1389_vm8, %v5651_v56, 0.0 }
 0x252   : > { %v5482_v14 = vadd.f32 %v9763_v47, %v5443_v23  ;;  %v5441_v49 = vadd.f32 %v9728_v3, %v4971_v27  ;;  %v4976_v5 = vadd.f32 %v6960_v34, %v4250_v51  ;;  %v5684_v25 = vsel %vm1389_vm8, %v5652_v38, 0.0  ;;  %v9867_v16 = vpop.f32.mrf.mxu0 }
 0x253   : > { %5545 = vst.msk [vmem:[%s9796_s11 + $0x30] sm:$0xff] %vm1389_vm8, %v5513_v30  ;;  %v5511_v21 = vmax.f32 %v5479_v9, 0.0  ;;  %v4871_v7 = vpop.f32.mrf.mxu1  ;;  %v5582_v18 = vadd.f32 %v5581_v45, %v5580_v33  ;;  %v5685_v40 = vadd.f32 %v5684_v25, %v5683_v28  ;;  %v5688_v3 = vsel %vm1389_vm8, %v5654_v48, 0.0 }
 0x254   : > { %v5514_v17 = vmax.f32 %v5482_v14, 0.0  ;;  %v5480_v62 = vadd.f32 %v9763_v47, %v5441_v49  ;;  %v5589_v51 = vsel %vm1389_vm8, %v5513_v30, 0.0  ;;  %v5446_v56 = vadd.f32 %v9735_v29, %v4976_v5  ;;  %v9880_v34 = vpop.f32.mrf.mxu0 }
 0x255   : > { %5543 = vst.msk [vmem:[%s9796_s11 + $0x20] sm:$0xff] %vm1389_vm8, %v5511_v21  ;;  %v5655_v52 = vmul.f32 %v5511_v21, %v5511_v21  ;;  %v6961_v19 = vpop.f32.mrf.mxu1  ;;  %v5687_v59 = vadd.f32 %v5686_v36, %v5685_v40  ;;  %v5657_v24 = vmul.f32 %v5513_v30, %v5513_v30  ;;  %v5584_v23 = vadd.f32 %v5583_v57, %v5582_v18 }
 0x256   : > { %v5585_v45 = vsel %vm1389_vm8, %v5511_v21, 0.0  ;;  %5546 = vst.msk [vmem:[%s9796_s11 + $0x38] sm:$0xff] %vm1389_vm8, %v5514_v17  ;;  %v5658_v27 = vmul.f32 %v5514_v17, %v5514_v17  ;;  %v5512_v11 = vmax.f32 %v5480_v62, 0.0  ;;  %v5485_v48 = vadd.f32 %v9763_v47, %v5446_v56 }
 0x257   : > { %v4974_v38 = vadd.f32 %v4871_v7, %v9807_v8  ;;  %v4874_v9 = vpop.f32.mrf.mxu1  ;;  %v5586_v33 = vadd.f32 %v5585_v45, %v5584_v23  ;;  %v5689_v29 = vadd.f32 %v5688_v3, %v5687_v59  ;;  %v5690_v36 = vsel %vm1389_vm8, %v5655_v52, 0.0 }
 0x258   : > { %v4977_v30 = vadd.f32 %v6961_v19, %v9818_v13  ;;  %5544 = vst.msk [vmem:[%s9796_s11 + $0x28] sm:$0xff] %vm1389_vm8, %v5512_v11  ;;  %v5587_v14 = vsel %vm1389_vm8, %v5512_v11, 0.0  ;;  %v5656_v49 = vmul.f32 %v5512_v11, %v5512_v11  ;;  %v5517_v5 = vmax.f32 %v5485_v48, 0.0 }
 0x259   : > { %v5444_v28 = vadd.f32 %v9749_v10, %v4974_v38  ;;  %v6964_v57 = vpop.f32.mrf.mxu1  ;;  %v5691_v8 = vadd.f32 %v5690_v36, %v5689_v29  ;;  %v5588_v25 = vadd.f32 %v5587_v14, %v5586_v33  ;;  %v4975_v7 = vadd.f32 %v4874_v9, %v9821_v41  ;;  %v9896_v10 = vpop.f32.mrf.mxu0 }
 0x25a   : > { %v5447_v21 = vadd.f32 %v9756_v46, %v4977_v30  ;;  %v5694_v18 = vsel %vm1389_vm8, %v5657_v24, 0.0  ;;  %v5591_v40 = vsel %vm1389_vm8, %v5514_v17, 0.0  ;;  %v5692_v13 = vsel %vm1389_vm8, %v5656_v49, 0.0  ;;  %5549 = vst.msk [vmem:[%s9796_s11 + $0x50] sm:$0xff] %vm1389_vm8, %v5517_v5 }
 0x25b   : > { %v5483_v62 = vadd.f32 %v9763_v47, %v5444_v28  ;;  %v4887_v3 = vpop.f32.mrf.mxu1  ;;  %v5590_v52 = vadd.f32 %v5589_v51, %v5588_v25  ;;  %v5693_v56 = vadd.f32 %v5692_v13, %v5691_v8  ;;  %v5445_v41 = vadd.f32 %v9769_v35, %v4975_v7  ;;  %v10338_v25 = vld [vmem:[#allocation10_spill] sm:$0xff] }
 0x25c   : > { %v5486_v46 = vadd.f32 %v9763_v47, %v5447_v21  ;;  %v5696_v19 = vsel %vm1389_vm8, %v5658_v27, 0.0  ;;  %v4980_v17 = vadd.f32 %v6964_v57, %v9826_v6  ;;  %v4978_v24 = vadd.f32 %v4887_v3, %v9829_v22  ;;  %v9909_v6 = vpop.f32.mrf.mxu0 }
 0x25d   : > { %v5515_v59 = vmax.f32 %v5483_v62, 0.0  ;;  %v6965_v23 = vpop.f32.mrf.mxu1  ;;  %v5695_v45 = vadd.f32 %v5694_v18, %v5693_v56  ;;  %v5592_v11 = vadd.f32 %v5591_v40, %v5590_v52  ;;  %v5484_v38 = vadd.f32 %v9763_v47, %v5445_v41 }
 0x25e   : > { %v5518_v48 = vmax.f32 %v5486_v46, 0.0  ;;  %v5450_v35 = vadd.f32 %v9781_v12, %v4980_v17  ;;  %v5448_v27 = vadd.f32 %v9800_v60, %v4978_v24  ;;  %v5661_v22 = vmul.f32 %v5517_v5, %v5517_v5  ;;  %v9922_v52 = vpop.f32.mrf.mxu0 }
 0x25f   : > { %5547 = vst.msk [vmem:[%s9796_s11 + $0x40] sm:$0xff] %vm1389_vm8, %v5515_v59  ;;  %v5593_v51 = vsel %vm1389_vm8, %v5515_v59, 0.0  ;;  %v5659_v9 = vmul.f32 %v5515_v59, %v5515_v59  ;;  %v4890_v33 = vpop.f32.mrf.mxu1  ;;  %v5697_v36 = vadd.f32 %v5696_v19, %v5695_v45  ;;  %v5516_v49 = vmax.f32 %v5484_v38, 0.0 }
 0x260   : > { %v5594_v29 = vadd.f32 %v5593_v51, %v5592_v11  ;;  %5550 = vst.msk [vmem:[%s9796_s11 + $0x58] sm:$0xff] %vm1389_vm8, %v5518_v48  ;;  %v5662_v30 = vmul.f32 %v5518_v48, %v5518_v48  ;;  %v5489_v28 = vadd.f32 %v9763_v47, %v5450_v35  ;;  %v5487_v57 = vadd.f32 %v9763_v47, %v5448_v27 }
 0x261   : > { %v5698_v14 = vsel %vm1389_vm8, %v5659_v9, 0.0  ;;  %v6968_v12 = vpop.f32.mrf.mxu1  ;;  %v5597_v60 = vsel %vm1389_vm8, %v5517_v5, 0.0  ;;  %v4981_v21 = vadd.f32 %v6965_v23, %v10338_v25  ;;  %v4979_v7 = vadd.f32 %v4890_v33, %v9834_v63  ;;  %5548 = vst.msk [vmem:[%s9796_s11 + $0x48] sm:$0xff] %vm1389_vm8, %v5516_v49  ;;  %v9939_v9 = vpop.f32.mrf.mxu0 }
 0x262   : > { %v5699_v8 = vadd.f32 %v5698_v14, %v5697_v36  ;;  %v5595_v18 = vsel %vm1389_vm8, %v5516_v49, 0.0  ;;  %v5660_v40 = vmul.f32 %v5516_v49, %v5516_v49  ;;  %v5521_v13 = vmax.f32 %v5489_v28, 0.0 }
 0x263   : > { %v5519_v62 = vmax.f32 %v5487_v57, 0.0  ;;  %v4903_v3 = vpop.f32.mrf.mxu1  ;;  %v5596_v56 = vadd.f32 %v5595_v18, %v5594_v29  ;;  %v5451_v5 = vadd.f32 %v9814_v4, %v4981_v21  ;;  %v5449_v46 = vadd.f32 %v9831_v0, %v4979_v7  ;;  %v7010_v21 = vpop.f32.mrf.mxu0 }
 0x264   : > { %v4984_v41 = vadd.f32 %v6968_v12, %v9839_v32  ;;  %v5702_v63 = vsel %vm1389_vm8, %v5661_v22, 0.0  ;;  %v5599_v19 = vsel %vm1389_vm8, %v5518_v48, 0.0  ;;  %v5704_v59 = vsel %vm1389_vm8, %v5662_v30, 0.0  ;;  %5553 = vst.msk [vmem:[%s9796_s11 + $0x70] sm:$0xff] %vm1389_vm8, %v5521_v13 }
 0x265   : > { %v5700_v17 = vsel %vm1389_vm8, %v5660_v40, 0.0  ;;  %5551 = vst.msk [vmem:[%s9796_s11 + $0x60] sm:$0xff] %vm1389_vm8, %v5519_v62  ;;  %v6969_v24 = vpop.f32.mrf.mxu1  ;;  %v5598_v23 = vadd.f32 %v5597_v60, %v5596_v56  ;;  %v5663_v4 = vmul.f32 %v5519_v62, %v5519_v62  ;;  %v5490_v0 = vadd.f32 %v9763_v47, %v5451_v5 }
 0x266   : > { %v5701_v45 = vadd.f32 %v5700_v17, %v5699_v8  ;;  %v5665_v11 = vmul.f32 %v5521_v13, %v5521_v13  ;;  %v5488_v32 = vadd.f32 %v9763_v47, %v5449_v46  ;;  %v5454_v38 = vadd.f32 %v9845_v37, %v4984_v41 }
 0x267   : > { %v4982_v48 = vadd.f32 %v4903_v3, %v9848_v58  ;;  %v4906_v51 = vpop.f32.mrf.mxu1  ;;  %v5600_v27 = vadd.f32 %v5599_v19, %v5598_v23  ;;  %v5601_v33 = vsel %vm1389_vm8, %v5519_v62, 0.0  ;;  %v5522_v22 = vmax.f32 %v5490_v0, 0.0 }
 0x268   : > { %v5703_v35 = vadd.f32 %v5702_v63, %v5701_v45  ;;  %v5520_v29 = vmax.f32 %v5488_v32, 0.0  ;;  %v5493_v36 = vadd.f32 %v9763_v47, %v5454_v38  ;;  %v4985_v14 = vadd.f32 %v6969_v24, %v9687_v50  ;;  %v10339_v50 = vld [vmem:[#allocation28_spill] sm:$0xff]  ;;  %v5405_v45 = vpop.f32.mrf.mxu0 }
 0x269   : > { %v5452_v30 = vadd.f32 %v9854_v43, %v4982_v48  ;;  %v6972_v37 = vpop.f32.mrf.mxu1  ;;  %v5602_v49 = vadd.f32 %v5601_v33, %v5600_v27  ;;  %v5706_v58 = vsel %vm1389_vm8, %v5663_v4, 0.0  ;;  %5554 = vst.msk [vmem:[%s9796_s11 + $0x78] sm:$0xff] %vm1389_vm8, %v5522_v22  ;;  %v5666_v57 = vmul.f32 %v5522_v22, %v5522_v22 }
 0x26a   : > { %v5705_v28 = vadd.f32 %v5704_v59, %v5703_v35  ;;  %5552 = vst.msk [vmem:[%s9796_s11 + $0x68] sm:$0xff] %vm1389_vm8, %v5520_v29  ;;  %v5603_v12 = vsel %vm1389_vm8, %v5520_v29, 0.0  ;;  %v5664_v60 = vmul.f32 %v5520_v29, %v5520_v29  ;;  %v5525_v8 = vmax.f32 %v5493_v36, 0.0 }
 0x26b   : > { %v5491_v25 = vadd.f32 %v9763_v47, %v5452_v30  ;;  %v4919_v43 = vpop.f32.mrf.mxu1  ;;  %v3904_v7 = vadd.f32 %v9701_v42, %v10339_v50  ;;  %v5604_v40 = vadd.f32 %v5603_v12, %v5602_v49  ;;  %v5455_v62 = vadd.f32 %v9867_v16, %v4985_v14 }
 0x26c   : > { %v5707_v18 = vadd.f32 %v5706_v58, %v5705_v28  ;;  %v5605_v3 = vsel %vm1389_vm8, %v5521_v13, 0.0  ;;  %v5710_v56 = vsel %vm1389_vm8, %v5665_v11, 0.0  ;;  %v5708_v5 = vsel %vm1389_vm8, %v5664_v60, 0.0  ;;  %5557 = vst.msk [vmem:[%s9796_s11 + $0x90] sm:$0xff] %vm1389_vm8, %v5525_v8 }
 0x26d   : > { %v5523_v46 = vmax.f32 %v5491_v25, 0.0  ;;  %v6973_v41 = vpop.f32.mrf.mxu1  ;;  %v5606_v63 = vadd.f32 %v5605_v3, %v5604_v40  ;;  %v5494_v59 = vadd.f32 %v9763_v47, %v5455_v62  ;;  %v4983_v42 = vadd.f32 %v4906_v51, %v9690_v53 }
 0x26e   : > { %v5709_v19 = vadd.f32 %v5708_v5, %v5707_v18  ;;  %v5607_v17 = vsel %vm1389_vm8, %v5522_v22, 0.0  ;;  %v5712_v16 = vsel %vm1389_vm8, %v5666_v57, 0.0  ;;  %v4988_v24 = vadd.f32 %v6972_v37, %v9693_v15  ;;  %v10340_v22 = vld [vmem:[#allocation36_spill] sm:$0xff] }
 0x26f   : > { %5555 = vst.msk [vmem:[%s9796_s11 + $0x80] sm:$0xff] %vm1389_vm8, %v5523_v46  ;;  %v5667_v13 = vmul.f32 %v5523_v46, %v5523_v46  ;;  %v4922_v23 = vpop.f32.mrf.mxu1  ;;  %v5608_v0 = vadd.f32 %v5607_v17, %v5606_v63  ;;  %v5526_v11 = vmax.f32 %v5494_v59, 0.0  ;;  %v5453_v32 = vadd.f32 %v9880_v34, %v4983_v42 }
 0x270   : > { %v5711_v4 = vadd.f32 %v5710_v56, %v5709_v19  ;;  %v5609_v38 = vsel %vm1389_vm8, %v5523_v46, 0.0  ;;  %v5458_v53 = vadd.f32 %v9896_v10, %v4988_v24  ;;  %v4986_v48 = vadd.f32 %v4919_v43, %v9696_v20 }
 0x271   : > { %v4989_v51 = vadd.f32 %v6973_v41, %v9699_v44  ;;  %v6976_v35 = vpop.f32.mrf.mxu1  ;;  %v5610_v27 = vadd.f32 %v5609_v38, %v5608_v0  ;;  %v5714_v15 = vsel %vm1389_vm8, %v5667_v13, 0.0  ;;  %5558 = vst.msk [vmem:[%s9796_s11 + $0x98] sm:$0xff] %vm1389_vm8, %v5526_v11  ;;  %v4266_v29 = vadd.f32 %v10340_v22, %v3904_v7  ;;  %v7011_v44 = vpop.f32.mrf.mxu0 }
 0x272   : > { %v5713_v33 = vadd.f32 %v5712_v16, %v5711_v4  ;;  %v5492_v36 = vadd.f32 %v9763_v47, %v5453_v32  ;;  %v5497_v34 = vadd.f32 %v9763_v47, %v5458_v53  ;;  %v5456_v30 = vadd.f32 %v9909_v6, %v4986_v48 }
 0x273   : > { %v5459_v10 = vadd.f32 %v9922_v52, %v4989_v51  ;;  %v4935_v20 = vpop.f32.mrf.mxu1  ;;  %v5669_v14 = vmul.f32 %v5525_v8, %v5525_v8  ;;  %v4987_v49 = vadd.f32 %v4922_v23, %v9705_v26  ;;  %v4992_v28 = vadd.f32 %v6976_v35, %v4266_v29  ;;  %v5408_v40 = vpop.f32.mrf.mxu0 }
 0x274   : > { %v5715_v37 = vadd.f32 %v5714_v15, %v5713_v33  ;;  %v5524_v58 = vmax.f32 %v5492_v36, 0.0  ;;  %v5529_v57 = vmax.f32 %v5497_v34, 0.0  ;;  %v5495_v12 = vadd.f32 %v9763_v47, %v5456_v30 }
 0x275   : > { %v5498_v60 = vadd.f32 %v9763_v47, %v5459_v10  ;;  %v6977_v25 = vpop.f32.mrf.mxu1  ;;  %v5457_v6 = vadd.f32 %v9939_v9, %v4987_v49  ;;  %v5462_v43 = vadd.f32 %v7010_v21, %v4992_v28  ;;  %v4990_v52 = vadd.f32 %v4935_v20, %v9713_v54  ;;  %v7014_v23 = vpop.f32.mrf.mxu0 }
 0x276   : > { %v5613_v50 = vsel %vm1389_vm8, %v5525_v8, 0.0  ;;  %v5670_v7 = vmul.f32 %v5526_v11, %v5526_v11  ;;  %5556 = vst.msk [vmem:[%s9796_s11 + $0x88] sm:$0xff] %vm1389_vm8, %v5524_v58  ;;  %v5611_v26 = vsel %vm1389_vm8, %v5524_v58, 0.0  ;;  %v5668_v18 = vmul.f32 %v5524_v58, %v5524_v58  ;;  %5561 = vst.msk [vmem:[%s9796_s11 + $0xb0] sm:$0xff] %vm1389_vm8, %v5529_v57 }
 0x277   : > { %v4938_v62 = vpop.f32.mrf.mxu1  ;;  %v5612_v3 = vadd.f32 %v5611_v26, %v5610_v27  ;;  %v5527_v56 = vmax.f32 %v5495_v12, 0.0  ;;  %v5530_v9 = vmax.f32 %v5498_v60, 0.0  ;;  %v5496_v21 = vadd.f32 %v9763_v47, %v5457_v6  ;;  %v5421_v34 = vpop.f32.mrf.mxu0 }
 0x278   : > { %v5718_v54 = vsel %vm1389_vm8, %v5669_v14, 0.0  ;;  %v5716_v8 = vsel %vm1389_vm8, %v5668_v18, 0.0  ;;  %v5501_v5 = vadd.f32 %v9763_v47, %v5462_v43  ;;  %v5460_v46 = vadd.f32 %v5405_v45, %v4990_v52 }
 0x279   : > { %v6980_v41 = vpop.f32.mrf.mxu1  ;;  %v5615_v63 = vsel %vm1389_vm8, %v5526_v11, 0.0  ;;  %v5614_v19 = vadd.f32 %v5613_v50, %v5612_v3  ;;  %v5717_v59 = vadd.f32 %v5716_v8, %v5715_v37  ;;  %5559 = vst.msk [vmem:[%s9796_s11 + $0xa0] sm:$0xff] %vm1389_vm8, %v5527_v56  ;;  %v5671_v42 = vmul.f32 %v5527_v56, %v5527_v56  ;;  %5562 = vst.msk [vmem:[%s9796_s11 + $0xb8] sm:$0xff] %vm1389_vm8, %v5530_v9  ;;  %v7015_v52 = vpop.f32.mrf.mxu0 }
 0x27a   : > { %v5720_v17 = vsel %vm1389_vm8, %v5670_v7, 0.0  ;;  %v5528_v16 = vmax.f32 %v5496_v21, 0.0  ;;  %v5533_v13 = vmax.f32 %v5501_v5, 0.0  ;;  %v4993_v24 = vadd.f32 %v6977_v25, %v9718_v55 }
 0x27b   : > { %v4951_v45 = vpop.f32.mrf.mxu1  ;;  %v5719_v4 = vadd.f32 %v5718_v54, %v5717_v59  ;;  %v5673_v0 = vmul.f32 %v5529_v57, %v5529_v57  ;;  %v5616_v11 = vadd.f32 %v5615_v63, %v5614_v19  ;;  %v5499_v32 = vadd.f32 %v9763_v47, %v5460_v46 }
 0x27c   : > { %v5621_v38 = vsel %vm1389_vm8, %v5529_v57, 0.0  ;;  %v5617_v53 = vsel %vm1389_vm8, %v5527_v56, 0.0  ;;  %5560 = vst.msk [vmem:[%s9796_s11 + $0xa8] sm:$0xff] %vm1389_vm8, %v5528_v16  ;;  %v5619_v48 = vsel %vm1389_vm8, %v5528_v16, 0.0  ;;  %v5672_v51 = vmul.f32 %v5528_v16, %v5528_v16  ;;  %5565 = vst.msk [vmem:[%s9796_s11 + $0xd0] sm:$0xff] %vm1389_vm8, %v5533_v13 }
 0x27d   : > { %v5618_v55 = vadd.f32 %v5617_v53, %v5616_v11  ;;  %v5721_v35 = vadd.f32 %v5720_v17, %v5719_v4  ;;  %v5722_v27 = vsel %vm1389_vm8, %v5671_v42, 0.0  ;;  %v5531_v33 = vmax.f32 %v5499_v32, 0.0  ;;  %v6981_v30 = vpop.f32.mrf.mxu1 }
 0x27e   : > { %v5724_v15 = vsel %vm1389_vm8, %v5672_v51, 0.0  ;;  %v5463_v22 = vadd.f32 %v7011_v44, %v4993_v24  ;;  %v4991_v29 = vadd.f32 %v4938_v62, %v9723_v31  ;;  %v4996_v36 = vadd.f32 %v6980_v41, %v9730_v39 }
 0x27f   : > { %v5726_v10 = vsel %vm1389_vm8, %v5673_v0, 0.0  ;;  %v5723_v20 = vadd.f32 %v5722_v27, %v5721_v35  ;;  %v5623_v14 = vsel %vm1389_vm8, %v5530_v9, 0.0  ;;  %v5620_v37 = vadd.f32 %v5619_v48, %v5618_v55  ;;  %5563 = vst.msk [vmem:[%s9796_s11 + $0xc0] sm:$0xff] %vm1389_vm8, %v5531_v33  ;;  %v4954_v54 = vpop.f32.mrf.mxu1  ;;  %v5424_v0 = vpop.f32.mrf.mxu0 }
 0x280   : > { %v5674_v49 = vmul.f32 %v5530_v9, %v5530_v9  ;;  %v5502_v28 = vadd.f32 %v9763_v47, %v5463_v22  ;;  %v5461_v58 = vadd.f32 %v5408_v40, %v4991_v29  ;;  %v5466_v57 = vadd.f32 %v7014_v23, %v4996_v36 }
 0x281   : > { %v5622_v44 = vadd.f32 %v5621_v38, %v5620_v37  ;;  %v5725_v31 = vadd.f32 %v5724_v15, %v5723_v20  ;;  %v4994_v39 = vadd.f32 %v4951_v45, %v9737_v1  ;;  %v4997_v12 = vadd.f32 %v6981_v30, %v9751_v2 }
 0x282   : > { %v5675_v60 = vmul.f32 %v5531_v33, %v5531_v33  ;;  %v5534_v25 = vmax.f32 %v5502_v28, 0.0  ;;  %v5500_v6 = vadd.f32 %v9763_v47, %v5461_v58  ;;  %v5505_v43 = vadd.f32 %v9763_v47, %v5466_v57 }
 0x283   : > { %v5727_v50 = vadd.f32 %v5726_v10, %v5725_v31  ;;  %v5624_v7 = vadd.f32 %v5623_v14, %v5622_v44  ;;  %v5464_v26 = vadd.f32 %v5421_v34, %v4994_v39  ;;  %v5467_v18 = vadd.f32 %v7015_v52, %v4997_v12 }
 0x284   : > { %v5728_v40 = vsel %vm1389_vm8, %v5674_v49, 0.0  ;;  %v5625_v62 = vsel %vm1389_vm8, %v5531_v33, 0.0  ;;  %5566 = vst.msk [vmem:[%s9796_s11 + $0xd8] sm:$0xff] %vm1389_vm8, %v5534_v25  ;;  %v5532_v1 = vmax.f32 %v5500_v6, 0.0  ;;  %v5537_v2 = vmax.f32 %v5505_v43, 0.0 }
 0x285   : > { %v5626_v3 = vadd.f32 %v5625_v62, %v5624_v7  ;;  %v5729_v56 = vadd.f32 %v5728_v40, %v5727_v50  ;;  %v5503_v9 = vadd.f32 %v9763_v47, %v5464_v26  ;;  %v5506_v21 = vadd.f32 %v9763_v47, %v5467_v18  ;;  %v5577_v26 = vld [vmem:[%s9665_s27] sm:$0x1] }
 0x286   : > { %v5677_v8 = vmul.f32 %v5533_v13, %v5533_v13  ;;  %v5730_v5 = vsel %vm1389_vm8, %v5675_v60, 0.0  ;;  %5564 = vst.msk [vmem:[%s9796_s11 + $0xc8] sm:$0xff] %vm1389_vm8, %v5532_v1  ;;  %v5627_v46 = vsel %vm1389_vm8, %v5532_v1, 0.0  ;;  %v5676_v41 = vmul.f32 %v5532_v1, %v5532_v1  ;;  %5569 = vst.msk [vmem:[%s9796_s11 + $0xf0] sm:$0xff] %vm1389_vm8, %v5537_v2  ;;  %v5650_v62 = vld [vmem:[%s9677_s29] sm:$0x1] }
 0x287   : > { %v5629_v63 = vsel %vm1389_vm8, %v5533_v13, 0.0  ;;  %v5731_v19 = vadd.f32 %v5730_v5, %v5729_v56  ;;  %v5628_v59 = vadd.f32 %v5627_v46, %v5626_v3  ;;  %v5535_v42 = vmax.f32 %v5503_v9, 0.0 }
 0x288   : > { %v5678_v17 = vmul.f32 %v5534_v25, %v5534_v25  ;;  %v5732_v16 = vsel %vm1389_vm8, %v5676_v41, 0.0  ;;  %v5538_v24 = vmax.f32 %v5506_v21, 0.0  ;;  %v4995_v23 = vadd.f32 %v4954_v54, %v9758_v61 }
 0x289   : > { %v5630_v45 = vadd.f32 %v5629_v63, %v5628_v59  ;;  %v5733_v4 = vadd.f32 %v5732_v16, %v5731_v19  ;;  %5567 = vst.msk [vmem:[%s9796_s11 + $0xe0] sm:$0xff] %vm1389_vm8, %v5535_v42  ;;  %v5734_v11 = vsel %vm1389_vm8, %v5677_v8, 0.0  ;;  %v5631_v32 = vsel %vm1389_vm8, %v5534_v25, 0.0 }
 0x28a   : > { %v5679_v13 = vmul.f32 %v5535_v42, %v5535_v42  ;;  %5570 = vst.msk [vmem:[%s9796_s11 + $0xf8] sm:$0xff] %vm1389_vm8, %v5538_v24  ;;  %v5465_v38 = vadd.f32 %v5424_v0, %v4995_v23  ;;  %v5736_v51 = vsel %vm1389_vm8, %v5678_v17, 0.0  ;;  %v5633_v61 = vsel %vm1389_vm8, %v5535_v42, 0.0 }
 0x28b   : > { %v5735_v53 = vadd.f32 %v5734_v11, %v5733_v4  ;;  %v5632_v48 = vadd.f32 %v5631_v32, %v5630_v45  ;;  %v5681_v29 = vmul.f32 %v5537_v2, %v5537_v2  ;;  %v5637_v10 = vsel %vm1389_vm8, %v5537_v2, 0.0 }
 0x28c   : > { %v5504_v55 = vadd.f32 %v9763_v47, %v5465_v38  ;;  %v5738_v33 = vsel %vm1389_vm8, %v5679_v13, 0.0  ;;  %v5682_v20 = vmul.f32 %v5538_v24, %v5538_v24  ;;  %v5639_v28 = vsel %vm1389_vm8, %v5538_v24, 0.0 }
 0x28d   : > { %v5634_v35 = vadd.f32 %v5633_v61, %v5632_v48  ;;  %v5737_v27 = vadd.f32 %v5736_v51, %v5735_v53  ;;  %v5742_v49 = vsel %vm1389_vm8, %v5681_v29, 0.0 }
 0x28e   : > { %v5536_v15 = vmax.f32 %v5504_v55, 0.0  ;;  %v5744_v44 = vsel %vm1389_vm8, %v5682_v20, 0.0 }
 0x28f   : > { %v5739_v22 = vadd.f32 %v5738_v33, %v5737_v27 }
 0x290   : > { %5568 = vst.msk [vmem:[%s9796_s11 + $0xe8] sm:$0xff] %vm1389_vm8, %v5536_v15  ;;  %v5635_v36 = vsel %vm1389_vm8, %v5536_v15, 0.0  ;;  %v5680_v34 = vmul.f32 %v5536_v15, %v5536_v15  ;;  %s7151_s11 = sshll.u32 %s7257_s10, 4  ;;  %s7152_s11 = int_to_ptr.vmem [resolvable:$false] %s7151_s11 }
 0x291   : > { %v5636_v30 = vadd.f32 %v5635_v36, %v5634_v35  ;;  %s7153_s15 = scalar_lea.vmem %s7152_s11, 32  ;;  %p7154_p1 = scmp.lt.s32.totalorder %s10066_s14, %s7152_s11 }
 0x292   : > { %v5740_v14 = vsel %vm1389_vm8, %v5680_v34, 0.0  ;;  %p7155_p2 = scmp.lt.s32.totalorder %s7153_s15, %s7147_s9 }
 0x293   : > { %v5638_v37 = vadd.f32 %v5637_v10, %v5636_v30  ;;  %v5741_v47 = vadd.f32 %v5740_v14, %v5739_v22 }
 0x294   : > { %p7156_p3 = por %p7155_p2, %p7154_p1 }
 0x295   : > { %v5640_v58 = vadd.f32 %v5639_v28, %v5638_v37  ;;  %v5743_v57 = vadd.f32 %v5742_v49, %v5741_v47 }
 0x296   : > { %p7157_p5 = pnand %p7156_p3, %p7150_p0 }
 0x297   : > { %v5641_v31 = vrot.slane %v5640_v58, 4  ;;  %v5745_v39 = vadd.f32 %v5744_v44, %v5743_v57 }
 0x299   : > { %v5642_v12 = vadd.f32 %v5641_v31, %v5640_v58  ;;  %v5746_v60 = vrot.slane %v5745_v39, 4 }
 0x29b   : > { %v5643_v25 = vrot.slane %v5642_v12, 2  ;;  %v5747_v6 = vadd.f32 %v5746_v60, %v5745_v39 }
 0x29d   : > { %v5644_v43 = vadd.f32 %v5643_v25, %v5642_v12  ;;  %v5748_v52 = vrot.slane %v5747_v6, 2 }
 0x29f   : > { %v5645_v50 = vrot.slane %v5644_v43, 1  ;;  %v5749_v7 = vadd.f32 %v5748_v52, %v5747_v6 }
 0x2a1   : > { %v5646_v18 = vadd.f32 %v5645_v50, %v5644_v43  ;;  %v5750_v40 = vrot.slane %v5749_v7, 1 }
 0x2a3   : > { %v5647_v1 = vadd.f32 %v5646_v18, %v5577_v26  ;;  %v5751_v2 = vadd.f32 %v5750_v40, %v5749_v7 }
 0x2a5   : > { %5649 = vst.msk [vmem:[%s9665_s27] sm:$0x1] %vm277_vm2, %v5647_v1  ;;  %v5752_v3 = vadd.f32 %v5751_v2, %v5650_v62 }
 0x2a6   : > { %7160 = shalt.err (!%p7157_p5)
}
 0x2a7   : > { %s7161_s27 = scalar_lea.hbm %s10064_s24, 16  ;;  %s7165_s21 = scalar_lea.hbm %s10147_s4, 96 }
 0x2a8   : > { %p7162_p6 = scmp.ne.s32.totalorder %s10064_s24, %s7161_s27  ;;  %p7166_p10 = scmp.lt.s32.totalorder %s10064_s24, %s10147_s4 }
 0x2a9   : > { %p7167_p11 = scmp.lt.s32.totalorder %s7165_s21, %s7161_s27 }
 0x2aa   : > { %p7163_p7 = pnand %p7162_p6, %p7329_p4 }
 0x2ab   : > { %p7168_p12 = por %p7167_p11, %p7166_p10 }
 0x2ac   : > { %p7164_p9 = pneg %p7163_p7 }
 0x2ae   : > { %p7169_p13 = pnand %p7168_p12, %p7164_p9 }
 0x2b0   : > { %7172 = shalt.err (!%p7169_p13)
}
 0x2b1   : > { %7028 = dma.vmem_to_hbm [thread:$0]  (%p7329_p4), %s10066_s14, 16, %s10064_s24, %s5765_s8   ;;  %5753 = vst.msk [vmem:[%s9677_s29] sm:$0x1] %vm277_vm2, %v5752_v3 }
 0x2b2   : > { %s5769_s9 = scalar_lea.sflag [#allocation6], %s9660_s17  ;;  %s7173_s11 = scalar_lea.vmem %s10075_s12, 16 }
 0x2b3   : > { %p7174_p0 = scmp.ne.s32.totalorder %s10075_s12, %s7173_s11  ;;  %s7258_s15 = smov [#allocation5]  }
 0x2b4   : > { %s7177_s27 = sshll.u32 %s7258_s15, 4  ;;  %s7178_s27 = int_to_ptr.vmem [resolvable:$false] %s7177_s27 }
 0x2b5   : > { %p7175_p1 = pnand %p7174_p0, %p7329_p4  ;;  %s7179_s13 = scalar_lea.vmem %s7178_s27, 32 }
 0x2b6   : > { %p7180_p3 = scmp.lt.s32.totalorder %s10075_s12, %s7178_s27  ;;  %p7181_p5 = scmp.lt.s32.totalorder %s7179_s13, %s7173_s11 }
 0x2b7   : > { %p7176_p2 = pneg %p7175_p1 }
 0x2b8   : > { %p7182_p6 = por %p7181_p5, %p7180_p3 }
 0x2ba   : > { %p7183_p7 = pnand %p7182_p6, %p7176_p2 }
 0x2bc   : > { %7186 = shalt.err (!%p7183_p7)
}
 0x2bd   : > { %s7187_s29 = scalar_lea.hbm %s10073_s7, 16  ;;  %s7191_s24 = scalar_lea.hbm %s10148_s5, 96 }
 0x2be   : > { %p7188_p9 = scmp.ne.s32.totalorder %s10073_s7, %s7187_s29  ;;  %p7192_p12 = scmp.lt.s32.totalorder %s10073_s7, %s10148_s5 }
 0x2bf   : > { %p7193_p13 = scmp.lt.s32.totalorder %s7191_s24, %s7187_s29 }
 0x2c0   : > { %p7189_p10 = pnand %p7188_p9, %p7329_p4 }
 0x2c1   : > { %p7194_p0 = por %p7193_p13, %p7192_p12 }
 0x2c2   : > { %p7190_p11 = pneg %p7189_p10 }
 0x2c4   : > { %p7195_p1 = pnand %p7194_p0, %p7190_p11 }
 0x2c6   : > { %7198 = shalt.err (!%p7195_p1)
}
 0x2c7   : > { %7029 = dma.vmem_to_hbm [thread:$0]  (%p7329_p4), %s10075_s12, 16, %s10073_s7, %s5769_s9  }
 0x2c8 PF: > { %p7039_p2 = scmp.ge.s32.totalorder %s7253_s23, 2  ;;  %s5823_s21 = sand.u32 1, %s7233_s18  }
 0x2c9   : > { %s5824_s25 = scalar_lea.sflag [#allocation4], %s5823_s21 }
 0x2ca   : > { %p7033_p3 = pnand %p7039_p2, %p7336_p8 }
 0x2cc   : > { %p7034_p5 = pneg %p7033_p3 }
 0x2ce   : > { %7224 = dma.done.wait (%p7034_p5), %s5824_s25, 16  }
 0x2cf   : > { %7226 = vsyncadd (%p7034_p5), %s5824_s25, 4294967280  ;;  %s5832_s10 = scalar_lea.sflag [#allocation6], %s5823_s21 }
 0x2d0   : > { %7228 = dma.done.wait (%p7034_p5), %s5832_s10, 16  }
 0x2d1   : > { %7230 = vsyncadd (%p7034_p5), %s5832_s10, 4294967280  ;;  %s22_s23 = sadd.s32 1, %s7253_s23   ;;  %s10341_s18 = smov %s7237_s19 }
 0x2d2   : > { %p19_p6 = scmp.ge.s32.totalorder %s22_s23, 8   ;;  %s10342_s19 = smov %s7241_s20 }
 0x2d3   : > { %s10343_s20 = smov %s7342_s6  ;;  %s10344_s21 = smov %s7249_s22 }
 0x2d4   : > { %s10345_s22 = smov %s10347_s26  ;;  %21 = sbr.rel (!%p19_p6) target bundleno = 6 (0x6), region = 116 }
 0x2d9   :  { %5836 = vsyncpa [#allocation4], 1 }
 0x2da   :  { %5838 = vsyncpa [#allocation4 + $0x1], 1 }
 0x2db   :  { %5839 = vsyncpa [#allocation6], 1 }
 0x2dc   :  { %5841 = vsyncpa [#allocation6 + $0x1], 1 }

</bundles_post_ra>
